<compile_context>
chip_gen: v6e
topology: v6e:2x2x1
jax: 0.10.0
libtpu: 0.0.40
codegen_flags: <defaults>
</compile_context>

<pallas_src>
import functools

import jax
import jax.numpy as jnp
from jax import lax
from jax.experimental import pallas as pl
from jax.experimental.pallas import tpu as pltpu


def _round_up(x, m):
    return (x + m - 1) // m * m


# ----------------------------------------------------------------------------
# Pallas kernels
# ----------------------------------------------------------------------------
def matmul_bias_act_kernel(x_ref, w_ref, b_ref, o_ref, *, apply_relu):
    """Single-K-block X @ W + b (+ optional ReLU). f32 accumulate, f32 epilogue."""
    r = jnp.dot(x_ref[...], w_ref[...], preferred_element_type=jnp.float32)
    r = r + b_ref[...]  # (1, tn) broadcasts over rows
    if apply_relu:
        r = jnp.maximum(r, 0.0)
    o_ref[...] = r.astype(o_ref.dtype)


def matmul_bias_act_acc_kernel(x_ref, w_ref, b_ref, o_ref, acc_ref, *, apply_relu):
    """General K-tiled variant with a VMEM f32 accumulator (grid axis 2 = K)."""
    k = pl.program_id(2)

    @pl.when(k == 0)
    def _():
        acc_ref[...] = jnp.zeros_like(acc_ref)

    acc_ref[...] += jnp.dot(x_ref[...], w_ref[...], preferred_element_type=jnp.float32)

    @pl.when(k == pl.num_programs(2) - 1)
    def _():
        r = acc_ref[...] + b_ref[...]
        if apply_relu:
            r = jnp.maximum(r, 0.0)
        o_ref[...] = r.astype(o_ref.dtype)


def fused_fc_kernel(h0_ref, w1_ref, b1_ref, w2_ref, b2_ref, w3_ref, b3_ref,
                    h_ref, y_ref, h1_s, y_acc):
    """Fused fc1->relu->fc2->relu->last.

    Grid = (2048 // tn,) over fc2's output columns.  fc1 is computed once at
    step 0 into VMEM scratch; each step produces one fc2 output block (written
    out as the pooled representation) and accumulates its contribution to the
    logits (last_w is streamed in matching K blocks), so the full h2 never
    needs to be materialized.
    """
    j = pl.program_id(0)

    @pl.when(j == 0)
    def _():
        a = h0_ref[...].astype(jnp.bfloat16)
        r = jnp.dot(a, w1_ref[...], preferred_element_type=jnp.float32) + b1_ref[...]
        h1_s[...] = jnp.maximum(r, 0.0)
        y_acc[...] = jnp.zeros_like(y_acc)

    h1 = h1_s[...].astype(jnp.bfloat16)
    r2 = jnp.dot(h1, w2_ref[...], preferred_element_type=jnp.float32) + b2_ref[...]
    h2 = jnp.maximum(r2, 0.0)
    h_ref[...] = h2
    y_acc[...] += jnp.dot(h2.astype(jnp.bfloat16), w3_ref[...],
                          preferred_element_type=jnp.float32)

    @pl.when(j == pl.num_programs(0) - 1)
    def _():
        y_ref[...] = y_acc[...] + b3_ref[...]


def l2_normalize_kernel(h_ref, o_ref):
    """F.normalize(h, dim=1): h / max(||h||, 1e-12), via rsqrt (EUP)."""
    h = h_ref[...]
    ss = jnp.sum(h * h, axis=1, keepdims=True)
    inv = lax.rsqrt(jnp.maximum(ss, 1e-24))  # == 1 / max(sqrt(ss), 1e-12)
    o_ref[...] = h * inv


# ----------------------------------------------------------------------------
# Wrappers
# ----------------------------------------------------------------------------
def linear_pallas(x, w, b, apply_relu):
    """y = x @ w + b (+ReLU).  x: (M,K) f32; w: (K,N) bf16; b: (1,N) f32.

    Tiles adapt to the real shapes (full-dim blocks for small M/K/N) so nothing
    is padded up to 128 unnecessarily.  Used for the conv matmuls.
    """
    M, K = x.shape
    Kw, N = w.shape
    assert K == Kw, (K, Kw)
    b = b.reshape(1, N).astype(jnp.float32)

    # Row tile: full M (rounded to 16 for bf16 sublane packing) when small.
    tm = _round_up(M, 16) if M <= 512 else 256
    Mp = _round_up(M, tm)
    gm = Mp // tm

    # Column tile: full N when small (full-dim exemption), else 256.
    if N <= 512:
        tn, gn = N, 1
    else:
        tn = 256
        assert N % tn == 0
        gn = N // tn

    # Reduction tile: full K when small (single K step, no accumulator needed).
    if K <= 1024:
        tk, gk = K, 1
    else:
        tk = 512
        assert K % tk == 0
        gk = K // tk

    xp = x.astype(jnp.bfloat16)
    if Mp != M:
        xp = jnp.zeros((Mp, K), jnp.bfloat16).at[:M].set(xp)

    in_specs = [
        pl.BlockSpec((tm, tk), lambda i, j, k: (i, k)),
        pl.BlockSpec((tk, tn), lambda i, j, k: (k, j)),
        pl.BlockSpec((1, tn), lambda i, j, k: (0, j)),
    ]
    out_spec = pl.BlockSpec((tm, tn), lambda i, j, k: (i, j))

    if gk == 1:
        kernel = functools.partial(matmul_bias_act_kernel, apply_relu=apply_relu)
        scratch = []
    else:
        kernel = functools.partial(matmul_bias_act_acc_kernel, apply_relu=apply_relu)
        scratch = [pltpu.VMEM((tm, tn), jnp.float32)]

    out = pl.pallas_call(
        kernel,
        out_shape=jax.ShapeDtypeStruct((Mp, N), jnp.float32),
        grid_spec=pltpu.PrefetchScalarGridSpec(
            num_scalar_prefetch=0,
            grid=(gm, gn, gk),
            in_specs=in_specs,
            out_specs=out_spec,
            scratch_shapes=scratch,
        ),
        compiler_params=pltpu.CompilerParams(
            dimension_semantics=("parallel", "parallel", "arbitrary")
        ),
    )(xp, w, b)
    return out[:M] if Mp != M else out


def im2col(x, k):
    """x: (B,H,W,C) NHWC -> patches (B*Ho*Wo, k*k*C), valid conv, stride 1."""
    B, H, W, C = x.shape
    Ho, Wo = H - k + 1, W - k + 1
    views = [x[:, di:di + Ho, dj:dj + Wo, :] for di in range(k) for dj in range(k)]
    patches = jnp.stack(views, axis=3)  # (B, Ho, Wo, k*k, C)
    return patches.reshape(B * Ho * Wo, k * k * C), (B, Ho, Wo)


def conv_relu_pallas(x, w_flat, b, k, cout):
    """Valid conv (stride 1) + bias + ReLU via (im2col +) fused Pallas matmul."""
    B, H, W, C = x.shape
    if k == 1:
        # 1x1 conv: no patch extraction needed (perf review).
        patches, (Ho, Wo) = x.reshape(B * H * W, C), (H, W)
    else:
        patches, (B, Ho, Wo) = im2col(x, k)
    y = linear_pallas(patches, w_flat, b, apply_relu=True)
    return y.reshape(B, Ho, Wo, cout)


def maxpool2x2(x):
    """2x2 max pool, stride 2, floor mode (nn.MaxPool2d(2)). x: NHWC.

    Done as a plain XLA reshape+max per the perf review (removes the four
    strided HBM gathers + extra pallas_call of the previous version).
    """
    B, H, W, C = x.shape
    Ho, Wo = H // 2, W // 2
    x = x[:, : 2 * Ho, : 2 * Wo, :].reshape(B, Ho, 2, Wo, 2, C)
    return jnp.max(x, axis=(2, 4))


def fused_fc_head(h0, params, tn=256):
    """fc1 -> relu -> fc2 -> relu -> last in one weight-streaming pallas_call.

    Returns (h_fc, y) with padded leading dim; h_fc is the post-fc2 ReLU
    activation (the pooled representation), y the logits (padded to 128 cols).
    """
    B, K1 = h0.shape
    Bp = _round_up(B, 8)
    h0p = jnp.zeros((Bp, K1), jnp.float32).at[:B].set(h0)

    w1, b1 = params["fc1_w"], params["fc1_b"]      # (K1, 2048) bf16, (1, 2048) f32
    w2, b2 = params["fc2_w"], params["fc2_b"]      # (2048, 2048) bf16, (1, 2048) f32
    w3, b3 = params["last_w"], params["last_b"]    # (2048, Np) bf16, (1, Np) f32
    H = w1.shape[1]
    Np = w3.shape[1]
    assert H % tn == 0
    gj = H // tn

    h_fc, y = pl.pallas_call(
        fused_fc_kernel,
        out_shape=(
            jax.ShapeDtypeStruct((Bp, H), jnp.float32),
            jax.ShapeDtypeStruct((Bp, Np), jnp.float32),
        ),
        grid_spec=pltpu.PrefetchScalarGridSpec(
            num_scalar_prefetch=0,
            grid=(gj,),
            in_specs=[
                pl.BlockSpec((Bp, K1), lambda j: (0, 0)),   # h0 (resident)
                pl.BlockSpec((K1, H), lambda j: (0, 0)),    # fc1_w (resident)
                pl.BlockSpec((1, H), lambda j: (0, 0)),     # fc1_b
                pl.BlockSpec((H, tn), lambda j: (0, j)),    # fc2_w N-block (streamed)
                pl.BlockSpec((1, tn), lambda j: (0, j)),    # fc2_b block
                pl.BlockSpec((tn, Np), lambda j: (j, 0)),   # last_w K-block (streamed)
                pl.BlockSpec((1, Np), lambda j: (0, 0)),    # last_b
            ],
            out_specs=[
                pl.BlockSpec((Bp, tn), lambda j: (0, j)),   # h after fc2+relu
                pl.BlockSpec((Bp, Np), lambda j: (0, 0)),   # logits (written at end)
            ],
            scratch_shapes=[
                pltpu.VMEM((Bp, H), jnp.float32),    # h1 = relu(fc1(h0))
                pltpu.VMEM((Bp, Np), jnp.float32),   # logit accumulator
            ],
        ),
        compiler_params=pltpu.CompilerParams(dimension_semantics=("arbitrary",)),
    )(h0p, w1, b1, w2, b2, w3, b3)
    return h_fc, y


def l2_normalize_pallas(h):
    return pl.pallas_call(
        l2_normalize_kernel,
        out_shape=jax.ShapeDtypeStruct(h.shape, jnp.float32),
    )(h)


# ----------------------------------------------------------------------------
# Parameters (deterministic init; Bayesian layers use their mean weights).
# Weights pre-cast to bf16 and `last` pre-padded to 128 output lanes ONCE here.
# ----------------------------------------------------------------------------
def init_params(key, ncha, size, nclasses):
    k1, k2, k3 = size // 8, size // 10, 2
    s = size - k1 + 1
    s = s // 2
    s = s - k2 + 1
    s = s // 2
    s = s - k3 + 1
    s = s // 2
    fc_in = 256 * s * s
    n_pad = _round_up(nclasses, 128)

    def dense(key, shape, scale=0.05):
        return scale * jax.random.normal(key, shape, dtype=jnp.float32)

    keys = jax.random.split(key, 12)
    last_w = dense(keys[10], (2048, nclasses), 0.02)
    last_b = dense(keys[11], (nclasses,))
    params = {
        # conv weights stored flattened as (k*k*Cin, Cout) to match im2col order
        "conv1_w": dense(keys[0], (k1 * k1 * ncha, 64)).astype(jnp.bfloat16),
        "conv1_b": dense(keys[1], (1, 64)),
        "conv2_w": dense(keys[2], (k2 * k2 * 64, 128)).astype(jnp.bfloat16),
        "conv2_b": dense(keys[3], (1, 128)),
        "conv3_w": dense(keys[4], (k3 * k3 * 128, 256)).astype(jnp.bfloat16),
        "conv3_b": dense(keys[5], (1, 256)),
        "fc1_w": dense(keys[6], (fc_in, 2048), 0.02).astype(jnp.bfloat16),
        "fc1_b": dense(keys[7], (1, 2048)),
        "fc2_w": dense(keys[8], (2048, 2048), 0.02).astype(jnp.bfloat16),
        "fc2_b": dense(keys[9], (1, 2048)),
        "last_w": jnp.zeros((2048, n_pad), jnp.bfloat16)
                     .at[:, :nclasses].set(last_w.astype(jnp.bfloat16)),
        "last_b": jnp.zeros((1, n_pad), jnp.float32).at[0, :nclasses].set(last_b),
    }
    return params, (k1, k2, k3)


# ----------------------------------------------------------------------------
# Forward pass (scenario = 'dil', eval mode: dropout = identity)
# ----------------------------------------------------------------------------
def net_forward(params, x_nchw, kernels, nclasses):
    k1, k2, k3 = kernels
    B = x_nchw.shape[0]
    x = jnp.transpose(x_nchw, (0, 2, 3, 1))  # NCHW -> NHWC (TPU-friendly)

    h = conv_relu_pallas(x, params["conv1_w"], params["conv1_b"], k1, 64)
    h = maxpool2x2(h)
    h = conv_relu_pallas(h, params["conv2_w"], params["conv2_b"], k2, 128)
    h = maxpool2x2(h)
    h = conv_relu_pallas(h, params["conv3_w"], params["conv3_b"], k3, 256)
    h = maxpool2x2(h)

    # Flatten in PyTorch's NCHW .view order (transpose back first) so fc1
    # weight indexing matches the reference for any spatial size.
    h0 = jnp.transpose(h, (0, 3, 1, 2)).reshape(B, -1)

    # Fused fc1 -> relu -> fc2 -> relu -> last (single Pallas call).
    h_fc_pad, y_pad = fused_fc_head(h0, params)
    y = y_pad[:B, :nclasses]
    h_norm = l2_normalize_pallas(h_fc_pad)[:B]

    return {"y": y, "normalized_pooled_rep": h_norm, "masks": None}


# ----------------------------------------------------------------------------
if __name__ == "__main__":
    # Small config: batch=2, image_channel=4, image_size=16, nclasses=10
    B, NCHA, SIZE, NCLASSES = 2, 4, 16, 10

    key = jax.random.PRNGKey(0)
    k_in, k_par = jax.random.split(key)
    x = jax.random.normal(k_in, (B, NCHA, SIZE, SIZE), dtype=jnp.float32)  # NCHW

    params, kernels = init_params(k_par, NCHA, SIZE, NCLASSES)

    fwd = jax.jit(functools.partial(net_forward, kernels=kernels, nclasses=NCLASSES))
    out = fwd(params, x)
    jax.block_until_ready(out["y"])
    jax.block_until_ready(out["normalized_pooled_rep"])

    assert out["y"].shape == (B, NCLASSES)
    assert out["normalized_pooled_rep"].shape == (B, 2048)
    print("KERNEL_OK")
</pallas_src>

<mosaic_0001>
module attributes {stable_mosaic.version = 11 : i64} {
  func.func @matmul_bias_act_kernel(%arg0: i32, %arg1: i32, %arg2: i32, %arg3: memref<464x16xbf16, #tpu.memory_space<vmem>>, %arg4: memref<16x64xbf16, #tpu.memory_space<vmem>>, %arg5: memref<1x64xf32, #tpu.memory_space<vmem>>, %arg6: memref<464x64xf32, #tpu.memory_space<vmem>>) attributes {dimension_semantics = [#tpu.dimension_semantics<parallel>, #tpu.dimension_semantics<parallel>, #tpu.dimension_semantics<arbitrary>], iteration_bounds = array<i64: 1, 1, 1>, scalar_prefetch = 0 : i64, scratch_operands = 0 : i64, tpu.core_type = #tpu.core_type<tc>, window_params = [{transform_indices = @transform_0, window_bounds = array<i64: 464, 16>}, {transform_indices = @transform_1, window_bounds = array<i64: 16, 64>}, {transform_indices = @transform_2, window_bounds = array<i64: 1, 64>}, {transform_indices = @transform_3, window_bounds = array<i64: 464, 64>}]} {
    %c0 = arith.constant 0 : index
    %c0_0 = arith.constant 0 : index
    %0 = vector.load %arg3[%c0, %c0_0] : memref<464x16xbf16, #tpu.memory_space<vmem>>, vector<464x16xbf16>
    %c0_1 = arith.constant 0 : index
    %c0_2 = arith.constant 0 : index
    %1 = vector.load %arg4[%c0_1, %c0_2] : memref<16x64xbf16, #tpu.memory_space<vmem>>, vector<16x64xbf16>
    %cst = arith.constant dense<0.000000e+00> : vector<464x64xf32>
    %2 = tpu.matmul %0, %1, %cst {dimension_numbers = #tpu.dot_dimension_numbers<[1], [0], [0], [1], [0, 0, 1, 1], [], []>} : vector<464x16xbf16>, vector<16x64xbf16>, vector<464x64xf32> -> vector<464x64xf32>
    %c0_3 = arith.constant 0 : index
    %c0_4 = arith.constant 0 : index
    %3 = vector.load %arg5[%c0_3, %c0_4] : memref<1x64xf32, #tpu.memory_space<vmem>>, vector<1x64xf32>
    %4 = vector.broadcast %3 : vector<1x64xf32> to vector<464x64xf32>
    %5 = arith.addf %2, %4 : vector<464x64xf32>
    %cst_5 = arith.constant 0.000000e+00 : f32
    %6 = vector.broadcast %cst_5 : f32 to vector<464x64xf32>
    %7 = arith.maximumf %5, %6 : vector<464x64xf32>
    %c0_6 = arith.constant 0 : index
    %c0_7 = arith.constant 0 : index
    %8 = vector.load %arg6[%c0_6, %c0_7] : memref<464x64xf32, #tpu.memory_space<vmem>>, vector<464x64xf32>
    tpu.vector_store %arg6[%c0_6, %c0_7], %7 {strides = array<i32>} : memref<464x64xf32, #tpu.memory_space<vmem>>, vector<464x64xf32>,
    return
  }
  func.func @transform_0(%arg0: i32, %arg1: i32, %arg2: i32) -> (i32, i32) {
    %c0_i32 = arith.constant 0 : i32
    return %arg0, %arg2 : i32, i32
  }
  func.func @transform_1(%arg0: i32, %arg1: i32, %arg2: i32) -> (i32, i32) {
    %c0_i32 = arith.constant 0 : i32
    return %arg2, %arg1 : i32, i32
  }
  func.func @transform_2(%arg0: i32, %arg1: i32, %arg2: i32) -> (i32, i32) {
    %c0_i32 = arith.constant 0 : i32
    %c0_i32_0 = arith.constant 0 : i32
    return %c0_i32, %arg1 : i32, i32
  }
  func.func @transform_3(%arg0: i32, %arg1: i32, %arg2: i32) -> (i32, i32) {
    %c0_i32 = arith.constant 0 : i32
    return %arg0, %arg1 : i32, i32
  }
}

module attributes {stable_mosaic.version = 11 : i64} {
  func.func @matmul_bias_act_kernel(%arg0: i32, %arg1: i32, %arg2: i32, %arg3: memref<112x64xbf16, #tpu.memory_space<vmem>>, %arg4: memref<64x128xbf16, #tpu.memory_space<vmem>>, %arg5: memref<1x128xf32, #tpu.memory_space<vmem>>, %arg6: memref<112x128xf32, #tpu.memory_space<vmem>>) attributes {dimension_semantics = [#tpu.dimension_semantics<parallel>, #tpu.dimension_semantics<parallel>, #tpu.dimension_semantics<arbitrary>], iteration_bounds = array<i64: 1, 1, 1>, scalar_prefetch = 0 : i64, scratch_operands = 0 : i64, tpu.core_type = #tpu.core_type<tc>, window_params = [{transform_indices = @transform_0, window_bounds = array<i64: 112, 64>}, {transform_indices = @transform_1, window_bounds = array<i64: 64, 128>}, {transform_indices = @transform_2, window_bounds = array<i64: 1, 128>}, {transform_indices = @transform_3, window_bounds = array<i64: 112, 128>}]} {
    %c0 = arith.constant 0 : index
    %c0_0 = arith.constant 0 : index
    %0 = vector.load %arg3[%c0, %c0_0] : memref<112x64xbf16, #tpu.memory_space<vmem>>, vector<112x64xbf16>
    %c0_1 = arith.constant 0 : index
    %c0_2 = arith.constant 0 : index
    %1 = vector.load %arg4[%c0_1, %c0_2] : memref<64x128xbf16, #tpu.memory_space<vmem>>, vector<64x128xbf16>
    %cst = arith.constant dense<0.000000e+00> : vector<112x128xf32>
    %2 = tpu.matmul %0, %1, %cst {dimension_numbers = #tpu.dot_dimension_numbers<[1], [0], [0], [1], [0, 0, 1, 1], [], []>} : vector<112x64xbf16>, vector<64x128xbf16>, vector<112x128xf32> -> vector<112x128xf32>
    %c0_3 = arith.constant 0 : index
    %c0_4 = arith.constant 0 : index
    %3 = vector.load %arg5[%c0_3, %c0_4] : memref<1x128xf32, #tpu.memory_space<vmem>>, vector<1x128xf32>
    %4 = vector.broadcast %3 : vector<1x128xf32> to vector<112x128xf32>
    %5 = arith.addf %2, %4 : vector<112x128xf32>
    %cst_5 = arith.constant 0.000000e+00 : f32
    %6 = vector.broadcast %cst_5 : f32 to vector<112x128xf32>
    %7 = arith.maximumf %5, %6 : vector<112x128xf32>
    %c0_6 = arith.constant 0 : index
    %c0_7 = arith.constant 0 : index
    %8 = vector.load %arg6[%c0_6, %c0_7] : memref<112x128xf32, #tpu.memory_space<vmem>>, vector<112x128xf32>
    tpu.vector_store %arg6[%c0_6, %c0_7], %7 {strides = array<i32>} : memref<112x128xf32, #tpu.memory_space<vmem>>, vector<112x128xf32>,
    return
  }
  func.func @transform_0(%arg0: i32, %arg1: i32, %arg2: i32) -> (i32, i32) {
    %c0_i32 = arith.constant 0 : i32
    return %arg0, %arg2 : i32, i32
  }
  func.func @transform_1(%arg0: i32, %arg1: i32, %arg2: i32) -> (i32, i32) {
    %c0_i32 = arith.constant 0 : i32
    return %arg2, %arg1 : i32, i32
  }
  func.func @transform_2(%arg0: i32, %arg1: i32, %arg2: i32) -> (i32, i32) {
    %c0_i32 = arith.constant 0 : i32
    %c0_i32_0 = arith.constant 0 : i32
    return %c0_i32, %arg1 : i32, i32
  }
  func.func @transform_3(%arg0: i32, %arg1: i32, %arg2: i32) -> (i32, i32) {
    %c0_i32 = arith.constant 0 : i32
    return %arg0, %arg1 : i32, i32
  }
}

module attributes {stable_mosaic.version = 11 : i64} {
  func.func @matmul_bias_act_kernel(%arg0: i32, %arg1: i32, %arg2: i32, %arg3: memref<16x512xbf16, #tpu.memory_space<vmem>>, %arg4: memref<512x256xbf16, #tpu.memory_space<vmem>>, %arg5: memref<1x256xf32, #tpu.memory_space<vmem>>, %arg6: memref<16x256xf32, #tpu.memory_space<vmem>>) attributes {dimension_semantics = [#tpu.dimension_semantics<parallel>, #tpu.dimension_semantics<parallel>, #tpu.dimension_semantics<arbitrary>], iteration_bounds = array<i64: 1, 1, 1>, scalar_prefetch = 0 : i64, scratch_operands = 0 : i64, tpu.core_type = #tpu.core_type<tc>, window_params = [{transform_indices = @transform_0, window_bounds = array<i64: 16, 512>}, {transform_indices = @transform_1, window_bounds = array<i64: 512, 256>}, {transform_indices = @transform_2, window_bounds = array<i64: 1, 256>}, {transform_indices = @transform_3, window_bounds = array<i64: 16, 256>}]} {
    %c0 = arith.constant 0 : index
    %c0_0 = arith.constant 0 : index
    %0 = vector.load %arg3[%c0, %c0_0] : memref<16x512xbf16, #tpu.memory_space<vmem>>, vector<16x512xbf16>
    %c0_1 = arith.constant 0 : index
    %c0_2 = arith.constant 0 : index
    %1 = vector.load %arg4[%c0_1, %c0_2] : memref<512x256xbf16, #tpu.memory_space<vmem>>, vector<512x256xbf16>
    %cst = arith.constant dense<0.000000e+00> : vector<16x256xf32>
    %2 = tpu.matmul %0, %1, %cst {dimension_numbers = #tpu.dot_dimension_numbers<[1], [0], [0], [1], [0, 0, 1, 1], [], []>} : vector<16x512xbf16>, vector<512x256xbf16>, vector<16x256xf32> -> vector<16x256xf32>
    %c0_3 = arith.constant 0 : index
    %c0_4 = arith.constant 0 : index
    %3 = vector.load %arg5[%c0_3, %c0_4] : memref<1x256xf32, #tpu.memory_space<vmem>>, vector<1x256xf32>
    %4 = vector.broadcast %3 : vector<1x256xf32> to vector<16x256xf32>
    %5 = arith.addf %2, %4 : vector<16x256xf32>
    %cst_5 = arith.constant 0.000000e+00 : f32
    %6 = vector.broadcast %cst_5 : f32 to vector<16x256xf32>
    %7 = arith.maximumf %5, %6 : vector<16x256xf32>
    %c0_6 = arith.constant 0 : index
    %c0_7 = arith.constant 0 : index
    %8 = vector.load %arg6[%c0_6, %c0_7] : memref<16x256xf32, #tpu.memory_space<vmem>>, vector<16x256xf32>
    tpu.vector_store %arg6[%c0_6, %c0_7], %7 {strides = array<i32>} : memref<16x256xf32, #tpu.memory_space<vmem>>, vector<16x256xf32>,
    return
  }
  func.func @transform_0(%arg0: i32, %arg1: i32, %arg2: i32) -> (i32, i32) {
    %c0_i32 = arith.constant 0 : i32
    return %arg0, %arg2 : i32, i32
  }
  func.func @transform_1(%arg0: i32, %arg1: i32, %arg2: i32) -> (i32, i32) {
    %c0_i32 = arith.constant 0 : i32
    return %arg2, %arg1 : i32, i32
  }
  func.func @transform_2(%arg0: i32, %arg1: i32, %arg2: i32) -> (i32, i32) {
    %c0_i32 = arith.constant 0 : i32
    %c0_i32_0 = arith.constant 0 : i32
    return %c0_i32, %arg1 : i32, i32
  }
  func.func @transform_3(%arg0: i32, %arg1: i32, %arg2: i32) -> (i32, i32) {
    %c0_i32 = arith.constant 0 : i32
    return %arg0, %arg1 : i32, i32
  }
}

module attributes {stable_mosaic.version = 11 : i64} {
  func.func @fused_fc_kernel(%arg0: i32, %arg1: memref<8x256xf32, #tpu.memory_space<vmem>>, %arg2: memref<256x2048xbf16, #tpu.memory_space<vmem>>, %arg3: memref<1x2048xf32, #tpu.memory_space<vmem>>, %arg4: memref<2048x256xbf16, #tpu.memory_space<vmem>>, %arg5: memref<1x256xf32, #tpu.memory_space<vmem>>, %arg6: memref<256x128xbf16, #tpu.memory_space<vmem>>, %arg7: memref<1x128xf32, #tpu.memory_space<vmem>>, %arg8: memref<8x256xf32, #tpu.memory_space<vmem>>, %arg9: memref<8x128xf32, #tpu.memory_space<vmem>>, %arg10: memref<8x2048xf32, #tpu.memory_space<vmem>>, %arg11: memref<8x128xf32, #tpu.memory_space<vmem>>) attributes {dimension_semantics = [#tpu.dimension_semantics<arbitrary>], iteration_bounds = array<i64: 8>, scalar_prefetch = 0 : i64, scratch_operands = 2 : i64, tpu.core_type = #tpu.core_type<tc>, window_params = [{pipeline_mode = #tpu.pipeline_mode<synchronous>, transform_indices = @transform_0, window_bounds = array<i64: 8, 256>}, {pipeline_mode = #tpu.pipeline_mode<synchronous>, transform_indices = @transform_1, window_bounds = array<i64: 256, 2048>}, {pipeline_mode = #tpu.pipeline_mode<synchronous>, transform_indices = @transform_2, window_bounds = array<i64: 1, 2048>}, {transform_indices = @transform_3, window_bounds = array<i64: 2048, 256>}, {transform_indices = @transform_4, window_bounds = array<i64: 1, 256>}, {transform_indices = @transform_5, window_bounds = array<i64: 256, 128>}, {pipeline_mode = #tpu.pipeline_mode<synchronous>, transform_indices = @transform_6, window_bounds = array<i64: 1, 128>}, {transform_indices = @transform_7, window_bounds = array<i64: 8, 256>}, {pipeline_mode = #tpu.pipeline_mode<synchronous>, transform_indices = @transform_8, window_bounds = array<i64: 8, 128>}]} {
    %c0_i32 = arith.constant 0 : i32
    %0 = arith.cmpi eq, %arg0, %c0_i32 : i32
    %1 = arith.extui %0 : i1 to i32
    %c0_i32_0 = arith.constant 0 : i32
    %2 = arith.cmpi ne, %1, %c0_i32_0 : i32
    scf.if %2 {
      %c0_17 = arith.constant 0 : index
      %c0_18 = arith.constant 0 : index
      %22 = vector.load %arg1[%c0_17, %c0_18] : memref<8x256xf32, #tpu.memory_space<vmem>>, vector<8x256xf32>
      %23 = arith.truncf %22 : vector<8x256xf32> to vector<8x256xbf16>
      %c0_19 = arith.constant 0 : index
      %c0_20 = arith.constant 0 : index
      %24 = vector.load %arg2[%c0_19, %c0_20] : memref<256x2048xbf16, #tpu.memory_space<vmem>>, vector<256x2048xbf16>
      %cst_21 = arith.constant dense<0.000000e+00> : vector<8x2048xf32>
      %25 = tpu.matmul %23, %24, %cst_21 {dimension_numbers = #tpu.dot_dimension_numbers<[1], [0], [0], [1], [0, 0, 1, 1], [], []>} : vector<8x256xbf16>, vector<256x2048xbf16>, vector<8x2048xf32> -> vector<8x2048xf32>
      %c0_22 = arith.constant 0 : index
      %c0_23 = arith.constant 0 : index
      %26 = vector.load %arg3[%c0_22, %c0_23] : memref<1x2048xf32, #tpu.memory_space<vmem>>, vector<1x2048xf32>
      %27 = vector.broadcast %26 : vector<1x2048xf32> to vector<8x2048xf32>
      %28 = arith.addf %25, %27 : vector<8x2048xf32>
      %cst_24 = arith.constant 0.000000e+00 : f32
      %29 = vector.broadcast %cst_24 : f32 to vector<8x2048xf32>
      %30 = arith.maximumf %28, %29 : vector<8x2048xf32>
      %c0_25 = arith.constant 0 : index
      %c0_26 = arith.constant 0 : index
      %31 = vector.load %arg10[%c0_25, %c0_26] : memref<8x2048xf32, #tpu.memory_space<vmem>>, vector<8x2048xf32>
      tpu.vector_store %arg10[%c0_25, %c0_26], %30 {strides = array<i32>} : memref<8x2048xf32, #tpu.memory_space<vmem>>, vector<8x2048xf32>,
      %cst_27 = arith.constant 0.000000e+00 : f32
      %32 = vector.broadcast %cst_27 : f32 to vector<8x128xf32>
      %c0_28 = arith.constant 0 : index
      %c0_29 = arith.constant 0 : index
      %33 = vector.load %arg11[%c0_28, %c0_29] : memref<8x128xf32, #tpu.memory_space<vmem>>, vector<8x128xf32>
      tpu.vector_store %arg11[%c0_28, %c0_29], %32 {strides = array<i32>} : memref<8x128xf32, #tpu.memory_space<vmem>>, vector<8x128xf32>,
    } else {
    }
    %c0 = arith.constant 0 : index
    %c0_1 = arith.constant 0 : index
    %3 = vector.load %arg10[%c0, %c0_1] : memref<8x2048xf32, #tpu.memory_space<vmem>>, vector<8x2048xf32>
    %4 = arith.truncf %3 : vector<8x2048xf32> to vector<8x2048xbf16>
    %c0_2 = arith.constant 0 : index
    %c0_3 = arith.constant 0 : index
    %5 = vector.load %arg4[%c0_2, %c0_3] : memref<2048x256xbf16, #tpu.memory_space<vmem>>, vector<2048x256xbf16>
    %cst = arith.constant dense<0.000000e+00> : vector<8x256xf32>
    %6 = tpu.matmul %4, %5, %cst {dimension_numbers = #tpu.dot_dimension_numbers<[1], [0], [0], [1], [0, 0, 1, 1], [], []>} : vector<8x2048xbf16>, vector<2048x256xbf16>, vector<8x256xf32> -> vector<8x256xf32>
    %c0_4 = arith.constant 0 : index
    %c0_5 = arith.constant 0 : index
    %7 = vector.load %arg5[%c0_4, %c0_5] : memref<1x256xf32, #tpu.memory_space<vmem>>, vector<1x256xf32>
    %8 = vector.broadcast %7 : vector<1x256xf32> to vector<8x256xf32>
    %9 = arith.addf %6, %8 : vector<8x256xf32>
    %cst_6 = arith.constant 0.000000e+00 : f32
    %10 = vector.broadcast %cst_6 : f32 to vector<8x256xf32>
    %11 = arith.maximumf %9, %10 : vector<8x256xf32>
    %c0_7 = arith.constant 0 : index
    %c0_8 = arith.constant 0 : index
    %12 = vector.load %arg8[%c0_7, %c0_8] : memref<8x256xf32, #tpu.memory_space<vmem>>, vector<8x256xf32>
    tpu.vector_store %arg8[%c0_7, %c0_8], %11 {strides = array<i32>} : memref<8x256xf32, #tpu.memory_space<vmem>>, vector<8x256xf32>,
    %c0_9 = arith.constant 0 : index
    %c0_10 = arith.constant 0 : index
    %13 = vector.load %arg11[%c0_9, %c0_10] : memref<8x128xf32, #tpu.memory_space<vmem>>, vector<8x128xf32>
    %14 = arith.truncf %11 : vector<8x256xf32> to vector<8x256xbf16>
    %c0_11 = arith.constant 0 : index
    %c0_12 = arith.constant 0 : index
    %15 = vector.load %arg6[%c0_11, %c0_12] : memref<256x128xbf16, #tpu.memory_space<vmem>>, vector<256x128xbf16>
    %cst_13 = arith.constant dense<0.000000e+00> : vector<8x128xf32>
    %16 = tpu.matmul %14, %15, %cst_13 {dimension_numbers = #tpu.dot_dimension_numbers<[1], [0], [0], [1], [0, 0, 1, 1], [], []>} : vector<8x256xbf16>, vector<256x128xbf16>, vector<8x128xf32> -> vector<8x128xf32>
    %17 = arith.addf %13, %16 : vector<8x128xf32>
    %c0_14 = arith.constant 0 : index
    %c0_15 = arith.constant 0 : index
    %18 = vector.load %arg11[%c0_14, %c0_15] : memref<8x128xf32, #tpu.memory_space<vmem>>, vector<8x128xf32>
    tpu.vector_store %arg11[%c0_14, %c0_15], %17 {strides = array<i32>} : memref<8x128xf32, #tpu.memory_space<vmem>>, vector<8x128xf32>,
    %c7_i32 = arith.constant 7 : i32
    %19 = arith.cmpi eq, %arg0, %c7_i32 : i32
    %20 = arith.extui %19 : i1 to i32
    %c0_i32_16 = arith.constant 0 : i32
    %21 = arith.cmpi ne, %20, %c0_i32_16 : i32
    scf.if %21 {
      %c0_17 = arith.constant 0 : index
      %c0_18 = arith.constant 0 : index
      %22 = vector.load %arg11[%c0_17, %c0_18] : memref<8x128xf32, #tpu.memory_space<vmem>>, vector<8x128xf32>
      %c0_19 = arith.constant 0 : index
      %c0_20 = arith.constant 0 : index
      %23 = vector.load %arg7[%c0_19, %c0_20] : memref<1x128xf32, #tpu.memory_space<vmem>>, vector<1x128xf32>
      %24 = vector.broadcast %23 : vector<1x128xf32> to vector<8x128xf32>
      %25 = arith.addf %22, %24 : vector<8x128xf32>
      %c0_21 = arith.constant 0 : index
      %c0_22 = arith.constant 0 : index
      %26 = vector.load %arg9[%c0_21, %c0_22] : memref<8x128xf32, #tpu.memory_space<vmem>>, vector<8x128xf32>
      tpu.vector_store %arg9[%c0_21, %c0_22], %25 {strides = array<i32>} : memref<8x128xf32, #tpu.memory_space<vmem>>, vector<8x128xf32>,
    } else {
    }
    return
  }
  func.func @transform_0(%arg0: i32) -> (i32, i32) {
    %c0_i32 = arith.constant 0 : i32
    %c0_i32_0 = arith.constant 0 : i32
    %c0_i32_1 = arith.constant 0 : i32
    return %c0_i32, %c0_i32_0 : i32, i32
  }
  func.func @transform_1(%arg0: i32) -> (i32, i32) {
    %c0_i32 = arith.constant 0 : i32
    %c0_i32_0 = arith.constant 0 : i32
    %c0_i32_1 = arith.constant 0 : i32
    return %c0_i32, %c0_i32_0 : i32, i32
  }
  func.func @transform_2(%arg0: i32) -> (i32, i32) {
    %c0_i32 = arith.constant 0 : i32
    %c0_i32_0 = arith.constant 0 : i32
    %c0_i32_1 = arith.constant 0 : i32
    return %c0_i32, %c0_i32_0 : i32, i32
  }
  func.func @transform_3(%arg0: i32) -> (i32, i32) {
    %c0_i32 = arith.constant 0 : i32
    %c0_i32_0 = arith.constant 0 : i32
    return %c0_i32, %arg0 : i32, i32
  }
  func.func @transform_4(%arg0: i32) -> (i32, i32) {
    %c0_i32 = arith.constant 0 : i32
    %c0_i32_0 = arith.constant 0 : i32
    return %c0_i32, %arg0 : i32, i32
  }
  func.func @transform_5(%arg0: i32) -> (i32, i32) {
    %c0_i32 = arith.constant 0 : i32
    %c0_i32_0 = arith.constant 0 : i32
    return %arg0, %c0_i32 : i32, i32
  }
  func.func @transform_6(%arg0: i32) -> (i32, i32) {
    %c0_i32 = arith.constant 0 : i32
    %c0_i32_0 = arith.constant 0 : i32
    %c0_i32_1 = arith.constant 0 : i32
    return %c0_i32, %c0_i32_0 : i32, i32
  }
  func.func @transform_7(%arg0: i32) -> (i32, i32) {
    %c0_i32 = arith.constant 0 : i32
    %c0_i32_0 = arith.constant 0 : i32
    return %c0_i32, %arg0 : i32, i32
  }
  func.func @transform_8(%arg0: i32) -> (i32, i32) {
    %c0_i32 = arith.constant 0 : i32
    %c0_i32_0 = arith.constant 0 : i32
    %c0_i32_1 = arith.constant 0 : i32
    return %c0_i32, %c0_i32_0 : i32, i32
  }
}

module attributes {stable_mosaic.version = 11 : i64} {
  func.func @l2_normalize_kernel(%arg0: memref<8x2048xf32, #tpu.memory_space<vmem>>, %arg1: memref<8x2048xf32, #tpu.memory_space<vmem>>) attributes {dimension_semantics = [], scalar_prefetch = 0 : i64, scratch_operands = 0 : i64, tpu.core_type = #tpu.core_type<tc>} {
    %c0 = arith.constant 0 : index
    %c0_0 = arith.constant 0 : index
    %0 = vector.load %arg0[%c0, %c0_0] : memref<8x2048xf32, #tpu.memory_space<vmem>>, vector<8x2048xf32>
    %1 = arith.mulf %0, %0 : vector<8x2048xf32>
    %cst = arith.constant dense<0.000000e+00> : vector<8xf32>
    %2 = vector.multi_reduction <add>, %1, %cst [1] : vector<8x2048xf32> to vector<8xf32>
    %3 = vector.shape_cast %2 : vector<8xf32> to vector<8x1xf32>
    %cst_1 = arith.constant 1.000000e-24 : f32
    %4 = vector.broadcast %cst_1 : f32 to vector<8x1xf32>
    %5 = arith.maximumf %3, %4 : vector<8x1xf32>
    %6 = math.rsqrt %5 : vector<8x1xf32>
    %7 = vector.broadcast %6 : vector<8x1xf32> to vector<8x2048xf32>
    %8 = arith.mulf %0, %7 : vector<8x2048xf32>
    %c0_2 = arith.constant 0 : index
    %c0_3 = arith.constant 0 : index
    %9 = vector.load %arg1[%c0_2, %c0_3] : memref<8x2048xf32, #tpu.memory_space<vmem>>, vector<8x2048xf32>
    tpu.vector_store %arg1[%c0_2, %c0_3], %8 {strides = array<i32>} : memref<8x2048xf32, #tpu.memory_space<vmem>>, vector<8x2048xf32>,
    return
  }
}

</mosaic_0001>

<bundles_post_ra>
// kernel: net_forward.5
= control target key start
LH: loop header
LB: loop body
LE: loop exit
PB: predicated region body
PF: predicated region fallthrough
CT: control target
= control target key end

     0   :  { %8 = vsyncpa [#allocation3], 0  ;;  %s1525_s0 = inlined_call_operand.vmem [shape: bf16[464,16], index: 0, kind: input, shape index: {}]   ;;  %s1526_s1 = inlined_call_operand.hbm [shape: bf16[16,64], index: 1, kind: input, shape index: {}]   ;;  %s1527_s2 = inlined_call_operand.hbm [shape: f32[1,64], index: 2, kind: input, shape index: {}]   ;;  %s1528_s3 = inlined_call_operand.vmem [shape: f32[464,64], index: 3, kind: output, shape index: {}]  }
   0x1   :  { %9 = vsyncpa [#allocation5], 0  ;;  %s1025_s12 = smov [#allocation2]  }
   0x2   :  { %s17_s13 = sshll.u32 %s1025_s12, 4  ;;  %s18_s13 = int_to_ptr.vmem [resolvable:$true] %s17_s13 }
   0x3   :  { %s989_s14 = scalar_lea.vmem %s18_s13, 128  ;;  %p994_p1 = scmp.lt.s32.totalorder %s18_s13, %s18_s13 }
   0x4   :  { %p990_p0 = scmp.ne.s32.totalorder %s18_s13, %s989_s14  ;;  %p995_p2 = scmp.lt.s32.totalorder %s989_s14, %s989_s14 }
   0x6   :  { %p996_p3 = por %p995_p2, %p994_p1 }
   0x8   :  { %p997_p4 = pnand %p996_p3, %p990_p0 }
   0xa   :  { %1000 = shalt.err (!%p997_p4)
}
   0xb   :  { %s1026_s15 = smov 64   ;;  %s1027_s16 = smov 4  }
   0xc   :  { %23 = dma.hbm_to_vmem [thread:$0]  %s1526_s1, 128, %s18_s13, [#allocation3], %s1026_s15, %s1026_s15, %s1027_s16  }
   0xd   :  { %s1028_s19 = smov [#allocation4]  }
   0xe   :  { %s30_s20 = sshll.u32 %s1028_s19, 4  ;;  %s31_s20 = int_to_ptr.vmem [resolvable:$true] %s30_s20 }
   0xf   :  { %s1009_s21 = scalar_lea.vmem %s31_s20, 16  ;;  %s1013_s22 = scalar_lea.vmem %s31_s20, 32 }
  0x10   :  { %p1010_p5 = scmp.ne.s32.totalorder %s31_s20, %s1009_s21  ;;  %p1014_p6 = scmp.lt.s32.totalorder %s31_s20, %s31_s20 }
  0x11   :  { %p1015_p7 = scmp.lt.s32.totalorder %s1013_s22, %s1009_s21 }
  0x13   :  { %p1016_p8 = por %p1015_p7, %p1014_p6 }
  0x15   :  { %p1017_p9 = pnand %p1016_p8, %p1010_p5 }
  0x17   :  { %1020 = shalt.err (!%p1017_p9)
}
  0x18   :  { %33 = dma.hbm_to_vmem [thread:$0]  %s1527_s2, 16, %s31_s20, [#allocation5]  }
  0x19   :  { %1021 = dma.done.wait [#allocation3], 128  }
  0x1a   :  { %1022 = vsyncadd [#allocation3], 4294967168 }
  0x1b   :  { %1023 = dma.done.wait [#allocation5], 16  }
  0x1c   :  { %1024 = vsyncadd [#allocation5], 4294967280  ;;  %v1029_v0 = vmov 0.0   ;;  %vm1030_vm0 = vmmov 0   ;;  %v951_v1 = vld [vmem:[#allocation2] sm:$0xff]   ;;  %vm259_vm1 = vcmask 130048  }
  0x1d   :  { %825 = vmatprep.subr.bf16.mxu0 %v1029_v0  ;;  %943 = vmatprep.subr.bf16.mxu1 %v1029_v0  ;;  %v952_v2 = vld [vmem:[%s1525_s0] sm:$0xff]   ;;  %v953_v3 = vld [vmem:[%s1525_s0 + $0x78] sm:$0xff]   ;;  %v954_v4 = vld [vmem:[%s1525_s0 + $0x8] sm:$0xff]   ;;  %vm670_vm2 = vcmask 523264  }
  0x1e   :  { %827 = vmatprep.mubr.msk.bf16.mxu0 %vm1030_vm0, %v1029_v0  ;;  %887 = vmatprep.mubr.msk.bf16.mxu1 %vm1030_vm0, %v1029_v0  ;;  %v955_v5 = vld [vmem:[%s1525_s0 + $0x80] sm:$0xff]   ;;  %v956_v6 = vld [vmem:[%s1525_s0 + $0x10] sm:$0xff]   ;;  %v957_v7 = vld [vmem:[%s1525_s0 + $0x88] sm:$0xff]  }
  0x1f   :  { %826 = vmatpush3.bf16.msra.mxu0 %v951_v1  ;;  %944 = vmatpush3.bf16.msra.mxu1 %v951_v1  ;;  %v958_v8 = vld [vmem:[%s1525_s0 + $0x18] sm:$0xff]   ;;  %v959_v9 = vld [vmem:[%s1525_s0 + $0x90] sm:$0xff]   ;;  %v960_v10 = vld [vmem:[%s1525_s0 + $0x20] sm:$0xff]  }
  0x20   :  { %v961_v11 = vld [vmem:[%s1525_s0 + $0x98] sm:$0xff]   ;;  %v962_v12 = vld [vmem:[%s1525_s0 + $0x28] sm:$0xff]   ;;  %v963_v13 = vld [vmem:[%s1525_s0 + $0xa0] sm:$0xff]  }
  0x21   :  { %v964_v14 = vld [vmem:[%s1525_s0 + $0x30] sm:$0xff]   ;;  %v965_v15 = vld [vmem:[%s1525_s0 + $0xa8] sm:$0xff]   ;;  %v966_v16 = vld [vmem:[%s1525_s0 + $0x38] sm:$0xff]  }
  0x22   :  { %828 = vmatmul.mubr.msk.bf16.vlgmr.msra.gmra.mxu0 %vm259_vm1, %v952_v2  ;;  %888 = vmatmul.mubr.msk.bf16.vlgmr.msra.gmra.mxu1 %vm259_vm1, %v953_v3  ;;  %v967_v17 = vld [vmem:[%s1525_s0 + $0xb0] sm:$0xff]   ;;  %v968_v18 = vld [vmem:[%s1525_s0 + $0x40] sm:$0xff]   ;;  %v969_v19 = vld [vmem:[%s1525_s0 + $0xb8] sm:$0xff]  }
  0x23   :  { %831 = vmatprep.mubr.msk.bf16.mxu0 %vm1030_vm0, %v1029_v0  ;;  %891 = vmatprep.mubr.msk.bf16.mxu1 %vm1030_vm0, %v1029_v0  ;;  %v970_v20 = vld [vmem:[%s1525_s0 + $0x48] sm:$0xff]   ;;  %v971_v21 = vld [vmem:[%s1525_s0 + $0xc0] sm:$0xff]   ;;  %v972_v22 = vld [vmem:[%s1525_s0 + $0x50] sm:$0xff]  }
  0x24   :  { %v973_v23 = vld [vmem:[%s1525_s0 + $0xc8] sm:$0xff]   ;;  %v974_v24 = vld [vmem:[%s1525_s0 + $0x58] sm:$0xff]   ;;  %v975_v25 = vld [vmem:[%s1525_s0 + $0xd0] sm:$0xff]  }
  0x25   :  { %v976_v26 = vld [vmem:[%s1525_s0 + $0x60] sm:$0xff]   ;;  %v977_v27 = vld [vmem:[%s1525_s0 + $0xd8] sm:$0xff]   ;;  %v978_v28 = vld [vmem:[%s1525_s0 + $0x68] sm:$0xff]  }
  0x26   :  { %v979_v29 = vld [vmem:[%s1525_s0 + $0xe0] sm:$0xff]   ;;  %v980_v30 = vld [vmem:[%s1525_s0 + $0x70] sm:$0xff]   ;;  %v1233_v31 = vld [vmem:[#allocation4] ss:$0 sm:$0xff] }
  0x2a   :  { %832 = vmatmul.mubr.msk.bf16.gmra.mxu0 %vm259_vm1, %v954_v4  ;;  %892 = vmatmul.mubr.msk.bf16.gmra.mxu1 %vm259_vm1, %v955_v5 }
  0x2b   :  { %835 = vmatprep.mubr.msk.bf16.mxu0 %vm1030_vm0, %v1029_v0  ;;  %895 = vmatprep.mubr.msk.bf16.mxu1 %vm1030_vm0, %v1029_v0 }
  0x32   :  { %836 = vmatmul.mubr.msk.bf16.gmra.mxu0 %vm259_vm1, %v956_v6  ;;  %896 = vmatmul.mubr.msk.bf16.gmra.mxu1 %vm259_vm1, %v957_v7 }
  0x33   :  { %839 = vmatprep.mubr.msk.bf16.mxu0 %vm1030_vm0, %v1029_v0  ;;  %899 = vmatprep.mubr.msk.bf16.mxu1 %vm1030_vm0, %v1029_v0 }
  0x3a   :  { %840 = vmatmul.mubr.msk.bf16.gmra.mxu0 %vm259_vm1, %v958_v8  ;;  %900 = vmatmul.mubr.msk.bf16.gmra.mxu1 %vm259_vm1, %v959_v9 }
  0x3b   :  { %843 = vmatprep.mubr.msk.bf16.mxu0 %vm1030_vm0, %v1029_v0  ;;  %903 = vmatprep.mubr.msk.bf16.mxu1 %vm1030_vm0, %v1029_v0 }
  0x42   :  { %844 = vmatmul.mubr.msk.bf16.gmra.mxu0 %vm259_vm1, %v960_v10  ;;  %904 = vmatmul.mubr.msk.bf16.gmra.mxu1 %vm259_vm1, %v961_v11 }
  0x43   :  { %847 = vmatprep.mubr.msk.bf16.mxu0 %vm1030_vm0, %v1029_v0  ;;  %907 = vmatprep.mubr.msk.bf16.mxu1 %vm1030_vm0, %v1029_v0 }
  0x4a   :  { %848 = vmatmul.mubr.msk.bf16.gmra.mxu0 %vm259_vm1, %v962_v12  ;;  %908 = vmatmul.mubr.msk.bf16.gmra.mxu1 %vm259_vm1, %v963_v13 }
  0x4b   :  { %851 = vmatprep.mubr.msk.bf16.mxu0 %vm1030_vm0, %v1029_v0  ;;  %911 = vmatprep.mubr.msk.bf16.mxu1 %vm1030_vm0, %v1029_v0 }
  0x52   :  { %852 = vmatmul.mubr.msk.bf16.gmra.mxu0 %vm259_vm1, %v964_v14  ;;  %912 = vmatmul.mubr.msk.bf16.gmra.mxu1 %vm259_vm1, %v965_v15 }
  0x53   :  { %855 = vmatprep.mubr.msk.bf16.mxu0 %vm1030_vm0, %v1029_v0  ;;  %915 = vmatprep.mubr.msk.bf16.mxu1 %vm1030_vm0, %v1029_v0 }
  0x5a   :  { %856 = vmatmul.mubr.msk.bf16.gmra.mxu0 %vm259_vm1, %v966_v16  ;;  %916 = vmatmul.mubr.msk.bf16.gmra.mxu1 %vm259_vm1, %v967_v17 }
  0x5b   :  { %859 = vmatprep.mubr.msk.bf16.mxu0 %vm1030_vm0, %v1029_v0  ;;  %919 = vmatprep.mubr.msk.bf16.mxu1 %vm1030_vm0, %v1029_v0 }
  0x62   :  { %860 = vmatmul.mubr.msk.bf16.gmra.mxu0 %vm259_vm1, %v968_v18  ;;  %920 = vmatmul.mubr.msk.bf16.gmra.mxu1 %vm259_vm1, %v969_v19 }
  0x63   :  { %863 = vmatprep.mubr.msk.bf16.mxu0 %vm1030_vm0, %v1029_v0  ;;  %923 = vmatprep.mubr.msk.bf16.mxu1 %vm1030_vm0, %v1029_v0 }
  0x6a   :  { %864 = vmatmul.mubr.msk.bf16.gmra.mxu0 %vm259_vm1, %v970_v20  ;;  %924 = vmatmul.mubr.msk.bf16.gmra.mxu1 %vm259_vm1, %v971_v21 }
  0x6b   :  { %867 = vmatprep.mubr.msk.bf16.mxu0 %vm1030_vm0, %v1029_v0  ;;  %927 = vmatprep.mubr.msk.bf16.mxu1 %vm1030_vm0, %v1029_v0 }
  0x72   :  { %868 = vmatmul.mubr.msk.bf16.gmra.mxu0 %vm259_vm1, %v972_v22  ;;  %928 = vmatmul.mubr.msk.bf16.gmra.mxu1 %vm259_vm1, %v973_v23 }
  0x73   :  { %871 = vmatprep.mubr.msk.bf16.mxu0 %vm1030_vm0, %v1029_v0  ;;  %931 = vmatprep.mubr.msk.bf16.mxu1 %vm1030_vm0, %v1029_v0 }
  0x7a   :  { %872 = vmatmul.mubr.msk.bf16.gmra.mxu0 %vm259_vm1, %v974_v24  ;;  %932 = vmatmul.mubr.msk.bf16.gmra.mxu1 %vm259_vm1, %v975_v25 }
  0x7b   :  { %875 = vmatprep.mubr.msk.bf16.mxu0 %vm1030_vm0, %v1029_v0  ;;  %935 = vmatprep.mubr.msk.bf16.mxu1 %vm1030_vm0, %v1029_v0 }
  0x82   :  { %876 = vmatmul.mubr.msk.bf16.gmra.mxu0 %vm259_vm1, %v976_v26  ;;  %936 = vmatmul.mubr.msk.bf16.gmra.mxu1 %vm259_vm1, %v977_v27 }
  0x83   :  { %879 = vmatprep.mubr.msk.bf16.mxu0 %vm1030_vm0, %v1029_v0  ;;  %939 = vmatprep.mubr.msk.bf16.mxu1 %vm1030_vm0, %v1029_v0 }
  0x8a   :  { %880 = vmatmul.mubr.msk.bf16.gmra.mxu0 %vm259_vm1, %v978_v28  ;;  %940 = vmatmul.mubr.msk.bf16.gmra.mxu1 %vm259_vm1, %v979_v29 }
  0x8b   :  { %883 = vmatprep.mubr.msk.bf16.mxu0 %vm1030_vm0, %v1029_v0 }
  0x92   :  { %884 = vmatmul.mubr.msk.bf16.gmra.mxu0 %vm259_vm1, %v980_v30 }
  0xe2   :  { %v381_v32 = vpop.f32.mrf.mxu0  ;;  %v501_v33 = vpop.f32.mrf.mxu1 }
  0xe3   :  { %v382_v34 = vadd.f32 %v1233_v31, %v381_v32  ;;  %v502_v35 = vadd.f32 %v1233_v31, %v501_v33 }
  0xe4   :  { %v829_v36 = vpop.f32.mrf.mxu0  ;;  %v889_v37 = vpop.f32.mrf.mxu1 }
  0xe5   :  { %v612_v38 = vmax.f32 %v382_v34, 0.0  ;;  %v642_v39 = vmax.f32 %v502_v35, 0.0 }
  0xe6   :  { %v384_v40 = vpop.f32.mrf.mxu0  ;;  %v504_v41 = vpop.f32.mrf.mxu1 }
  0xe7   :  { %671 = vst.msk [vmem:[%s1528_s3] sm:$0xff] %vm670_vm2, %v612_v38  ;;  %701 = vst.msk [vmem:[%s1528_s3 + $0xf0] sm:$0xff] %vm670_vm2, %v642_v39  ;;  %v385_v42 = vadd.f32 %v1233_v31, %v384_v40  ;;  %v505_v43 = vadd.f32 %v1233_v31, %v504_v41 }
  0xe8   :  { %v830_v44 = vpop.f32.mrf.mxu0  ;;  %v890_v45 = vpop.f32.mrf.mxu1 }
  0xe9   :  { %v613_v46 = vmax.f32 %v385_v42, 0.0  ;;  %v643_v47 = vmax.f32 %v505_v43, 0.0 }
  0xea   :  { %v389_v48 = vpop.f32.mrf.mxu0  ;;  %v509_v49 = vpop.f32.mrf.mxu1 }
  0xeb   :  { %672 = vst.msk [vmem:[%s1528_s3 + $0x8] sm:$0xff] %vm670_vm2, %v613_v46  ;;  %702 = vst.msk [vmem:[%s1528_s3 + $0xf8] sm:$0xff] %vm670_vm2, %v643_v47  ;;  %v390_v50 = vadd.f32 %v1233_v31, %v389_v48  ;;  %v510_v51 = vadd.f32 %v1233_v31, %v509_v49 }
  0xec   :  { %v833_v52 = vpop.f32.mrf.mxu0  ;;  %v893_v53 = vpop.f32.mrf.mxu1 }
  0xed   :  { %v614_v54 = vmax.f32 %v390_v50, 0.0  ;;  %v644_v55 = vmax.f32 %v510_v51, 0.0 }
  0xee   :  { %v392_v56 = vpop.f32.mrf.mxu0  ;;  %v512_v57 = vpop.f32.mrf.mxu1 }
  0xef   :  { %673 = vst.msk [vmem:[%s1528_s3 + $0x10] sm:$0xff] %vm670_vm2, %v614_v54  ;;  %703 = vst.msk [vmem:[%s1528_s3 + $0x100] sm:$0xff] %vm670_vm2, %v644_v55  ;;  %v393_v58 = vadd.f32 %v1233_v31, %v392_v56  ;;  %v513_v59 = vadd.f32 %v1233_v31, %v512_v57 }
  0xf0   :  { %v834_v60 = vpop.f32.mrf.mxu0  ;;  %v894_v61 = vpop.f32.mrf.mxu1 }
  0xf1   :  { %v615_v62 = vmax.f32 %v393_v58, 0.0  ;;  %v645_v63 = vmax.f32 %v513_v59, 0.0 }
  0xf2   :  { %v397_v0 = vpop.f32.mrf.mxu0  ;;  %v517_v1 = vpop.f32.mrf.mxu1 }
  0xf3   :  { %674 = vst.msk [vmem:[%s1528_s3 + $0x18] sm:$0xff] %vm670_vm2, %v615_v62  ;;  %704 = vst.msk [vmem:[%s1528_s3 + $0x108] sm:$0xff] %vm670_vm2, %v645_v63  ;;  %v398_v2 = vadd.f32 %v1233_v31, %v397_v0  ;;  %v518_v3 = vadd.f32 %v1233_v31, %v517_v1 }
  0xf4   :  { %v837_v4 = vpop.f32.mrf.mxu0  ;;  %v897_v5 = vpop.f32.mrf.mxu1 }
  0xf5   :  { %v616_v6 = vmax.f32 %v398_v2, 0.0  ;;  %v646_v7 = vmax.f32 %v518_v3, 0.0 }
  0xf6   :  { %v400_v8 = vpop.f32.mrf.mxu0  ;;  %v520_v9 = vpop.f32.mrf.mxu1 }
  0xf7   :  { %675 = vst.msk [vmem:[%s1528_s3 + $0x20] sm:$0xff] %vm670_vm2, %v616_v6  ;;  %705 = vst.msk [vmem:[%s1528_s3 + $0x110] sm:$0xff] %vm670_vm2, %v646_v7  ;;  %v401_v10 = vadd.f32 %v1233_v31, %v400_v8  ;;  %v521_v11 = vadd.f32 %v1233_v31, %v520_v9 }
  0xf8   :  { %v838_v12 = vpop.f32.mrf.mxu0  ;;  %v898_v13 = vpop.f32.mrf.mxu1 }
  0xf9   :  { %v617_v14 = vmax.f32 %v401_v10, 0.0  ;;  %v647_v15 = vmax.f32 %v521_v11, 0.0 }
  0xfa   :  { %v405_v16 = vpop.f32.mrf.mxu0  ;;  %v525_v17 = vpop.f32.mrf.mxu1 }
  0xfb   :  { %676 = vst.msk [vmem:[%s1528_s3 + $0x28] sm:$0xff] %vm670_vm2, %v617_v14  ;;  %706 = vst.msk [vmem:[%s1528_s3 + $0x118] sm:$0xff] %vm670_vm2, %v647_v15  ;;  %v406_v18 = vadd.f32 %v1233_v31, %v405_v16  ;;  %v526_v19 = vadd.f32 %v1233_v31, %v525_v17 }
  0xfc   :  { %v841_v20 = vpop.f32.mrf.mxu0  ;;  %v901_v21 = vpop.f32.mrf.mxu1 }
  0xfd   :  { %v618_v22 = vmax.f32 %v406_v18, 0.0  ;;  %v648_v23 = vmax.f32 %v526_v19, 0.0 }
  0xfe   :  { %v408_v24 = vpop.f32.mrf.mxu0  ;;  %v528_v25 = vpop.f32.mrf.mxu1 }
  0xff   :  { %677 = vst.msk [vmem:[%s1528_s3 + $0x30] sm:$0xff] %vm670_vm2, %v618_v22  ;;  %707 = vst.msk [vmem:[%s1528_s3 + $0x120] sm:$0xff] %vm670_vm2, %v648_v23  ;;  %v409_v26 = vadd.f32 %v1233_v31, %v408_v24  ;;  %v529_v27 = vadd.f32 %v1233_v31, %v528_v25 }
 0x100   :  { %v842_v28 = vpop.f32.mrf.mxu0  ;;  %v902_v29 = vpop.f32.mrf.mxu1 }
 0x101   :  { %v619_v30 = vmax.f32 %v409_v26, 0.0  ;;  %v649_v32 = vmax.f32 %v529_v27, 0.0 }
 0x102   :  { %v413_v33 = vpop.f32.mrf.mxu0  ;;  %v533_v34 = vpop.f32.mrf.mxu1 }
 0x103   :  { %678 = vst.msk [vmem:[%s1528_s3 + $0x38] sm:$0xff] %vm670_vm2, %v619_v30  ;;  %708 = vst.msk [vmem:[%s1528_s3 + $0x128] sm:$0xff] %vm670_vm2, %v649_v32  ;;  %v414_v35 = vadd.f32 %v1233_v31, %v413_v33  ;;  %v534_v36 = vadd.f32 %v1233_v31, %v533_v34 }
 0x104   :  { %v845_v37 = vpop.f32.mrf.mxu0  ;;  %v905_v38 = vpop.f32.mrf.mxu1 }
 0x105   :  { %v620_v39 = vmax.f32 %v414_v35, 0.0  ;;  %v650_v40 = vmax.f32 %v534_v36, 0.0 }
 0x106   :  { %v416_v41 = vpop.f32.mrf.mxu0  ;;  %v536_v42 = vpop.f32.mrf.mxu1 }
 0x107   :  { %679 = vst.msk [vmem:[%s1528_s3 + $0x40] sm:$0xff] %vm670_vm2, %v620_v39  ;;  %709 = vst.msk [vmem:[%s1528_s3 + $0x130] sm:$0xff] %vm670_vm2, %v650_v40  ;;  %v417_v43 = vadd.f32 %v1233_v31, %v416_v41  ;;  %v537_v44 = vadd.f32 %v1233_v31, %v536_v42 }
 0x108   :  { %v846_v45 = vpop.f32.mrf.mxu0  ;;  %v906_v46 = vpop.f32.mrf.mxu1 }
 0x109   :  { %v621_v47 = vmax.f32 %v417_v43, 0.0  ;;  %v651_v48 = vmax.f32 %v537_v44, 0.0 }
 0x10a   :  { %v421_v49 = vpop.f32.mrf.mxu0  ;;  %v541_v50 = vpop.f32.mrf.mxu1 }
 0x10b   :  { %680 = vst.msk [vmem:[%s1528_s3 + $0x48] sm:$0xff] %vm670_vm2, %v621_v47  ;;  %710 = vst.msk [vmem:[%s1528_s3 + $0x138] sm:$0xff] %vm670_vm2, %v651_v48  ;;  %v422_v51 = vadd.f32 %v1233_v31, %v421_v49  ;;  %v542_v52 = vadd.f32 %v1233_v31, %v541_v50 }
 0x10c   :  { %v849_v53 = vpop.f32.mrf.mxu0  ;;  %v909_v54 = vpop.f32.mrf.mxu1 }
 0x10d   :  { %v622_v55 = vmax.f32 %v422_v51, 0.0  ;;  %v652_v56 = vmax.f32 %v542_v52, 0.0 }
 0x10e   :  { %v424_v57 = vpop.f32.mrf.mxu0  ;;  %v544_v58 = vpop.f32.mrf.mxu1 }
 0x10f   :  { %681 = vst.msk [vmem:[%s1528_s3 + $0x50] sm:$0xff] %vm670_vm2, %v622_v55  ;;  %711 = vst.msk [vmem:[%s1528_s3 + $0x140] sm:$0xff] %vm670_vm2, %v652_v56  ;;  %v425_v59 = vadd.f32 %v1233_v31, %v424_v57  ;;  %v545_v60 = vadd.f32 %v1233_v31, %v544_v58 }
 0x110   :  { %v850_v61 = vpop.f32.mrf.mxu0  ;;  %v910_v62 = vpop.f32.mrf.mxu1 }
 0x111   :  { %v623_v63 = vmax.f32 %v425_v59, 0.0  ;;  %v653_v0 = vmax.f32 %v545_v60, 0.0 }
 0x112   :  { %v429_v1 = vpop.f32.mrf.mxu0  ;;  %v549_v2 = vpop.f32.mrf.mxu1 }
 0x113   :  { %682 = vst.msk [vmem:[%s1528_s3 + $0x58] sm:$0xff] %vm670_vm2, %v623_v63  ;;  %712 = vst.msk [vmem:[%s1528_s3 + $0x148] sm:$0xff] %vm670_vm2, %v653_v0  ;;  %v430_v3 = vadd.f32 %v1233_v31, %v429_v1  ;;  %v550_v4 = vadd.f32 %v1233_v31, %v549_v2 }
 0x114   :  { %v853_v5 = vpop.f32.mrf.mxu0  ;;  %v913_v6 = vpop.f32.mrf.mxu1 }
 0x115   :  { %v624_v7 = vmax.f32 %v430_v3, 0.0  ;;  %v654_v8 = vmax.f32 %v550_v4, 0.0 }
 0x116   :  { %v432_v9 = vpop.f32.mrf.mxu0  ;;  %v552_v10 = vpop.f32.mrf.mxu1 }
 0x117   :  { %683 = vst.msk [vmem:[%s1528_s3 + $0x60] sm:$0xff] %vm670_vm2, %v624_v7  ;;  %713 = vst.msk [vmem:[%s1528_s3 + $0x150] sm:$0xff] %vm670_vm2, %v654_v8  ;;  %v433_v11 = vadd.f32 %v1233_v31, %v432_v9  ;;  %v553_v12 = vadd.f32 %v1233_v31, %v552_v10 }
 0x118   :  { %v854_v13 = vpop.f32.mrf.mxu0  ;;  %v914_v14 = vpop.f32.mrf.mxu1 }
 0x119   :  { %v625_v15 = vmax.f32 %v433_v11, 0.0  ;;  %v655_v16 = vmax.f32 %v553_v12, 0.0 }
 0x11a   :  { %v437_v17 = vpop.f32.mrf.mxu0  ;;  %v557_v18 = vpop.f32.mrf.mxu1 }
 0x11b   :  { %684 = vst.msk [vmem:[%s1528_s3 + $0x68] sm:$0xff] %vm670_vm2, %v625_v15  ;;  %714 = vst.msk [vmem:[%s1528_s3 + $0x158] sm:$0xff] %vm670_vm2, %v655_v16  ;;  %v438_v19 = vadd.f32 %v1233_v31, %v437_v17  ;;  %v558_v20 = vadd.f32 %v1233_v31, %v557_v18 }
 0x11c   :  { %v857_v21 = vpop.f32.mrf.mxu0  ;;  %v917_v22 = vpop.f32.mrf.mxu1 }
 0x11d   :  { %v626_v23 = vmax.f32 %v438_v19, 0.0  ;;  %v656_v24 = vmax.f32 %v558_v20, 0.0 }
 0x11e   :  { %v440_v25 = vpop.f32.mrf.mxu0  ;;  %v560_v26 = vpop.f32.mrf.mxu1 }
 0x11f   :  { %685 = vst.msk [vmem:[%s1528_s3 + $0x70] sm:$0xff] %vm670_vm2, %v626_v23  ;;  %715 = vst.msk [vmem:[%s1528_s3 + $0x160] sm:$0xff] %vm670_vm2, %v656_v24  ;;  %v441_v27 = vadd.f32 %v1233_v31, %v440_v25  ;;  %v561_v28 = vadd.f32 %v1233_v31, %v560_v26 }
 0x120   :  { %v858_v29 = vpop.f32.mrf.mxu0  ;;  %v918_v30 = vpop.f32.mrf.mxu1 }
 0x121   :  { %v627_v32 = vmax.f32 %v441_v27, 0.0  ;;  %v657_v33 = vmax.f32 %v561_v28, 0.0 }
 0x122   :  { %v445_v34 = vpop.f32.mrf.mxu0  ;;  %v565_v35 = vpop.f32.mrf.mxu1 }
 0x123   :  { %686 = vst.msk [vmem:[%s1528_s3 + $0x78] sm:$0xff] %vm670_vm2, %v627_v32  ;;  %716 = vst.msk [vmem:[%s1528_s3 + $0x168] sm:$0xff] %vm670_vm2, %v657_v33  ;;  %v446_v36 = vadd.f32 %v1233_v31, %v445_v34  ;;  %v566_v37 = vadd.f32 %v1233_v31, %v565_v35 }
 0x124   :  { %v861_v38 = vpop.f32.mrf.mxu0  ;;  %v921_v39 = vpop.f32.mrf.mxu1 }
 0x125   :  { %v628_v40 = vmax.f32 %v446_v36, 0.0  ;;  %v658_v41 = vmax.f32 %v566_v37, 0.0 }
 0x126   :  { %v448_v42 = vpop.f32.mrf.mxu0  ;;  %v568_v43 = vpop.f32.mrf.mxu1 }
 0x127   :  { %687 = vst.msk [vmem:[%s1528_s3 + $0x80] sm:$0xff] %vm670_vm2, %v628_v40  ;;  %717 = vst.msk [vmem:[%s1528_s3 + $0x170] sm:$0xff] %vm670_vm2, %v658_v41  ;;  %v449_v44 = vadd.f32 %v1233_v31, %v448_v42  ;;  %v569_v45 = vadd.f32 %v1233_v31, %v568_v43 }
 0x128   :  { %v862_v46 = vpop.f32.mrf.mxu0  ;;  %v922_v47 = vpop.f32.mrf.mxu1 }
 0x129   :  { %v629_v48 = vmax.f32 %v449_v44, 0.0  ;;  %v659_v49 = vmax.f32 %v569_v45, 0.0 }
 0x12a   :  { %v453_v50 = vpop.f32.mrf.mxu0  ;;  %v573_v51 = vpop.f32.mrf.mxu1 }
 0x12b   :  { %688 = vst.msk [vmem:[%s1528_s3 + $0x88] sm:$0xff] %vm670_vm2, %v629_v48  ;;  %718 = vst.msk [vmem:[%s1528_s3 + $0x178] sm:$0xff] %vm670_vm2, %v659_v49  ;;  %v454_v52 = vadd.f32 %v1233_v31, %v453_v50  ;;  %v574_v53 = vadd.f32 %v1233_v31, %v573_v51 }
 0x12c   :  { %v865_v54 = vpop.f32.mrf.mxu0  ;;  %v925_v55 = vpop.f32.mrf.mxu1 }
 0x12d   :  { %v630_v56 = vmax.f32 %v454_v52, 0.0  ;;  %v660_v57 = vmax.f32 %v574_v53, 0.0 }
 0x12e   :  { %v456_v58 = vpop.f32.mrf.mxu0  ;;  %v576_v59 = vpop.f32.mrf.mxu1 }
 0x12f   :  { %689 = vst.msk [vmem:[%s1528_s3 + $0x90] sm:$0xff] %vm670_vm2, %v630_v56  ;;  %719 = vst.msk [vmem:[%s1528_s3 + $0x180] sm:$0xff] %vm670_vm2, %v660_v57  ;;  %v457_v60 = vadd.f32 %v1233_v31, %v456_v58  ;;  %v577_v61 = vadd.f32 %v1233_v31, %v576_v59 }
 0x130   :  { %v866_v62 = vpop.f32.mrf.mxu0  ;;  %v926_v63 = vpop.f32.mrf.mxu1 }
 0x131   :  { %v631_v0 = vmax.f32 %v457_v60, 0.0  ;;  %v661_v1 = vmax.f32 %v577_v61, 0.0 }
 0x132   :  { %v461_v2 = vpop.f32.mrf.mxu0  ;;  %v581_v3 = vpop.f32.mrf.mxu1 }
 0x133   :  { %690 = vst.msk [vmem:[%s1528_s3 + $0x98] sm:$0xff] %vm670_vm2, %v631_v0  ;;  %720 = vst.msk [vmem:[%s1528_s3 + $0x188] sm:$0xff] %vm670_vm2, %v661_v1  ;;  %v462_v4 = vadd.f32 %v1233_v31, %v461_v2  ;;  %v582_v5 = vadd.f32 %v1233_v31, %v581_v3 }
 0x134   :  { %v869_v6 = vpop.f32.mrf.mxu0  ;;  %v929_v7 = vpop.f32.mrf.mxu1 }
 0x135   :  { %v632_v8 = vmax.f32 %v462_v4, 0.0  ;;  %v662_v9 = vmax.f32 %v582_v5, 0.0 }
 0x136   :  { %v464_v10 = vpop.f32.mrf.mxu0  ;;  %v584_v11 = vpop.f32.mrf.mxu1 }
 0x137   :  { %691 = vst.msk [vmem:[%s1528_s3 + $0xa0] sm:$0xff] %vm670_vm2, %v632_v8  ;;  %721 = vst.msk [vmem:[%s1528_s3 + $0x190] sm:$0xff] %vm670_vm2, %v662_v9  ;;  %v465_v12 = vadd.f32 %v1233_v31, %v464_v10  ;;  %v585_v13 = vadd.f32 %v1233_v31, %v584_v11 }
 0x138   :  { %v870_v14 = vpop.f32.mrf.mxu0  ;;  %v930_v15 = vpop.f32.mrf.mxu1 }
 0x139   :  { %v633_v16 = vmax.f32 %v465_v12, 0.0  ;;  %v663_v17 = vmax.f32 %v585_v13, 0.0 }
 0x13a   :  { %v469_v18 = vpop.f32.mrf.mxu0  ;;  %v589_v19 = vpop.f32.mrf.mxu1 }
 0x13b   :  { %692 = vst.msk [vmem:[%s1528_s3 + $0xa8] sm:$0xff] %vm670_vm2, %v633_v16  ;;  %722 = vst.msk [vmem:[%s1528_s3 + $0x198] sm:$0xff] %vm670_vm2, %v663_v17  ;;  %v470_v20 = vadd.f32 %v1233_v31, %v469_v18  ;;  %v590_v21 = vadd.f32 %v1233_v31, %v589_v19 }
 0x13c   :  { %v873_v22 = vpop.f32.mrf.mxu0  ;;  %v933_v23 = vpop.f32.mrf.mxu1 }
 0x13d   :  { %v634_v24 = vmax.f32 %v470_v20, 0.0  ;;  %v664_v25 = vmax.f32 %v590_v21, 0.0 }
 0x13e   :  { %v472_v26 = vpop.f32.mrf.mxu0  ;;  %v592_v27 = vpop.f32.mrf.mxu1 }
 0x13f   :  { %693 = vst.msk [vmem:[%s1528_s3 + $0xb0] sm:$0xff] %vm670_vm2, %v634_v24  ;;  %723 = vst.msk [vmem:[%s1528_s3 + $0x1a0] sm:$0xff] %vm670_vm2, %v664_v25  ;;  %v473_v28 = vadd.f32 %v1233_v31, %v472_v26  ;;  %v593_v29 = vadd.f32 %v1233_v31, %v592_v27 }
 0x140   :  { %v874_v30 = vpop.f32.mrf.mxu0  ;;  %v934_v32 = vpop.f32.mrf.mxu1 }
 0x141   :  { %v635_v33 = vmax.f32 %v473_v28, 0.0  ;;  %v665_v34 = vmax.f32 %v593_v29, 0.0 }
 0x142   :  { %v477_v35 = vpop.f32.mrf.mxu0  ;;  %v597_v36 = vpop.f32.mrf.mxu1 }
 0x143   :  { %694 = vst.msk [vmem:[%s1528_s3 + $0xb8] sm:$0xff] %vm670_vm2, %v635_v33  ;;  %724 = vst.msk [vmem:[%s1528_s3 + $0x1a8] sm:$0xff] %vm670_vm2, %v665_v34  ;;  %v478_v37 = vadd.f32 %v1233_v31, %v477_v35  ;;  %v598_v38 = vadd.f32 %v1233_v31, %v597_v36 }
 0x144   :  { %v877_v39 = vpop.f32.mrf.mxu0  ;;  %v937_v40 = vpop.f32.mrf.mxu1 }
 0x145   :  { %v636_v41 = vmax.f32 %v478_v37, 0.0  ;;  %v666_v42 = vmax.f32 %v598_v38, 0.0 }
 0x146   :  { %v480_v43 = vpop.f32.mrf.mxu0  ;;  %v600_v44 = vpop.f32.mrf.mxu1 }
 0x147   :  { %695 = vst.msk [vmem:[%s1528_s3 + $0xc0] sm:$0xff] %vm670_vm2, %v636_v41  ;;  %725 = vst.msk [vmem:[%s1528_s3 + $0x1b0] sm:$0xff] %vm670_vm2, %v666_v42  ;;  %v481_v45 = vadd.f32 %v1233_v31, %v480_v43  ;;  %v601_v46 = vadd.f32 %v1233_v31, %v600_v44 }
 0x148   :  { %v878_v47 = vpop.f32.mrf.mxu0  ;;  %v938_v48 = vpop.f32.mrf.mxu1 }
 0x149   :  { %v637_v49 = vmax.f32 %v481_v45, 0.0  ;;  %v667_v50 = vmax.f32 %v601_v46, 0.0 }
 0x14a   :  { %v485_v51 = vpop.f32.mrf.mxu0  ;;  %v605_v52 = vpop.f32.mrf.mxu1 }
 0x14b   :  { %696 = vst.msk [vmem:[%s1528_s3 + $0xc8] sm:$0xff] %vm670_vm2, %v637_v49  ;;  %726 = vst.msk [vmem:[%s1528_s3 + $0x1b8] sm:$0xff] %vm670_vm2, %v667_v50  ;;  %v486_v53 = vadd.f32 %v1233_v31, %v485_v51  ;;  %v606_v54 = vadd.f32 %v1233_v31, %v605_v52 }
 0x14c   :  { %v881_v55 = vpop.f32.mrf.mxu0  ;;  %v941_v56 = vpop.f32.mrf.mxu1 }
 0x14d   :  { %v638_v57 = vmax.f32 %v486_v53, 0.0  ;;  %v668_v58 = vmax.f32 %v606_v54, 0.0 }
 0x14e   :  { %v488_v59 = vpop.f32.mrf.mxu0  ;;  %v608_v60 = vpop.f32.mrf.mxu1 }
 0x14f   :  { %697 = vst.msk [vmem:[%s1528_s3 + $0xd0] sm:$0xff] %vm670_vm2, %v638_v57  ;;  %727 = vst.msk [vmem:[%s1528_s3 + $0x1c0] sm:$0xff] %vm670_vm2, %v668_v58  ;;  %v489_v61 = vadd.f32 %v1233_v31, %v488_v59  ;;  %v609_v62 = vadd.f32 %v1233_v31, %v608_v60 }
 0x150   :  { %v882_v63 = vpop.f32.mrf.mxu0  ;;  %v942_v0 = vpop.f32.mrf.mxu1 }
 0x151   :  { %v639_v1 = vmax.f32 %v489_v61, 0.0  ;;  %v669_v2 = vmax.f32 %v609_v62, 0.0 }
 0x152   :  { %v493_v3 = vpop.f32.mrf.mxu0 }
 0x153   :  { %698 = vst.msk [vmem:[%s1528_s3 + $0xd8] sm:$0xff] %vm670_vm2, %v639_v1  ;;  %728 = vst.msk [vmem:[%s1528_s3 + $0x1c8] sm:$0xff] %vm670_vm2, %v669_v2  ;;  %v494_v4 = vadd.f32 %v1233_v31, %v493_v3 }
 0x154   :  { %v885_v5 = vpop.f32.mrf.mxu0 }
 0x155   :  { %v640_v6 = vmax.f32 %v494_v4, 0.0 }
 0x156   :  { %v496_v7 = vpop.f32.mrf.mxu0 }
 0x157   :  { %699 = vst.msk [vmem:[%s1528_s3 + $0xe0] sm:$0xff] %vm670_vm2, %v640_v6  ;;  %v497_v8 = vadd.f32 %v1233_v31, %v496_v7 }
 0x158   :  { %v886_v9 = vpop.f32.mrf.mxu0 }
 0x159   :  { %v641_v10 = vmax.f32 %v497_v8, 0.0 }
 0x15b   :  { %700 = vst.msk [vmem:[%s1528_s3 + $0xe8] sm:$0xff] %vm670_vm2, %v641_v10 }
 0x15c   :  { %733 = vsyncpa [#allocation3], 1 }
 0x15d   :  { %734 = vsyncpa [#allocation5], 1 }

// kernel: net_forward.6
= control target key start
LH: loop header
LB: loop body
LE: loop exit
PB: predicated region body
PF: predicated region fallthrough
CT: control target
= control target key end

     0   :  { %8 = vsyncpa [#allocation3], 0  ;;  %s534_s0 = inlined_call_operand.vmem [shape: bf16[112,64], index: 0, kind: input, shape index: {}]   ;;  %s535_s1 = inlined_call_operand.hbm [shape: bf16[64,128], index: 1, kind: input, shape index: {}]   ;;  %s536_s2 = inlined_call_operand.hbm [shape: f32[1,128], index: 2, kind: input, shape index: {}]   ;;  %s537_s3 = inlined_call_operand.vmem [shape: f32[112,128], index: 3, kind: output, shape index: {}]  }
   0x1   :  { %9 = vsyncpa [#allocation5], 0  ;;  %s409_s12 = smov [#allocation2]  }
   0x2   :  { %s17_s13 = sshll.u32 %s409_s12, 4  ;;  %s18_s13 = int_to_ptr.vmem [resolvable:$true] %s17_s13 }
   0x3   :  { %s373_s14 = scalar_lea.vmem %s18_s13, 512  ;;  %p378_p1 = scmp.lt.s32.totalorder %s18_s13, %s18_s13 }
   0x4   :  { %p374_p0 = scmp.ne.s32.totalorder %s18_s13, %s373_s14  ;;  %p379_p2 = scmp.lt.s32.totalorder %s373_s14, %s373_s14 }
   0x6   :  { %p380_p3 = por %p379_p2, %p378_p1 }
   0x8   :  { %p381_p4 = pnand %p380_p3, %p374_p0 }
   0xa   :  { %384 = shalt.err (!%p381_p4)
}
   0xb   :  { %s410_s15 = smov 64   ;;  %s411_s16 = smov 4  }
   0xc   :  { %23 = dma.hbm_to_vmem [thread:$0]  %s535_s1, 512, %s18_s13, [#allocation3], %s410_s15, %s410_s15, %s411_s16  }
   0xd   :  { %s412_s19 = smov [#allocation4]  }
   0xe   :  { %s30_s20 = sshll.u32 %s412_s19, 4  ;;  %s31_s20 = int_to_ptr.vmem [resolvable:$true] %s30_s20 }
   0xf   :  { %s393_s21 = scalar_lea.vmem %s31_s20, 16  ;;  %s397_s22 = scalar_lea.vmem %s31_s20, 32 }
  0x10   :  { %p394_p5 = scmp.ne.s32.totalorder %s31_s20, %s393_s21  ;;  %p398_p6 = scmp.lt.s32.totalorder %s31_s20, %s31_s20 }
  0x11   :  { %p399_p7 = scmp.lt.s32.totalorder %s397_s22, %s393_s21 }
  0x13   :  { %p400_p8 = por %p399_p7, %p398_p6 }
  0x15   :  { %p401_p9 = pnand %p400_p8, %p394_p5 }
  0x17   :  { %404 = shalt.err (!%p401_p9)
}
  0x18   :  { %33 = dma.hbm_to_vmem [thread:$0]  %s536_s2, 16, %s31_s20, [#allocation5]  }
  0x19   :  { %405 = dma.done.wait [#allocation3], 512  }
  0x1a   :  { %406 = vsyncadd [#allocation3], 4294966784 }
  0x1b   :  { %407 = dma.done.wait [#allocation5], 16  }
  0x1c   :  { %408 = vsyncadd [#allocation5], 4294967280  ;;  %v413_v0 = vmov 0.0   ;;  %vm414_vm0 = vmmov 0   ;;  %v354_v1 = vld [vmem:[#allocation2 + $0x18] sm:$0xff]   ;;  %v355_v2 = vld [vmem:[#allocation2 + $0x10] sm:$0xff]  }
  0x1d   :  { %304 = vmatprep.subr.bf16.mxu0 %v413_v0  ;;  %340 = vmatprep.subr.bf16.mxu1 %v413_v0  ;;  %v356_v3 = vld [vmem:[#allocation2 + $0x8] sm:$0xff]   ;;  %v357_v4 = vld [vmem:[#allocation2] sm:$0xff]   ;;  %vm129_vm1 = vcmask 523264   ;;  %v362_v9 = vld [vmem:[%s534_s0 + $0x10] sm:$0xff]  }
  0x1e   :  { %312 = vmatprep.mubr.msk.bf16.mxu0 %vm414_vm0, %v413_v0  ;;  %328 = vmatprep.mubr.msk.bf16.mxu1 %vm414_vm0, %v413_v0  ;;  %v358_v5 = vld [vmem:[%s534_s0] sm:$0xff]   ;;  %v360_v7 = vld [vmem:[%s534_s0 + $0x8] sm:$0xff]   ;;  %v363_v10 = vld [vmem:[%s534_s0 + $0x30] sm:$0xff]  }
  0x1f   :  { %305 = vmatpush3.bf16.msra.mxu0 %v354_v1  ;;  %344 = vmatpush3.bf16.msra.mxu1 %v354_v1  ;;  %v359_v6 = vld [vmem:[%s534_s0 + $0x20] sm:$0xff]   ;;  %v361_v8 = vld [vmem:[%s534_s0 + $0x28] sm:$0xff]   ;;  %v364_v11 = vld [vmem:[%s534_s0 + $0x18] sm:$0xff]  }
  0x20   :  { %306 = vmatprep.subr.bf16.mxu0 %v413_v0  ;;  %341 = vmatprep.subr.bf16.mxu1 %v413_v0  ;;  %v476_v12 = vld [vmem:[#allocation4] ss:$0 sm:$0xff] }
  0x23   :  { %307 = vmatpush3.bf16.msra.mxu0 %v355_v2  ;;  %345 = vmatpush3.bf16.msra.mxu1 %v355_v2 }
  0x24   :  { %308 = vmatprep.subr.bf16.mxu0 %v413_v0  ;;  %342 = vmatprep.subr.bf16.mxu1 %v413_v0 }
  0x27   :  { %309 = vmatpush3.bf16.msra.mxu0 %v356_v3  ;;  %346 = vmatpush3.bf16.msra.mxu1 %v356_v3 }
  0x28   :  { %310 = vmatprep.subr.bf16.mxu0 %v413_v0  ;;  %343 = vmatprep.subr.bf16.mxu1 %v413_v0 }
  0x2b   :  { %311 = vmatpush3.bf16.msra.mxu0 %v357_v4  ;;  %347 = vmatpush3.bf16.msra.mxu1 %v357_v4 }
  0x2e   :  { %313 = vmatmul.mubr.msk.bf16.vlgmr.msra.gmra.mxu0 %vm129_vm1, %v358_v5  ;;  %329 = vmatmul.mubr.msk.bf16.vlgmr.msra.gmra.mxu1 %vm129_vm1, %v359_v6 }
  0x2f   :  { %316 = vmatprep.mubr.msk.bf16.mxu0 %vm414_vm0, %v413_v0  ;;  %332 = vmatprep.mubr.msk.bf16.mxu1 %vm414_vm0, %v413_v0 }
  0x36   :  { %317 = vmatmul.mubr.msk.bf16.gmra.mxu0 %vm129_vm1, %v360_v7  ;;  %333 = vmatmul.mubr.msk.bf16.gmra.mxu1 %vm129_vm1, %v361_v8 }
  0x37   :  { %320 = vmatprep.mubr.msk.bf16.mxu0 %vm414_vm0, %v413_v0  ;;  %336 = vmatprep.mubr.msk.bf16.mxu1 %vm414_vm0, %v413_v0 }
  0x3e   :  { %321 = vmatmul.mubr.msk.bf16.gmra.mxu0 %vm129_vm1, %v362_v9  ;;  %337 = vmatmul.mubr.msk.bf16.gmra.mxu1 %vm129_vm1, %v363_v10 }
  0x3f   :  { %324 = vmatprep.mubr.msk.bf16.mxu0 %vm414_vm0, %v413_v0 }
  0x46   :  { %325 = vmatmul.mubr.msk.bf16.gmra.mxu0 %vm129_vm1, %v364_v11 }
  0xee   :  { %v185_v13 = vpop.f32.mrf.mxu0  ;;  %v217_v14 = vpop.f32.mrf.mxu1 }
  0xef   :  { %v186_v15 = vadd.f32 %v476_v12, %v185_v13  ;;  %v218_v16 = vadd.f32 %v476_v12, %v217_v14 }
  0xf0   :  { %v314_v17 = vpop.f32.mrf.mxu0  ;;  %v330_v18 = vpop.f32.mrf.mxu1 }
  0xf1   :  { %v240_v19 = vmax.f32 %v186_v15, 0.0  ;;  %v248_v20 = vmax.f32 %v218_v16, 0.0 }
  0xf2   :  { %v188_v21 = vpop.f32.mrf.mxu0  ;;  %v220_v22 = vpop.f32.mrf.mxu1 }
  0xf3   :  { %254 = vst [vmem:[%s537_s3] sm:$0xff] %v240_v19  ;;  %262 = vst [vmem:[%s537_s3 + $0x40] sm:$0xff] %v248_v20  ;;  %v189_v23 = vadd.f32 %v476_v12, %v188_v21  ;;  %v221_v24 = vadd.f32 %v476_v12, %v220_v22 }
  0xf4   :  { %v315_v25 = vpop.f32.mrf.mxu0  ;;  %v331_v26 = vpop.f32.mrf.mxu1 }
  0xf5   :  { %v241_v27 = vmax.f32 %v189_v23, 0.0  ;;  %v249_v28 = vmax.f32 %v221_v24, 0.0 }
  0xf6   :  { %v193_v29 = vpop.f32.mrf.mxu0  ;;  %v225_v30 = vpop.f32.mrf.mxu1 }
  0xf7   :  { %255 = vst [vmem:[%s537_s3 + $0x8] sm:$0xff] %v241_v27  ;;  %263 = vst [vmem:[%s537_s3 + $0x48] sm:$0xff] %v249_v28  ;;  %v194_v31 = vadd.f32 %v476_v12, %v193_v29  ;;  %v226_v32 = vadd.f32 %v476_v12, %v225_v30 }
  0xf8   :  { %v318_v33 = vpop.f32.mrf.mxu0  ;;  %v334_v34 = vpop.f32.mrf.mxu1 }
  0xf9   :  { %v242_v35 = vmax.f32 %v194_v31, 0.0  ;;  %v250_v36 = vmax.f32 %v226_v32, 0.0 }
  0xfa   :  { %v196_v37 = vpop.f32.mrf.mxu0  ;;  %v228_v38 = vpop.f32.mrf.mxu1 }
  0xfb   :  { %256 = vst [vmem:[%s537_s3 + $0x10] sm:$0xff] %v242_v35  ;;  %264 = vst [vmem:[%s537_s3 + $0x50] sm:$0xff] %v250_v36  ;;  %v197_v39 = vadd.f32 %v476_v12, %v196_v37  ;;  %v229_v40 = vadd.f32 %v476_v12, %v228_v38 }
  0xfc   :  { %v319_v41 = vpop.f32.mrf.mxu0  ;;  %v335_v42 = vpop.f32.mrf.mxu1 }
  0xfd   :  { %v243_v43 = vmax.f32 %v197_v39, 0.0  ;;  %v251_v44 = vmax.f32 %v229_v40, 0.0 }
  0xfe   :  { %v201_v45 = vpop.f32.mrf.mxu0  ;;  %v233_v46 = vpop.f32.mrf.mxu1 }
  0xff   :  { %257 = vst [vmem:[%s537_s3 + $0x18] sm:$0xff] %v243_v43  ;;  %265 = vst [vmem:[%s537_s3 + $0x58] sm:$0xff] %v251_v44  ;;  %v202_v47 = vadd.f32 %v476_v12, %v201_v45  ;;  %v234_v48 = vadd.f32 %v476_v12, %v233_v46 }
 0x100   :  { %v322_v49 = vpop.f32.mrf.mxu0  ;;  %v338_v50 = vpop.f32.mrf.mxu1 }
 0x101   :  { %v244_v51 = vmax.f32 %v202_v47, 0.0  ;;  %v252_v52 = vmax.f32 %v234_v48, 0.0 }
 0x102   :  { %v204_v53 = vpop.f32.mrf.mxu0  ;;  %v236_v54 = vpop.f32.mrf.mxu1 }
 0x103   :  { %258 = vst [vmem:[%s537_s3 + $0x20] sm:$0xff] %v244_v51  ;;  %266 = vst [vmem:[%s537_s3 + $0x60] sm:$0xff] %v252_v52  ;;  %v205_v55 = vadd.f32 %v476_v12, %v204_v53  ;;  %v237_v56 = vadd.f32 %v476_v12, %v236_v54 }
 0x104   :  { %v323_v57 = vpop.f32.mrf.mxu0  ;;  %v339_v58 = vpop.f32.mrf.mxu1 }
 0x105   :  { %v245_v59 = vmax.f32 %v205_v55, 0.0  ;;  %v253_v60 = vmax.f32 %v237_v56, 0.0 }
 0x106   :  { %v209_v61 = vpop.f32.mrf.mxu0 }
 0x107   :  { %259 = vst [vmem:[%s537_s3 + $0x28] sm:$0xff] %v245_v59  ;;  %267 = vst [vmem:[%s537_s3 + $0x68] sm:$0xff] %v253_v60  ;;  %v210_v62 = vadd.f32 %v476_v12, %v209_v61 }
 0x108   :  { %v326_v63 = vpop.f32.mrf.mxu0 }
 0x109   :  { %v246_v0 = vmax.f32 %v210_v62, 0.0 }
 0x10a   :  { %v212_v1 = vpop.f32.mrf.mxu0 }
 0x10b   :  { %260 = vst [vmem:[%s537_s3 + $0x30] sm:$0xff] %v246_v0  ;;  %v213_v2 = vadd.f32 %v476_v12, %v212_v1 }
 0x10c   :  { %v327_v3 = vpop.f32.mrf.mxu0 }
 0x10d   :  { %v247_v4 = vmax.f32 %v213_v2, 0.0 }
 0x10f   :  { %261 = vst [vmem:[%s537_s3 + $0x38] sm:$0xff] %v247_v4 }
 0x110   :  { %272 = vsyncpa [#allocation3], 1 }
 0x111   :  { %273 = vsyncpa [#allocation5], 1 }

// kernel: net_forward.7
= control target key start
LH: loop header
LB: loop body
LE: loop exit
PB: predicated region body
PF: predicated region fallthrough
CT: control target
= control target key end

     0   :  { %8 = vsyncpa [#allocation3], 0  ;;  %s832_s0 = inlined_call_operand.vmem [shape: bf16[16,512], index: 0, kind: input, shape index: {}]   ;;  %s833_s1 = inlined_call_operand.hbm [shape: bf16[512,256], index: 1, kind: input, shape index: {}]   ;;  %s834_s2 = inlined_call_operand.hbm [shape: f32[1,256], index: 2, kind: input, shape index: {}]   ;;  %s835_s3 = inlined_call_operand.vmem [shape: f32[16,256], index: 3, kind: output, shape index: {}]  }
   0x1   :  { %9 = vsyncpa [#allocation5], 0  ;;  %s778_s12 = smov [#allocation2]  }
   0x2   :  { %s17_s13 = sshll.u32 %s778_s12, 4  ;;  %s18_s13 = int_to_ptr.vmem [resolvable:$true] %s17_s13 }
   0x3   :  { %s742_s14 = scalar_lea.vmem %s18_s13, 8192  ;;  %p747_p1 = scmp.lt.s32.totalorder %s18_s13, %s18_s13 }
   0x4   :  { %p743_p0 = scmp.ne.s32.totalorder %s18_s13, %s742_s14  ;;  %p748_p2 = scmp.lt.s32.totalorder %s742_s14, %s742_s14 }
   0x6   :  { %p749_p3 = por %p748_p2, %p747_p1 }
   0x8   :  { %p750_p4 = pnand %p749_p3, %p743_p0 }
   0xa   :  { %753 = shalt.err (!%p750_p4)
}
   0xb   :  { %s779_s15 = smov 128   ;;  %s780_s16 = smov 8  }
   0xc   :  { %23 = dma.hbm_to_vmem [thread:$0]  %s833_s1, 8192, %s18_s13, [#allocation3], %s779_s15, %s779_s15, %s780_s16  }
   0xd   :  { %s781_s19 = smov [#allocation4]  }
   0xe   :  { %s30_s20 = sshll.u32 %s781_s19, 4  ;;  %s31_s20 = int_to_ptr.vmem [resolvable:$true] %s30_s20 }
   0xf   :  { %s762_s21 = scalar_lea.vmem %s31_s20, 32  ;;  %p767_p6 = scmp.lt.s32.totalorder %s31_s20, %s31_s20 }
  0x10   :  { %p763_p5 = scmp.ne.s32.totalorder %s31_s20, %s762_s21  ;;  %p768_p7 = scmp.lt.s32.totalorder %s762_s21, %s762_s21 }
  0x12   :  { %p769_p8 = por %p768_p7, %p767_p6 }
  0x14   :  { %p770_p9 = pnand %p769_p8, %p763_p5 }
  0x16   :  { %773 = shalt.err (!%p770_p9)
}
  0x17   :  { %33 = dma.hbm_to_vmem [thread:$0]  %s834_s2, 32, %s31_s20, [#allocation5]  }
  0x18   :  { %774 = dma.done.wait [#allocation3], 8192  }
  0x19   :  { %775 = vsyncadd [#allocation3], 4294959104 }
  0x1a   :  { %776 = dma.done.wait [#allocation5], 32  }
  0x1b   :  { %777 = vsyncadd [#allocation5], 4294967264  ;;  %v632_v0 = vld [vmem:[#allocation2 + $0x74] ss:$8 sps:$4 sm:$0xff]   ;;  %v636_v2 = vld [vmem:[#allocation2 + $0x70] ss:$8 sps:$4 sm:$0xff]  }
  0x1c   :  { %v634_v1 = vld [vmem:[#allocation2 + $0x174] ss:$8 sps:$4 sm:$0xff]   ;;  %460 = vmatprep.subr.bf16.mxu0 %v632_v0  ;;  %v637_v3 = vld [vmem:[#allocation2 + $0x170] ss:$8 sps:$4 sm:$0xff]   ;;  %v638_v4 = vld [vmem:[#allocation2 + $0x64] ss:$8 sps:$4 sm:$0xff]  }
  0x1d   :  { %503 = vmatprep.subr.bf16.mxu1 %v634_v1  ;;  %461 = vmatpush1.bf16.msra.mxu0 %v636_v2  ;;  %v640_v5 = vld [vmem:[#allocation2 + $0x164] ss:$8 sps:$4 sm:$0xff]   ;;  %v642_v6 = vld [vmem:[#allocation2 + $0x60] ss:$8 sps:$4 sm:$0xff]   ;;  %v644_v8 = vld [vmem:[#allocation2 + $0x54] ss:$8 sps:$4 sm:$0xff]  }
  0x1e   :  { %504 = vmatpush1.bf16.msra.mxu1 %v637_v3  ;;  %462 = vmatprep.subr.bf16.mxu0 %v638_v4  ;;  %v643_v7 = vld [vmem:[#allocation2 + $0x160] ss:$8 sps:$4 sm:$0xff]   ;;  %v646_v9 = vld [vmem:[#allocation2 + $0x154] ss:$8 sps:$4 sm:$0xff]   ;;  %v648_v10 = vld [vmem:[#allocation2 + $0x50] ss:$8 sps:$4 sm:$0xff]   ;;  %v110_v4 = vlaneseq }
  0x1f   :  { %505 = vmatprep.subr.bf16.mxu1 %v640_v5  ;;  %v649_v11 = vld [vmem:[#allocation2 + $0x150] ss:$8 sps:$4 sm:$0xff]   ;;  %v650_v12 = vld [vmem:[#allocation2 + $0x44] ss:$8 sps:$4 sm:$0xff]   ;;  %v654_v14 = vld [vmem:[#allocation2 + $0x40] ss:$8 sps:$4 sm:$0xff]  }
  0x20   :  { %v652_v13 = vld [vmem:[#allocation2 + $0x144] ss:$8 sps:$4 sm:$0xff]   ;;  %v655_v15 = vld [vmem:[#allocation2 + $0x140] ss:$8 sps:$4 sm:$0xff]   ;;  %v656_v16 = vld [vmem:[#allocation2 + $0x34] ss:$8 sps:$4 sm:$0xff]  }
  0x21   :  { %463 = vmatpush1.bf16.msra.mxu0 %v642_v6  ;;  %v658_v17 = vld [vmem:[#allocation2 + $0x134] ss:$8 sps:$4 sm:$0xff]   ;;  %v660_v18 = vld [vmem:[#allocation2 + $0x30] ss:$8 sps:$4 sm:$0xff]   ;;  %v662_v20 = vld [vmem:[#allocation2 + $0x24] ss:$8 sps:$4 sm:$0xff]  }
  0x22   :  { %506 = vmatpush1.bf16.msra.mxu1 %v643_v7  ;;  %464 = vmatprep.subr.bf16.mxu0 %v644_v8  ;;  %v661_v19 = vld [vmem:[#allocation2 + $0x130] ss:$8 sps:$4 sm:$0xff]   ;;  %v664_v21 = vld [vmem:[#allocation2 + $0x124] ss:$8 sps:$4 sm:$0xff]   ;;  %v666_v22 = vld [vmem:[#allocation2 + $0x20] ss:$8 sps:$4 sm:$0xff]  }
  0x23   :  { %507 = vmatprep.subr.bf16.mxu1 %v646_v9  ;;  %v667_v23 = vld [vmem:[#allocation2 + $0x120] ss:$8 sps:$4 sm:$0xff]   ;;  %v668_v24 = vld [vmem:[#allocation2 + $0x14] ss:$8 sps:$4 sm:$0xff]   ;;  %v672_v26 = vld [vmem:[#allocation2 + $0x10] ss:$8 sps:$4 sm:$0xff]  }
  0x24   :  { %v670_v25 = vld [vmem:[#allocation2 + $0x114] ss:$8 sps:$4 sm:$0xff]   ;;  %v673_v27 = vld [vmem:[#allocation2 + $0x110] ss:$8 sps:$4 sm:$0xff]   ;;  %v674_v28 = vld [vmem:[#allocation2 + $0x4] ss:$8 sps:$4 sm:$0xff]  }
  0x25   :  { %465 = vmatpush1.bf16.msra.mxu0 %v648_v10  ;;  %v676_v29 = vld [vmem:[#allocation2 + $0x104] ss:$8 sps:$4 sm:$0xff]   ;;  %v678_v30 = vld [vmem:[#allocation2] ss:$8 sps:$4 sm:$0xff]   ;;  %v680_v32 = vld [vmem:[#allocation2 + $0xf4] ss:$8 sps:$4 sm:$0xff]  }
  0x26   :  { %508 = vmatpush1.bf16.msra.mxu1 %v649_v11  ;;  %466 = vmatprep.subr.bf16.mxu0 %v650_v12  ;;  %v679_v31 = vld [vmem:[#allocation2 + $0x100] ss:$8 sps:$4 sm:$0xff]   ;;  %v682_v33 = vld [vmem:[#allocation2 + $0x1f4] ss:$8 sps:$4 sm:$0xff]   ;;  %v684_v34 = vld [vmem:[#allocation2 + $0xf0] ss:$8 sps:$4 sm:$0xff]  }
  0x27   :  { %509 = vmatprep.subr.bf16.mxu1 %v652_v13  ;;  %v685_v35 = vld [vmem:[#allocation2 + $0x1f0] ss:$8 sps:$4 sm:$0xff]   ;;  %v686_v36 = vld [vmem:[#allocation2 + $0xe4] ss:$8 sps:$4 sm:$0xff]   ;;  %v690_v38 = vld [vmem:[#allocation2 + $0xe0] ss:$8 sps:$4 sm:$0xff]  }
  0x28   :  { %v688_v37 = vld [vmem:[#allocation2 + $0x1e4] ss:$8 sps:$4 sm:$0xff]   ;;  %v691_v39 = vld [vmem:[#allocation2 + $0x1e0] ss:$8 sps:$4 sm:$0xff]   ;;  %v692_v40 = vld [vmem:[#allocation2 + $0xd4] ss:$8 sps:$4 sm:$0xff]  }
  0x29   :  { %467 = vmatpush1.bf16.msra.mxu0 %v654_v14  ;;  %v694_v41 = vld [vmem:[#allocation2 + $0x1d4] ss:$8 sps:$4 sm:$0xff]   ;;  %v696_v42 = vld [vmem:[#allocation2 + $0xd0] ss:$8 sps:$4 sm:$0xff]   ;;  %v698_v44 = vld [vmem:[#allocation2 + $0xc4] ss:$8 sps:$4 sm:$0xff]  }
  0x2a   :  { %510 = vmatpush1.bf16.msra.mxu1 %v655_v15  ;;  %468 = vmatprep.subr.bf16.mxu0 %v656_v16  ;;  %v697_v43 = vld [vmem:[#allocation2 + $0x1d0] ss:$8 sps:$4 sm:$0xff]   ;;  %v700_v45 = vld [vmem:[#allocation2 + $0x1c4] ss:$8 sps:$4 sm:$0xff]   ;;  %v702_v46 = vld [vmem:[#allocation2 + $0xc0] ss:$8 sps:$4 sm:$0xff]  }
  0x2b   :  { %511 = vmatprep.subr.bf16.mxu1 %v658_v17  ;;  %v730_v47 = vld [vmem:[%s832_s0 + $0x4] ss:$16 sps:$4 sm:$0xff]   ;;  %v703_v48 = vld [vmem:[#allocation2 + $0x1c0] ss:$8 sps:$4 sm:$0xff]   ;;  %v733_v51 = vld [vmem:[%s832_s0 + $0xc] ss:$16 sps:$4 sm:$0xff]  }
  0x2c   :  { %v704_v49 = vld [vmem:[#allocation2 + $0xb4] ss:$8 sps:$4 sm:$0xff]   ;;  %492 = vmatprep.mubr.bf16.mxu0 %v730_v47  ;;  %535 = vmatprep.mubr.bf16.mxu1 %v733_v51  ;;  %v708_v52 = vld [vmem:[#allocation2 + $0xb0] ss:$8 sps:$4 sm:$0xff]   ;;  %v710_v54 = vld [vmem:[#allocation2 + $0xa4] ss:$8 sps:$4 sm:$0xff]  }
  0x2d   :  { %469 = vmatpush1.bf16.msra.mxu0 %v660_v18  ;;  %v706_v50 = vld [vmem:[#allocation2 + $0x1b4] ss:$8 sps:$4 sm:$0xff]   ;;  %v709_v53 = vld [vmem:[#allocation2 + $0x1b0] ss:$8 sps:$4 sm:$0xff]   ;;  %v712_v55 = vld [vmem:[#allocation2 + $0x1a4] ss:$8 sps:$4 sm:$0xff]  }
  0x2e   :  { %512 = vmatpush1.bf16.msra.mxu1 %v661_v19  ;;  %470 = vmatprep.subr.bf16.mxu0 %v662_v20  ;;  %v714_v56 = vld [vmem:[#allocation2 + $0xa0] ss:$8 sps:$4 sm:$0xff]   ;;  %v716_v58 = vld [vmem:[#allocation2 + $0x94] ss:$8 sps:$4 sm:$0xff]   ;;  %v720_v60 = vld [vmem:[#allocation2 + $0x90] ss:$8 sps:$4 sm:$0xff]  }
  0x2f   :  { %513 = vmatprep.subr.bf16.mxu1 %v664_v21  ;;  %v715_v57 = vld [vmem:[#allocation2 + $0x1a0] ss:$8 sps:$4 sm:$0xff]   ;;  %v718_v59 = vld [vmem:[#allocation2 + $0x194] ss:$8 sps:$4 sm:$0xff]   ;;  %v721_v61 = vld [vmem:[#allocation2 + $0x190] ss:$8 sps:$4 sm:$0xff]  }
  0x30   :  { %v722_v62 = vld [vmem:[#allocation2 + $0x84] ss:$8 sps:$4 sm:$0xff]   ;;  %v726_v0 = vld [vmem:[#allocation2 + $0x80] ss:$8 sps:$4 sm:$0xff]   ;;  %v111_v5 = vshrl.u32 %v110_v4, 7 }
  0x31   :  { %471 = vmatpush1.bf16.msra.mxu0 %v666_v22  ;;  %v724_v63 = vld [vmem:[#allocation2 + $0x184] ss:$8 sps:$4 sm:$0xff]   ;;  %v727_v1 = vld [vmem:[#allocation2 + $0x180] ss:$8 sps:$4 sm:$0xff]  }
  0x32   :  { %514 = vmatpush1.bf16.msra.mxu1 %v667_v23  ;;  %472 = vmatprep.subr.bf16.mxu0 %v668_v24  ;;  %v728_v2 = vld [vmem:[%s832_s0] ss:$16 sps:$4 sm:$0xff]   ;;  %v731_v3 = vld [vmem:[%s832_s0 + $0x8] ss:$16 sps:$4 sm:$0xff]   ;;  %v112_v6 = vsub.s32 0, %v111_v5  ;;  %v116_v8 = vsub.s32 1, %v111_v5 }
  0x33   :  { %515 = vmatprep.subr.bf16.mxu1 %v670_v25  ;;  %v108_v7 = vld [vmem:[#allocation4] sm:$0x3] }
  0x34   :  { %v113_v9 = vrot.slane %v108_v7, %v112_v6  ;;  %v117_v10 = vrot.slane %v108_v7, %v116_v8 }
  0x35   :  { %473 = vmatpush1.bf16.msra.mxu0 %v672_v26 }
  0x36   :  { %516 = vmatpush1.bf16.msra.mxu1 %v673_v27  ;;  %474 = vmatprep.subr.bf16.mxu0 %v674_v28 }
  0x37   :  { %517 = vmatprep.subr.bf16.mxu1 %v676_v29 }
  0x39   :  { %475 = vmatpush1.bf16.msra.mxu0 %v678_v30 }
  0x3a   :  { %518 = vmatpush1.bf16.msra.mxu1 %v679_v31  ;;  %476 = vmatprep.subr.bf16.mxu0 %v680_v32 }
  0x3b   :  { %519 = vmatprep.subr.bf16.mxu1 %v682_v33 }
  0x3d   :  { %477 = vmatpush2.bf16.msra.mxu0 %v684_v34 }
  0x3e   :  { %520 = vmatpush2.bf16.msra.mxu1 %v685_v35  ;;  %478 = vmatprep.subr.bf16.mxu0 %v686_v36 }
  0x3f   :  { %521 = vmatprep.subr.bf16.mxu1 %v688_v37 }
  0x41   :  { %479 = vmatpush2.bf16.msra.mxu0 %v690_v38 }
  0x42   :  { %522 = vmatpush2.bf16.msra.mxu1 %v691_v39  ;;  %480 = vmatprep.subr.bf16.mxu0 %v692_v40 }
  0x43   :  { %523 = vmatprep.subr.bf16.mxu1 %v694_v41 }
  0x45   :  { %481 = vmatpush2.bf16.msra.mxu0 %v696_v42 }
  0x46   :  { %524 = vmatpush2.bf16.msra.mxu1 %v697_v43  ;;  %482 = vmatprep.subr.bf16.mxu0 %v698_v44 }
  0x47   :  { %525 = vmatprep.subr.bf16.mxu1 %v700_v45 }
  0x49   :  { %483 = vmatpush2.bf16.msra.mxu0 %v702_v46 }
  0x4a   :  { %526 = vmatpush2.bf16.msra.mxu1 %v703_v48  ;;  %484 = vmatprep.subr.bf16.mxu0 %v704_v49 }
  0x4b   :  { %527 = vmatprep.subr.bf16.mxu1 %v706_v50 }
  0x4d   :  { %485 = vmatpush2.bf16.msra.mxu0 %v708_v52 }
  0x4e   :  { %528 = vmatpush2.bf16.msra.mxu1 %v709_v53  ;;  %486 = vmatprep.subr.bf16.mxu0 %v710_v54 }
  0x4f   :  { %529 = vmatprep.subr.bf16.mxu1 %v712_v55 }
  0x51   :  { %487 = vmatpush2.bf16.msra.mxu0 %v714_v56 }
  0x52   :  { %530 = vmatpush2.bf16.msra.mxu1 %v715_v57  ;;  %488 = vmatprep.subr.bf16.mxu0 %v716_v58 }
  0x53   :  { %531 = vmatprep.subr.bf16.mxu1 %v718_v59 }
  0x55   :  { %489 = vmatpush2.bf16.msra.mxu0 %v720_v60 }
  0x56   :  { %532 = vmatpush2.bf16.msra.mxu1 %v721_v61  ;;  %490 = vmatprep.subr.bf16.mxu0 %v722_v62 }
  0x57   :  { %533 = vmatprep.subr.bf16.mxu1 %v724_v63 }
  0x59   :  { %491 = vmatpush2.bf16.msra.mxu0 %v726_v0 }
  0x5a   :  { %534 = vmatpush2.bf16.msra.mxu1 %v727_v1 }
  0x5c   :  { %493 = vmatmul.mubr.bf16.vlgmr.msra.gmra.mxu0 %v728_v2 }
  0x5d   :  { %536 = vmatmul.mubr.bf16.vlgmr.msra.gmra.mxu1 %v731_v3 }
 0x11c   :  { %v494_v11 = vpop.f32.mrf.mxu0 }
 0x11d   :  { %v537_v12 = vpop.f32.mrf.mxu1  ;;  %v495_v13 = vadd.f32 %v494_v11, %v113_v9 }
 0x11e   :  { %v496_v14 = vpop.f32.mrf.mxu0 }
 0x11f   :  { %v539_v15 = vpop.f32.mrf.mxu1  ;;  %v538_v16 = vadd.f32 %v537_v12, %v495_v13  ;;  %v497_v17 = vadd.f32 %v496_v14, %v117_v10 }
 0x120   :  { %v498_v18 = vpop.f32.mrf.mxu0 }
 0x121   :  { %v541_v19 = vpop.f32.mrf.mxu1  ;;  %v546_v20 = vmax.f32 %v538_v16, 0.0  ;;  %v540_v21 = vadd.f32 %v539_v15, %v497_v17  ;;  %v499_v22 = vadd.f32 %v498_v18, %v113_v9 }
 0x122   :  { %v500_v23 = vpop.f32.mrf.mxu0 }
 0x123   :  { %550 = vst [vmem:[%s835_s3] sm:$0xff] %v546_v20  ;;  %v547_v24 = vmax.f32 %v540_v21, 0.0  ;;  %v542_v25 = vadd.f32 %v541_v19, %v499_v22  ;;  %v501_v26 = vadd.f32 %v500_v23, %v117_v10  ;;  %v543_v27 = vpop.f32.mrf.mxu1 }
 0x125   :  { %551 = vst [vmem:[%s835_s3 + $0x8] sm:$0xff] %v547_v24  ;;  %v548_v28 = vmax.f32 %v542_v25, 0.0  ;;  %v544_v29 = vadd.f32 %v543_v27, %v501_v26 }
 0x127   :  { %552 = vst [vmem:[%s835_s3 + $0x10] sm:$0xff] %v548_v28  ;;  %v549_v30 = vmax.f32 %v544_v29, 0.0 }
 0x129   :  { %553 = vst [vmem:[%s835_s3 + $0x18] sm:$0xff] %v549_v30 }
 0x12a   :  { %558 = vsyncpa [#allocation3], 1 }
 0x12b   :  { %559 = vsyncpa [#allocation5], 1 }

// kernel: net_forward.9
= control target key start
LH: loop header
LB: loop body
LE: loop exit
PB: predicated region body
PF: predicated region fallthrough
CT: control target
= control target key end

     0   :  { %s203_s0 = inlined_call_operand.vmem [shape: f32[8,2048], index: 0, kind: input, shape index: {}]   ;;  %s204_s1 = inlined_call_operand.vmem [shape: f32[8,2048], index: 1, kind: output, shape index: {}]  }
   0x1   :  { %v8_v0 = vld [vmem:[%s203_s0] sm:$0xff]  ;;  %v9_v1 = vld [vmem:[%s203_s0 + $0x8] sm:$0xff]  ;;  %v10_v2 = vld [vmem:[%s203_s0 + $0x10] sm:$0xff] }
   0x2   :  { %v11_v3 = vld [vmem:[%s203_s0 + $0x18] sm:$0xff]  ;;  %v24_v4 = vmul.f32 %v8_v0, %v8_v0  ;;  %v25_v5 = vmul.f32 %v9_v1, %v9_v1  ;;  %v26_v6 = vmul.f32 %v10_v2, %v10_v2  ;;  %v12_v7 = vld [vmem:[%s203_s0 + $0x20] sm:$0xff]  ;;  %v13_v10 = vld [vmem:[%s203_s0 + $0x28] sm:$0xff] }
   0x3   :  { %v27_v8 = vmul.f32 %v11_v3, %v11_v3  ;;  %v28_v11 = vmul.f32 %v12_v7, %v12_v7  ;;  %v14_v13 = vld [vmem:[%s203_s0 + $0x30] sm:$0xff]  ;;  %v29_v14 = vmul.f32 %v13_v10, %v13_v10  ;;  %v15_v16 = vld [vmem:[%s203_s0 + $0x38] sm:$0xff]  ;;  %v16_v19 = vld [vmem:[%s203_s0 + $0x40] sm:$0xff] }
   0x4   :  { %v40_v9 = vadd.f32 %v25_v5, %v24_v4  ;;  %v30_v17 = vmul.f32 %v14_v13, %v14_v13  ;;  %v31_v20 = vmul.f32 %v15_v16, %v15_v16  ;;  %v17_v22 = vld [vmem:[%s203_s0 + $0x48] sm:$0xff]  ;;  %v32_v23 = vmul.f32 %v16_v19, %v16_v19  ;;  %v18_v25 = vld [vmem:[%s203_s0 + $0x50] sm:$0xff]  ;;  %v19_v28 = vld [vmem:[%s203_s0 + $0x58] sm:$0xff] }
   0x5   :  { %v33_v26 = vmul.f32 %v17_v22, %v17_v22  ;;  %v34_v29 = vmul.f32 %v18_v25, %v18_v25  ;;  %v20_v31 = vld [vmem:[%s203_s0 + $0x60] sm:$0xff]  ;;  %v35_v32 = vmul.f32 %v19_v28, %v19_v28  ;;  %v21_v34 = vld [vmem:[%s203_s0 + $0x68] sm:$0xff]  ;;  %v22_v37 = vld [vmem:[%s203_s0 + $0x70] sm:$0xff] }
   0x6   :  { %v41_v12 = vadd.f32 %v40_v9, %v26_v6  ;;  %v36_v35 = vmul.f32 %v20_v31, %v20_v31  ;;  %v37_v38 = vmul.f32 %v21_v34, %v21_v34  ;;  %v23_v40 = vld [vmem:[%s203_s0 + $0x78] sm:$0xff]  ;;  %v38_v41 = vmul.f32 %v22_v37, %v22_v37 }
   0x7   :  { %v39_v43 = vmul.f32 %v23_v40, %v23_v40 }
   0x8   :  { %v42_v15 = vadd.f32 %v41_v12, %v27_v8 }
   0xa   :  { %v43_v18 = vadd.f32 %v42_v15, %v28_v11 }
   0xc   :  { %v44_v21 = vadd.f32 %v43_v18, %v29_v14 }
   0xe   :  { %v45_v24 = vadd.f32 %v44_v21, %v30_v17 }
  0x10   :  { %v46_v27 = vadd.f32 %v45_v24, %v31_v20 }
  0x12   :  { %v47_v30 = vadd.f32 %v46_v27, %v32_v23 }
  0x14   :  { %v48_v33 = vadd.f32 %v47_v30, %v33_v26 }
  0x16   :  { %v49_v36 = vadd.f32 %v48_v33, %v34_v29 }
  0x18   :  { %v50_v39 = vadd.f32 %v49_v36, %v35_v32 }
  0x1a   :  { %v51_v42 = vadd.f32 %v50_v39, %v36_v35 }
  0x1c   :  { %v52_v44 = vadd.f32 %v51_v42, %v37_v38 }
  0x1e   :  { %v53_v45 = vadd.f32 %v52_v44, %v38_v41 }
  0x20   :  { %v54_v46 = vadd.f32 %v53_v45, %v39_v43 }
  0x22   :  { %55 = vadd.xlane.f32.xlu0 %v54_v46 }
  0xab   :  { %v56_v47 = vpop.xlane.xlu0 %55 }
  0xac   :  { %v57_v48 = vmax.f32 %v56_v47, 1e-24 }
  0xae   :  { %95 = vrsqrt.f32 %v57_v48 }
  0xbb   :  { %v96_v49 = vpop.eup %95 }
  0xbc   :  { %v59_v50 = vmul.f32 %v96_v49, %v8_v0  ;;  %v60_v51 = vmul.f32 %v96_v49, %v9_v1  ;;  %v61_v52 = vmul.f32 %v96_v49, %v10_v2  ;;  %v62_v53 = vmul.f32 %v96_v49, %v11_v3 }
  0xbd   :  { %v63_v54 = vmul.f32 %v96_v49, %v12_v7  ;;  %v64_v55 = vmul.f32 %v96_v49, %v13_v10  ;;  %v65_v56 = vmul.f32 %v96_v49, %v14_v13  ;;  %v66_v57 = vmul.f32 %v96_v49, %v15_v16 }
  0xbe   :  { %v67_v58 = vmul.f32 %v96_v49, %v16_v19  ;;  %v68_v59 = vmul.f32 %v96_v49, %v17_v22  ;;  %v69_v60 = vmul.f32 %v96_v49, %v18_v25  ;;  %v70_v61 = vmul.f32 %v96_v49, %v19_v28  ;;  %75 = vst [vmem:[%s204_s1] sm:$0xff] %v59_v50 }
  0xbf   :  { %76 = vst [vmem:[%s204_s1 + $0x8] sm:$0xff] %v60_v51  ;;  %77 = vst [vmem:[%s204_s1 + $0x10] sm:$0xff] %v61_v52  ;;  %v71_v62 = vmul.f32 %v96_v49, %v20_v31  ;;  %v72_v63 = vmul.f32 %v96_v49, %v21_v34  ;;  %v73_v0 = vmul.f32 %v96_v49, %v22_v37 }
  0xc0   :  { %78 = vst [vmem:[%s204_s1 + $0x18] sm:$0xff] %v62_v53  ;;  %v74_v1 = vmul.f32 %v96_v49, %v23_v40  ;;  %79 = vst [vmem:[%s204_s1 + $0x20] sm:$0xff] %v63_v54 }
  0xc1   :  { %80 = vst [vmem:[%s204_s1 + $0x28] sm:$0xff] %v64_v55  ;;  %81 = vst [vmem:[%s204_s1 + $0x30] sm:$0xff] %v65_v56 }
  0xc2   :  { %82 = vst [vmem:[%s204_s1 + $0x38] sm:$0xff] %v66_v57  ;;  %83 = vst [vmem:[%s204_s1 + $0x40] sm:$0xff] %v67_v58 }
  0xc3   :  { %84 = vst [vmem:[%s204_s1 + $0x48] sm:$0xff] %v68_v59  ;;  %85 = vst [vmem:[%s204_s1 + $0x50] sm:$0xff] %v69_v60 }
  0xc4   :  { %86 = vst [vmem:[%s204_s1 + $0x58] sm:$0xff] %v70_v61  ;;  %87 = vst [vmem:[%s204_s1 + $0x60] sm:$0xff] %v71_v62 }
  0xc5   :  { %88 = vst [vmem:[%s204_s1 + $0x68] sm:$0xff] %v72_v63  ;;  %89 = vst [vmem:[%s204_s1 + $0x70] sm:$0xff] %v73_v0 }
  0xc6   :  { %90 = vst [vmem:[%s204_s1 + $0x78] sm:$0xff] %v74_v1 }

// kernel: net_forward.8
= control target key start
LH: loop header
LB: loop body
LE: loop exit
PB: predicated region body
PF: predicated region fallthrough
CT: control target
= control target key end

     0   :  { %s6570_s0 = inlined_call_operand.vmem [shape: f32[8,256], index: 0, kind: input, shape index: {}]   ;;  %s6571_s1 = inlined_call_operand.hbm [shape: bf16[256,2048], index: 1, kind: input, shape index: {}]   ;;  %s6572_s2 = inlined_call_operand.hbm [shape: f32[1,2048], index: 2, kind: input, shape index: {}]   ;;  %s6573_s3 = inlined_call_operand.hbm [shape: bf16[2048,2048], index: 3, kind: input, shape index: {}]   ;;  %s6574_s4 = inlined_call_operand.hbm [shape: f32[1,2048], index: 4, kind: input, shape index: {}]   ;;  %s6575_s5 = inlined_call_operand.hbm [shape: bf16[2048,128], index: 5, kind: input, shape index: {}]   ;;  %s6576_s6 = inlined_call_operand.hbm [shape: f32[1,128], index: 6, kind: input, shape index: {}]   ;;  %s6577_s7 = inlined_call_operand.vmem [shape: f32[8,2048], index: 7, kind: output, shape index: {0}]   ;;  %s6578_s8 = inlined_call_operand.vmem [shape: f32[8,128], index: 8, kind: output, shape index: {1}]  }
   0x1   :  { %6590 = sst [smem:[#allocation19_spill]] %s6571_s1 }
   0x2   :  { %6591 = sst [smem:[#allocation20_spill]] %s6573_s3 }
   0x3   :  { %6592 = sst [smem:[#allocation21_spill]] %s6578_s8 }
   0x4   :  { %14 = vsyncpa [#allocation5], 0 }
   0x5   :  { %15 = vsyncpa [#allocation7], 0  ;;  %s6003_s27 = smov 0   ;;  %s6005_s28 = smov 0  }
   0x6   :  { %s6007_s29 = smov 0   ;;  %s6009_s30 = smov 0  }
   0x7 LB: > { %6593 = sst [smem:[#allocation16_spill]] %s5940_s29  ;;  %s6022_s9 = sadd.s32 4294967295, %s5944_s30   ;;  %s5944_s30 = sphi %s6009_s30, %s6619_s30   ;;  %s5940_s29 = sphi %s6007_s29, %s6621_s29   ;;  %s5936_s28 = sphi %s6005_s28, %s6623_s28   ;;  %s5932_s27 = sphi %s6003_s27, %s6622_s27  }
   0x8   : > { %s6025_s10 = sadd.s32 1, %s5944_s30   ;;  %s91_s12 = sadd.s32 1, %s5940_s29 }
   0x9   : > { %6594 = sst [smem:[#allocation17_spill]] %s6025_s10  ;;  %s88_s11 = ssub.s32 %s5944_s30, %s6025_s10 }
   0xa   : > { %p89_p0 = scmp.eq.s32.totalorder %s88_s11, 0  ;;  %p98_p1 = scmp.ne.s32.totalorder %s5940_s29, %s5936_s28 }
   0xb   : > { %p99_p2 = scmp.eq.s32.totalorder %s5944_s30, 0  ;;  %p104_p3 = scmp.ne.s32.totalorder %s5936_s28, %s5932_s27 }
   0xc   : > { %s6035_s13 = scalar_select %p89_p0, %s5940_s29, %s91_s12  }
   0xd   : > { %p6037_p4 = por %p99_p2, %p98_p1  ;;  %p6579_p5 = scmp.eq.s32.totalorder %s6022_s9, 0 }
   0xe   : > { %6595 = sst [smem:[#allocation18_spill]] %s6035_s13  ;;  %p4669_p6 = scmp.ge.s32.totalorder %s5944_s30, 1 }
   0xf   : > { %p235_p7 = scmp.lt.s32.totalorder %s5944_s30, 9  ;;  %p6046_p8 = por %p6579_p5, %p104_p3 }
  0x10   : > { %s5946_s17 = smov [#allocation4]   ;;  %p5291_p13 = scmp.lt.s32.totalorder %s5944_s30, 8 }
  0x11   : > { %s6597_s15 = scalar_select %p6046_p8, 1, 0 }
  0x12   : > { %p6051_p10 = pnand %p4669_p6, %p235_p7  ;;  %s250_s18 = sshll.u32 %s5946_s17, 4  ;;  %s251_s18 = int_to_ptr.vmem [resolvable:$true] %s250_s18 }
  0x13   : > { %s286_s20 = sand.u32 1, %s5944_s30   ;;  %s6066_s21 = sand.u32 1, %s5940_s29  }
  0x14   : > { %s6598_s16 = scalar_select %p6051_p10, 1, 0 }
  0x15   : > { %p5268_p11 = pneg %p6051_p10  ;;  %p6070_p0 = pnand %p5291_p13, %p6037_p4 }
  0x16   : > { %s5747_s23 = scalar_lea.vmem %s251_s18, 32768  ;;  %p5755_p7 = scmp.lt.s32.totalorder %s251_s18, %s251_s18 }
  0x17   : > { %p6059_p12 = pnand %p5268_p11, %p6579_p5  ;;  %p5748_p2 = scmp.ne.s32.totalorder %s251_s18, %s5747_s23 }
  0x18   : > { %p5756_p11 = scmp.lt.s32.totalorder %s5747_s23, %s5747_s23 }
  0x19   : > { %s6599_s19 = scalar_select %p6059_p12, 1, 0 }
  0x1a   : > { %p6583_p1 = pneg %p6059_p12  ;;  %p5757_p9 = por %p5756_p11, %p5755_p7 }
  0x1c   : > { %p5750_p3 = pnand %p5748_p2, %p6583_p1 }
  0x1e   : > { %p5751_p6 = pneg %p5750_p3 }
  0x20   : > { %p5758_p5 = pnand %p5757_p9, %p5751_p6 }
  0x22   : > { %5761 = shalt.err (!%p5758_p5)
}
  0x23   : > { %s5947_s24 = smov 1024   ;;  %s6588_s25 = smov 64  }
  0x24   : > { %s6601_s1 = sld [smem:[#allocation19_spill]]  ;;  %s4674_s11 = sshll.u32 %s6066_s21, 11 }
  0x25   : > { %s5225_s12 = sshll.u32 %s5944_s30, 7  ;;  %s6602_s3 = sld [smem:[#allocation20_spill]] }
  0x26   : > { %s290_s13 = scalar_lea.vmem [#allocation8], %s4674_s11  ;;  %s6096_s10 = scalar_lea.sflag [#allocation5], %s286_s20 }
  0x27   : > { %s297_s29 = sshll.u32 %s290_s13, 4  ;;  %p6102_p5 = pneg %p6070_p0  ;;  %s6094_s29 = int_to_ptr.vmem [resolvable:$true] %s297_s29 }
  0x2a   : > { %5271 = dma.hbm_to_vmem [thread:$0]  (!%p6059_p12), %s6601_s1, 32768, %s251_s18, [#allocation5], %s5947_s24, %s5947_s24, %s6588_s25  }
  0x2b   : > { %s6092_s23 = scalar_lea.hbm %s6602_s3, %s5225_s12  ;;  %s5767_s11 = scalar_lea.hbm %s6602_s3, 262144 }
  0x2c   : > { %s5762_s8 = scalar_lea.hbm %s6092_s23, 32768  ;;  %p5768_p2 = scmp.lt.s32.totalorder %s6092_s23, %s6602_s3 }
  0x2d   : > { %p5763_p4 = scmp.ne.s32.totalorder %s6092_s23, %s5762_s8  ;;  %p5769_p3 = scmp.lt.s32.totalorder %s5767_s11, %s5762_s8 }
  0x2f   : > { %p5765_p9 = pnand %p6102_p5, %p5763_p4  ;;  %p5770_p6 = por %p5769_p3, %p5768_p2 }
  0x31   : > { %p5766_p13 = pneg %p5765_p9 }
  0x33   : > { %p5771_p7 = pnand %p5770_p6, %p5766_p13 }
  0x35   : > { %5774 = shalt.err (!%p5771_p7)
}
  0x36   : > { %s5775_s20 = scalar_lea.vmem %s6094_s29, 32768  ;;  %s5949_s14 = smov [#allocation8]  }
  0x37   : > { %p5776_p11 = scmp.ne.s32.totalorder %s6094_s29, %s5775_s20  ;;  %s5780_s17 = sshll.u32 %s5949_s14, 4  ;;  %s5781_s17 = int_to_ptr.vmem [resolvable:$false] %s5780_s17 }
  0x38   : > { %s5782_s26 = scalar_lea.vmem %s5781_s17, 65536  ;;  %p5783_p1 = scmp.lt.s32.totalorder %s6094_s29, %s5781_s17 }
  0x39   : > { %p5778_p4 = pnand %p5776_p11, %p6102_p5  ;;  %p5784_p8 = scmp.lt.s32.totalorder %s5782_s26, %s5775_s20 }
  0x3b   : > { %p5779_p9 = pneg %p5778_p4  ;;  %p5785_p10 = por %p5784_p8, %p5783_p1 }
  0x3d   : > { %p5786_p12 = pnand %p5785_p10, %p5779_p9 }
  0x3f   : > { %5789 = shalt.err (!%p5786_p12)
}
  0x40   : > { %s5950_s8 = smov 128   ;;  %s5951_s27 = smov 8  }
  0x41   : > { %5281 = dma.hbm_to_vmem [thread:$0]  (!%p6070_p0), %s6092_s23, 32768, %s6094_s29, %s6096_s10, %s5947_s24, %s5950_s8, %s5951_s27  }
  0x42   : > { %s4677_s11 = sshll.u32 %s6066_s21, 1  ;;  %s5952_s13 = smov [#allocation6]  }
  0x43   : > { %s264_s12 = sshll.u32 %s5952_s13, 4  ;;  %s5226_s20 = sshll.u32 %s5944_s30, 5  ;;  %s265_s12 = int_to_ptr.vmem [resolvable:$true] %s264_s12 }
  0x44   : > { %s5801_s14 = scalar_lea.vmem %s265_s12, 256  ;;  %p6604_p10 = scmp.ne.s32.totalorder %s6599_s19, 0 }
  0x45   : > { %p5802_p8 = scmp.ne.s32.totalorder %s265_s12, %s5801_s14  ;;  %p5809_p2 = scmp.lt.s32.totalorder %s265_s12, %s265_s12 }
  0x46   : > { %p6605_p12 = pneg %p6604_p10  ;;  %p5810_p3 = scmp.lt.s32.totalorder %s5801_s14, %s5801_s14 }
  0x48   : > { %p5804_p1 = pnand %p5802_p8, %p6605_p12  ;;  %p5811_p6 = por %p5810_p3, %p5809_p2 }
  0x4a   : > { %p5805_p13 = pneg %p5804_p1 }
  0x4c   : > { %p5812_p7 = pnand %p5811_p6, %p5805_p13 }
  0x4e   : > { %5815 = shalt.err (!%p5812_p7)
}
  0x4f   : > { %5274 = dma.hbm_to_vmem [thread:$0]  (!%p6604_p10), %s6572_s2, 256, %s265_s12, [#allocation7]  }
  0x50   : > { %s317_s26 = scalar_lea.hbm %s6574_s4, %s5226_s20  ;;  %s311_s8 = scalar_lea.vmem [#allocation9], %s4677_s11 }
  0x51   : > { %s319_s27 = sshll.u32 %s311_s8, 4  ;;  %s5816_s13 = scalar_lea.hbm %s317_s26, 32  ;;  %s320_s27 = int_to_ptr.vmem [resolvable:$true] %s319_s27 }
  0x52   : > { %p5817_p11 = scmp.ne.s32.totalorder %s317_s26, %s5816_s13  ;;  %s5821_s1 = scalar_lea.hbm %s6574_s4, 256 }
  0x53   : > { %p5822_p8 = scmp.lt.s32.totalorder %s317_s26, %s6574_s4  ;;  %p5823_p12 = scmp.lt.s32.totalorder %s5821_s1, %s5816_s13 }
  0x54   : > { %p5819_p4 = pnand %p5817_p11, %p6102_p5 }
  0x55   : > { %p5824_p1 = por %p5823_p12, %p5822_p8 }
  0x56   : > { %p5820_p9 = pneg %p5819_p4 }
  0x58   : > { %p5825_p13 = pnand %p5824_p1, %p5820_p9 }
  0x5a   : > { %5828 = shalt.err (!%p5825_p13)
}
  0x5b   : > { %s5829_s11 = scalar_lea.vmem %s320_s27, 32  ;;  %s5953_s12 = smov [#allocation9]  }
  0x5c   : > { %p5830_p2 = scmp.ne.s32.totalorder %s320_s27, %s5829_s11  ;;  %s5834_s20 = sshll.u32 %s5953_s12, 4  ;;  %s5835_s20 = int_to_ptr.vmem [resolvable:$false] %s5834_s20 }
  0x5d   : > { %s5836_s29 = scalar_lea.vmem %s5835_s20, 64  ;;  %p5837_p7 = scmp.lt.s32.totalorder %s320_s27, %s5835_s20 }
  0x5e   : > { %p5832_p3 = pnand %p5830_p2, %p6102_p5  ;;  %p5838_p11 = scmp.lt.s32.totalorder %s5836_s29, %s5829_s11 }
  0x60   : > { %p5833_p6 = pneg %p5832_p3  ;;  %p5839_p4 = por %p5838_p11, %p5837_p7 }
  0x62   : > { %p5840_p10 = pnand %p5839_p4, %p5833_p6 }
  0x64   : > { %5843 = shalt.err (!%p5840_p10)
}
  0x65   : > { %5284 = dma.hbm_to_vmem [thread:$0]  (!%p6070_p0), %s317_s26, 32, %s320_s27, %s6096_s10  }
  0x66   : > { %s5954_s1 = smov [#allocation11]   ;;  %s4680_s25 = sshll.u32 %s6066_s21, 7 }
  0x67   : > { %s275_s3 = sshll.u32 %s5954_s1, 4  ;;  %p6606_p8 = scmp.ne.s32.totalorder %s6599_s19, 0  ;;  %s276_s3 = int_to_ptr.vmem [resolvable:$true] %s275_s3 }
  0x68   : > { %s5855_s24 = scalar_lea.vmem %s276_s3, 16  ;;  %s5862_s23 = scalar_lea.vmem %s276_s3, 32 }
  0x69   : > { %p5856_p9 = scmp.ne.s32.totalorder %s276_s3, %s5855_s24  ;;  %p6607_p12 = pneg %p6606_p8 }
  0x6a   : > { %p5863_p2 = scmp.lt.s32.totalorder %s276_s3, %s276_s3  ;;  %p5864_p3 = scmp.lt.s32.totalorder %s5862_s23, %s5855_s24 }
  0x6b   : > { %p5858_p1 = pnand %p5856_p9, %p6607_p12 }
  0x6c   : > { %p5865_p10 = por %p5864_p3, %p5863_p2 }
  0x6d   : > { %p5859_p13 = pneg %p5858_p1 }
  0x6f   : > { %p5866_p6 = pnand %p5865_p10, %p5859_p13 }
  0x71   : > { %5869 = shalt.err (!%p5866_p6)
}
  0x72   : > { %5277 = dma.hbm_to_vmem [thread:$0]  (!%p6606_p8), %s6576_s6, 16, %s276_s3, [#allocation7]  }
  0x73   : > { %s5227_s21 = sshll.u32 %s5944_s30, 11  ;;  %s330_s27 = scalar_lea.vmem [#allocation10], %s4680_s25 }
  0x74   : > { %s337_s13 = sshll.u32 %s330_s27, 4  ;;  %s6165_s11 = scalar_lea.hbm %s6575_s5, %s5227_s21  ;;  %s6167_s13 = int_to_ptr.vmem [resolvable:$true] %s337_s13 }
  0x75   : > { %s5870_s19 = scalar_lea.hbm %s6165_s11, 2048  ;;  %s5875_s30 = scalar_lea.hbm %s6575_s5, 16384 }
  0x76   : > { %p5871_p7 = scmp.ne.s32.totalorder %s6165_s11, %s5870_s19  ;;  %p5876_p9 = scmp.lt.s32.totalorder %s6165_s11, %s6575_s5 }
  0x77   : > { %p5877_p8 = scmp.lt.s32.totalorder %s5875_s30, %s5870_s19 }
  0x78   : > { %p5873_p11 = pnand %p5871_p7, %p6102_p5 }
  0x79   : > { %p5878_p12 = por %p5877_p8, %p5876_p9 }
  0x7a   : > { %p5874_p4 = pneg %p5873_p11 }
  0x7c   : > { %p5879_p1 = pnand %p5878_p12, %p5874_p4 }
  0x7e   : > { %5882 = shalt.err (!%p5879_p1)
}
  0x7f   : > { %s5883_s3 = scalar_lea.vmem %s6167_s13, 2048  ;;  %s5955_s25 = smov [#allocation10]  }
  0x80   : > { %p5884_p13 = scmp.ne.s32.totalorder %s6167_s13, %s5883_s3  ;;  %s5888_s24 = sshll.u32 %s5955_s25, 4  ;;  %s5889_s24 = int_to_ptr.vmem [resolvable:$false] %s5888_s24 }
  0x81   : > { %s5890_s23 = scalar_lea.vmem %s5889_s24, 4096  ;;  %p5891_p10 = scmp.lt.s32.totalorder %s6167_s13, %s5889_s24 }
  0x82   : > { %p5886_p2 = pnand %p5884_p13, %p6102_p5  ;;  %p5892_p6 = scmp.lt.s32.totalorder %s5890_s23, %s5883_s3 }
  0x84   : > { %p5887_p3 = pneg %p5886_p2  ;;  %p5893_p7 = por %p5892_p6, %p5891_p10 }
  0x86   : > { %p5894_p11 = pnand %p5893_p7, %p5887_p3 }
  0x88   : > { %5897 = shalt.err (!%p5894_p11)
}
  0x89   : > { %s5956_s8 = smov 4   ;;  %s6608_s26 = smov 64  }
  0x8a   : > { %5287 = dma.hbm_to_vmem [thread:$0]  (!%p6070_p0), %s6165_s11, 2048, %s6167_s13, %s6096_s10, %s6608_s26, %s6608_s26, %s5956_s8  }
  0x8b   : > { %p6609_p5 = scmp.ne.s32.totalorder %s6598_s16, 0 }
  0x8c   : > { %p6610_p4 = scmp.eq.s32.totalorder (!%p6609_p5), %s6022_s9, 0 }
  0x8d   : > { %349 = sbr.rel (%p6609_p5) target bundleno = 1298 (0x512), region = 48 }
  0x92   : > { %5915 = dma.done.wait (%p6610_p4), [#allocation5], 32768   ;;  %p6611_p9 = pmov %p6610_p4 }
  0x93   : > { %p6612_p8 = pmov %p6610_p4 }
  0x94   : > { %5917 = vsyncadd (%p6611_p9), [#allocation5], 4294934528 }
  0x95   : > { %5919 = dma.done.wait (%p6612_p8), [#allocation7], 256   ;;  %p6613_p12 = pmov %p6610_p4 }
  0x96   : > { %s359_s22 = sand.u32 1, %s6022_s9   ;;  %s361_s10 = sand.u32 1, %s5936_s28  }
  0x97   : > { %5921 = vsyncadd (%p6613_p12), [#allocation7], 4294967040  ;;  %s4686_s18 = sshll.u32 %s361_s10, 11  ;;  %s360_s16 = scalar_lea.sflag [#allocation5], %s359_s22 }
  0x98   : > { %s6204_s21 = scalar_lea.vmem [#allocation8], %s4686_s18  ;;  %p6614_p0 = scmp.ne.s32.totalorder %s6597_s15, 0 }
  0x9a   : > { %5923 = dma.done.wait (%p6614_p0), %s360_s16, 34848  }
  0x9b   : > { %5925 = vsyncadd (%p6614_p0), %s360_s16, 4294932448  ;;  %s4687_s27 = sshll.u32 %s361_s10, 1  ;;  %s4688_s13 = sshll.u32 %s361_s10, 7 }
  0x9c   : > { %s6210_s14 = scalar_lea.vmem [#allocation9], %s4687_s27  ;;  %s6212_s17 = scalar_lea.vmem [#allocation10], %s4688_s13 }
  0x9d   : > { %p6615_p1 = pmov %p6610_p4 }
  0x9f   : > { %5927 = dma.done.wait (%p6615_p1), [#allocation7], 16   ;;  %p6616_p13 = pmov %p6615_p1 }
  0xa0   : > { %s4690_s11 = sshll.u32 %s6022_s9, 1  ;;  %p6617_p3 = scmp.ne.s32.totalorder %s6022_s9, 0 }
  0xa1   : > { %5929 = vsyncadd (%p6616_p13), [#allocation7], 4294967280  ;;  %p432_p2 = scmp.lt.s32.totalorder %s4690_s11, 15 }
  0xa2   : > { %441 = sbr.rel (%p6617_p3) target bundleno = 627 (0x273), region = 76 }
  0xa3   : > { %s6625_s11 = smov (!%p432_p2, %s4690_s11), 15 }
  0xa4   : > { %s4691_s19 = sshll.u32 %s6625_s11, 3 }
  0xa5   : > { %s6222_s20 = scalar_lea.vmem %s6577_s7, %s4691_s19 }
  0xa7   : > { %v558_v0 = vld [vmem:[#allocation4 + $0x380] sm:$0xff]  ;;  %v559_v2 = vld [vmem:[#allocation4 + $0x388] sm:$0xff] }
  0xa8   : > { %v566_v1 = vld [vmem:[#allocation4 + $0x3c0] sm:$0xff]  ;;  %v567_v4 = vld [vmem:[#allocation4 + $0x3c8] sm:$0xff] }
  0xa9   : > { %v4806_v3 = vcombine.high %v558_v0, %v566_v1  ;;  %v4805_v5 = vcombine.low %v558_v0, %v566_v1  ;;  %v542_v6 = vld [vmem:[#allocation4 + $0x300] sm:$0xff]  ;;  %v4808_v8 = vcombine.high %v559_v2, %v567_v4  ;;  %v4807_v9 = vcombine.low %v559_v2, %v567_v4  ;;  %v543_v11 = vld [vmem:[#allocation4 + $0x308] sm:$0xff] }
  0xaa   : > { %v550_v7 = vld [vmem:[#allocation4 + $0x340] sm:$0xff]  ;;  %v551_v12 = vld [vmem:[#allocation4 + $0x348] sm:$0xff] }
  0xab   : > { %v4790_v10 = vcombine.high %v542_v6, %v550_v7  ;;  %v526_v13 = vld [vmem:[#allocation4 + $0x280] sm:$0xff]  ;;  %2066 = vmatprep.subr.bf16.mxu0 %v4806_v3  ;;  %v4792_v14 = vcombine.high %v543_v11, %v551_v12  ;;  %v527_v16 = vld [vmem:[#allocation4 + $0x288] sm:$0xff]  ;;  %2107 = vmatprep.subr.bf16.mxu1 %v4808_v8  ;;  %v4789_v18 = vcombine.low %v542_v6, %v550_v7 }
  0xac   : > { %v534_v15 = vld [vmem:[#allocation4 + $0x2c0] sm:$0xff]  ;;  %v535_v17 = vld [vmem:[#allocation4 + $0x2c8] sm:$0xff]  ;;  %2067 = vmatpush1.bf16.msra.mxu0 %v4805_v5  ;;  %2108 = vmatpush1.bf16.msra.mxu1 %v4807_v9  ;;  %v4791_v19 = vcombine.low %v543_v11, %v551_v12 }
  0xad   : > { %2068 = vmatprep.subr.bf16.mxu0 %v4790_v10  ;;  %v4774_v20 = vcombine.high %v526_v13, %v534_v15  ;;  %2109 = vmatprep.subr.bf16.mxu1 %v4792_v14  ;;  %v4776_v21 = vcombine.high %v527_v16, %v535_v17  ;;  %v510_v22 = vld [vmem:[#allocation4 + $0x200] sm:$0xff]  ;;  %v511_v24 = vld [vmem:[#allocation4 + $0x208] sm:$0xff]  ;;  %v4773_v26 = vcombine.low %v526_v13, %v534_v15 }
  0xae   : > { %v518_v23 = vld [vmem:[#allocation4 + $0x240] sm:$0xff]  ;;  %v519_v25 = vld [vmem:[#allocation4 + $0x248] sm:$0xff]  ;;  %v4775_v27 = vcombine.low %v527_v16, %v535_v17 }
  0xaf   : > { %v4758_v28 = vcombine.high %v510_v22, %v518_v23  ;;  %v4760_v29 = vcombine.high %v511_v24, %v519_v25  ;;  %v494_v30 = vld [vmem:[#allocation4 + $0x180] sm:$0xff]  ;;  %v495_v32 = vld [vmem:[#allocation4 + $0x188] sm:$0xff]  ;;  %v4757_v34 = vcombine.low %v510_v22, %v518_v23  ;;  %v4759_v35 = vcombine.low %v511_v24, %v519_v25 }
  0xb0   : > { %2069 = vmatpush1.bf16.msra.mxu0 %v4789_v18  ;;  %2110 = vmatpush1.bf16.msra.mxu1 %v4791_v19  ;;  %v502_v31 = vld [vmem:[#allocation4 + $0x1c0] sm:$0xff]  ;;  %v503_v33 = vld [vmem:[#allocation4 + $0x1c8] sm:$0xff] }
  0xb1   : > { %2070 = vmatprep.subr.bf16.mxu0 %v4774_v20  ;;  %2111 = vmatprep.subr.bf16.mxu1 %v4776_v21  ;;  %v4742_v36 = vcombine.high %v494_v30, %v502_v31  ;;  %v4744_v37 = vcombine.high %v495_v32, %v503_v33  ;;  %v478_v38 = vld [vmem:[#allocation4 + $0x100] sm:$0xff]  ;;  %v479_v40 = vld [vmem:[#allocation4 + $0x108] sm:$0xff]  ;;  %v4741_v42 = vcombine.low %v494_v30, %v502_v31 }
  0xb2   : > { %v486_v39 = vld [vmem:[#allocation4 + $0x140] sm:$0xff]  ;;  %v487_v41 = vld [vmem:[#allocation4 + $0x148] sm:$0xff]  ;;  %v4743_v43 = vcombine.low %v495_v32, %v503_v33 }
  0xb3   : > { %v4726_v44 = vcombine.high %v478_v38, %v486_v39  ;;  %v4728_v45 = vcombine.high %v479_v40, %v487_v41  ;;  %v462_v46 = vld [vmem:[#allocation4 + $0x80] sm:$0xff]  ;;  %v463_v48 = vld [vmem:[#allocation4 + $0x88] sm:$0xff]  ;;  %v4725_v50 = vcombine.low %v478_v38, %v486_v39  ;;  %v4727_v51 = vcombine.low %v479_v40, %v487_v41 }
  0xb4   : > { %2071 = vmatpush1.bf16.msra.mxu0 %v4773_v26  ;;  %2112 = vmatpush1.bf16.msra.mxu1 %v4775_v27  ;;  %v470_v47 = vld [vmem:[#allocation4 + $0xc0] sm:$0xff]  ;;  %v471_v49 = vld [vmem:[#allocation4 + $0xc8] sm:$0xff] }
  0xb5   : > { %2072 = vmatprep.subr.bf16.mxu0 %v4758_v28  ;;  %2113 = vmatprep.subr.bf16.mxu1 %v4760_v29  ;;  %v4710_v52 = vcombine.high %v462_v46, %v470_v47  ;;  %v443_v53 = vld [vmem:[%s6570_s0 + $0x8] sm:$0xff]  ;;  %v4712_v54 = vcombine.high %v463_v48, %v471_v49  ;;  %v447_v58 = vld [vmem:[#allocation4 + $0x8] sm:$0xff]  ;;  %v4709_v60 = vcombine.low %v462_v46, %v470_v47 }
  0xb6   : > { %v446_v55 = vld [vmem:[#allocation4] sm:$0xff]  ;;  %v6229_v57 = vpack.c.bf16 %v443_v53, %v443_v53  ;;  %v455_v59 = vld [vmem:[#allocation4 + $0x48] sm:$0xff]  ;;  %v4711_v61 = vcombine.low %v463_v48, %v471_v49 }
  0xb7   : > { %v454_v56 = vld [vmem:[#allocation4 + $0x40] sm:$0xff]  ;;  %v4696_v63 = vcombine.high %v447_v58, %v455_v59  ;;  %v687_v2 = vld [vmem:[#allocation4 + $0x788] sm:$0xff]  ;;  %v4695_v5 = vcombine.low %v447_v58, %v455_v59 }
  0xb8   : > { %2073 = vmatpush1.bf16.msra.mxu0 %v4757_v34  ;;  %2114 = vmatpush1.bf16.msra.mxu1 %v4759_v35  ;;  %v4694_v62 = vcombine.high %v446_v55, %v454_v56  ;;  %v686_v0 = vld [vmem:[#allocation4 + $0x780] sm:$0xff]  ;;  %v695_v3 = vld [vmem:[#allocation4 + $0x7c8] sm:$0xff]  ;;  %v4693_v4 = vcombine.low %v446_v55, %v454_v56 }
  0xb9   : > { %2074 = vmatprep.subr.bf16.mxu0 %v4742_v36  ;;  %2115 = vmatprep.subr.bf16.mxu1 %v4744_v37  ;;  %v694_v1 = vld [vmem:[#allocation4 + $0x7c0] sm:$0xff]  ;;  %v4936_v7 = vcombine.high %v687_v2, %v695_v3  ;;  %v671_v10 = vld [vmem:[#allocation4 + $0x708] sm:$0xff]  ;;  %v4935_v13 = vcombine.low %v687_v2, %v695_v3  ;;  %v568_v2 = vld [vmem:[#allocation4 + $0x3d0] sm:$0xff] }
  0xba   : > { %2098 = vmatprep.mubr.bf16.mxu0 %v6229_v57  ;;  %2139 = vmatprep.mubr.bf16.mxu1 %v6229_v57  ;;  %v4934_v6 = vcombine.high %v686_v0, %v694_v1  ;;  %v670_v8 = vld [vmem:[#allocation4 + $0x700] sm:$0xff]  ;;  %v679_v11 = vld [vmem:[#allocation4 + $0x748] sm:$0xff]  ;;  %v4933_v12 = vcombine.low %v686_v0, %v694_v1  ;;  %v560_v1 = vld [vmem:[#allocation4 + $0x390] sm:$0xff] }
  0xbb   : > { %v678_v9 = vld [vmem:[#allocation4 + $0x740] sm:$0xff]  ;;  %v4920_v15 = vcombine.high %v671_v10, %v679_v11  ;;  %v655_v18 = vld [vmem:[#allocation4 + $0x688] sm:$0xff]  ;;  %v4919_v21 = vcombine.low %v671_v10, %v679_v11  ;;  %v561_v3 = vld [vmem:[#allocation4 + $0x398] sm:$0xff] }
  0xbc   : > { %2075 = vmatpush1.bf16.msra.mxu0 %v4741_v42  ;;  %2116 = vmatpush1.bf16.msra.mxu1 %v4743_v43  ;;  %v4918_v14 = vcombine.high %v670_v8, %v678_v9  ;;  %v654_v16 = vld [vmem:[#allocation4 + $0x680] sm:$0xff]  ;;  %v663_v19 = vld [vmem:[#allocation4 + $0x6c8] sm:$0xff]  ;;  %v4917_v20 = vcombine.low %v670_v8, %v678_v9  ;;  %v4810_v8 = vcombine.high %v560_v1, %v568_v2  ;;  %v544_v10 = vld [vmem:[#allocation4 + $0x310] sm:$0xff] }
  0xbd   : > { %2076 = vmatprep.subr.bf16.mxu0 %v4726_v44  ;;  %2117 = vmatprep.subr.bf16.mxu1 %v4728_v45  ;;  %v662_v17 = vld [vmem:[#allocation4 + $0x6c0] sm:$0xff]  ;;  %v4904_v23 = vcombine.high %v655_v18, %v663_v19  ;;  %v639_v26 = vld [vmem:[#allocation4 + $0x608] sm:$0xff]  ;;  %v4903_v29 = vcombine.low %v655_v18, %v663_v19  ;;  %v552_v11 = vld [vmem:[#allocation4 + $0x350] sm:$0xff] }
  0xbe   : > { %v4902_v22 = vcombine.high %v654_v16, %v662_v17  ;;  %v638_v24 = vld [vmem:[#allocation4 + $0x600] sm:$0xff]  ;;  %v647_v27 = vld [vmem:[#allocation4 + $0x648] sm:$0xff]  ;;  %v4901_v28 = vcombine.low %v654_v16, %v662_v17  ;;  %v4794_v17 = vcombine.high %v544_v10, %v552_v11  ;;  %v528_v19 = vld [vmem:[#allocation4 + $0x290] sm:$0xff] }
  0xbf   : > { %v646_v25 = vld [vmem:[#allocation4 + $0x640] sm:$0xff]  ;;  %v4888_v31 = vcombine.high %v639_v26, %v647_v27  ;;  %v623_v34 = vld [vmem:[#allocation4 + $0x588] sm:$0xff]  ;;  %v4887_v37 = vcombine.low %v639_v26, %v647_v27  ;;  %v512_v27 = vld [vmem:[#allocation4 + $0x210] sm:$0xff] }
  0xc0   : > { %2077 = vmatpush1.bf16.msra.mxu0 %v4725_v50  ;;  %2118 = vmatpush1.bf16.msra.mxu1 %v4727_v51  ;;  %v4886_v30 = vcombine.high %v638_v24, %v646_v25  ;;  %v622_v32 = vld [vmem:[#allocation4 + $0x580] sm:$0xff]  ;;  %v631_v35 = vld [vmem:[#allocation4 + $0x5c8] sm:$0xff]  ;;  %v4885_v36 = vcombine.low %v638_v24, %v646_v25 }
  0xc1   : > { %2078 = vmatprep.subr.bf16.mxu0 %v4710_v52  ;;  %2119 = vmatprep.subr.bf16.mxu1 %v4712_v54  ;;  %v630_v33 = vld [vmem:[#allocation4 + $0x5c0] sm:$0xff]  ;;  %v4872_v39 = vcombine.high %v623_v34, %v631_v35  ;;  %v607_v42 = vld [vmem:[#allocation4 + $0x508] sm:$0xff]  ;;  %v4871_v45 = vcombine.low %v623_v34, %v631_v35  ;;  %v496_v35 = vld [vmem:[#allocation4 + $0x190] sm:$0xff] }
  0xc2   : > { %v4870_v38 = vcombine.high %v622_v32, %v630_v33  ;;  %v606_v40 = vld [vmem:[#allocation4 + $0x500] sm:$0xff]  ;;  %v615_v43 = vld [vmem:[#allocation4 + $0x548] sm:$0xff]  ;;  %v4869_v44 = vcombine.low %v622_v32, %v630_v33 }
  0xc3   : > { %v614_v41 = vld [vmem:[#allocation4 + $0x540] sm:$0xff]  ;;  %v4856_v47 = vcombine.high %v607_v42, %v615_v43  ;;  %v591_v50 = vld [vmem:[#allocation4 + $0x488] sm:$0xff]  ;;  %v4855_v53 = vcombine.low %v607_v42, %v615_v43  ;;  %v480_v43 = vld [vmem:[#allocation4 + $0x110] sm:$0xff] }
  0xc4   : > { %2079 = vmatpush1.bf16.msra.mxu0 %v4709_v60  ;;  %2120 = vmatpush1.bf16.msra.mxu1 %v4711_v61  ;;  %v4854_v46 = vcombine.high %v606_v40, %v614_v41  ;;  %v590_v48 = vld [vmem:[#allocation4 + $0x480] sm:$0xff]  ;;  %v599_v51 = vld [vmem:[#allocation4 + $0x4c8] sm:$0xff]  ;;  %v4853_v52 = vcombine.low %v606_v40, %v614_v41 }
  0xc5   : > { %2080 = vmatprep.subr.bf16.mxu0 %v4694_v62  ;;  %2121 = vmatprep.subr.bf16.mxu1 %v4696_v63  ;;  %v598_v49 = vld [vmem:[#allocation4 + $0x4c0] sm:$0xff]  ;;  %v4840_v55 = vcombine.high %v591_v50, %v599_v51  ;;  %v575_v59 = vld [vmem:[#allocation4 + $0x408] sm:$0xff]  ;;  %v4839_v62 = vcombine.low %v591_v50, %v599_v51  ;;  %v464_v51 = vld [vmem:[#allocation4 + $0x90] sm:$0xff] }
  0xc6   : > { %v4838_v54 = vcombine.high %v590_v48, %v598_v49  ;;  %v574_v56 = vld [vmem:[#allocation4 + $0x400] sm:$0xff]  ;;  %v583_v60 = vld [vmem:[#allocation4 + $0x448] sm:$0xff]  ;;  %v4837_v61 = vcombine.low %v590_v48, %v598_v49 }
  0xc7   : > { %v582_v58 = vld [vmem:[#allocation4 + $0x440] sm:$0xff]  ;;  %v4824_v0 = vcombine.high %v575_v59, %v583_v60 }
  0xc8   : > { %2081 = vmatpush1.bf16.msra.mxu0 %v4693_v4  ;;  %2122 = vmatpush1.bf16.msra.mxu1 %v4695_v5  ;;  %v4822_v63 = vcombine.high %v574_v56, %v582_v58  ;;  %v569_v4 = vld [vmem:[#allocation4 + $0x3d8] sm:$0xff]  ;;  %v4821_v5 = vcombine.low %v574_v56, %v582_v58 }
  0xc9   : > { %2082 = vmatprep.subr.bf16.mxu0 %v4934_v6  ;;  %2123 = vmatprep.subr.bf16.mxu1 %v4936_v7  ;;  %v442_v6 = vld [vmem:[%s6570_s0] sm:$0xff]  ;;  %v4823_v7 = vcombine.low %v575_v59, %v583_v60  ;;  %v4812_v9 = vcombine.high %v561_v3, %v569_v4  ;;  %v4811_v16 = vcombine.low %v561_v3, %v569_v4  ;;  %v448_v60 = vld [vmem:[#allocation4 + $0x10] sm:$0xff] }
  0xca   : > { %v688_v4 = vld [vmem:[#allocation4 + $0x790] sm:$0xff] }
  0xcc   : > { %2083 = vmatpush2.bf16.msra.mxu0 %v4933_v12  ;;  %2124 = vmatpush2.bf16.msra.mxu1 %v4935_v13  ;;  %v6236_v12 = vpack.c.bf16 %v442_v6, %v442_v6  ;;  %v545_v13 = vld [vmem:[#allocation4 + $0x318] sm:$0xff] }
  0xcd   : > { %2084 = vmatprep.subr.bf16.mxu0 %v4918_v14  ;;  %2125 = vmatprep.subr.bf16.mxu1 %v4920_v15  ;;  %v553_v14 = vld [vmem:[#allocation4 + $0x358] sm:$0xff]  ;;  %v4809_v15 = vcombine.low %v560_v1, %v568_v2 }
  0xce   : > { %v4796_v18 = vcombine.high %v545_v13, %v553_v14  ;;  %v4795_v24 = vcombine.low %v545_v13, %v553_v14  ;;  %v689_v6 = vld [vmem:[#allocation4 + $0x798] sm:$0xff]  ;;  %v672_v13 = vld [vmem:[#allocation4 + $0x710] sm:$0xff] }
  0xcf   : > { %v680_v14 = vld [vmem:[#allocation4 + $0x750] sm:$0xff] }
  0xd0   : > { %2085 = vmatpush2.bf16.msra.mxu0 %v4917_v20  ;;  %2126 = vmatpush2.bf16.msra.mxu1 %v4919_v21  ;;  %v536_v20 = vld [vmem:[#allocation4 + $0x2d0] sm:$0xff]  ;;  %v529_v21 = vld [vmem:[#allocation4 + $0x298] sm:$0xff] }
  0xd1   : > { %2086 = vmatprep.subr.bf16.mxu0 %v4902_v22  ;;  %2127 = vmatprep.subr.bf16.mxu1 %v4904_v23  ;;  %v537_v22 = vld [vmem:[#allocation4 + $0x2d8] sm:$0xff]  ;;  %v4793_v23 = vcombine.low %v544_v10, %v552_v11  ;;  %v4778_v25 = vcombine.high %v528_v19, %v536_v20 }
  0xd2   : > { %v4780_v26 = vcombine.high %v529_v21, %v537_v22  ;;  %v4779_v32 = vcombine.low %v529_v21, %v537_v22  ;;  %v656_v21 = vld [vmem:[#allocation4 + $0x690] sm:$0xff] }
  0xd3   : > { %v664_v22 = vld [vmem:[#allocation4 + $0x6d0] sm:$0xff] }
  0xd4   : > { %2087 = vmatpush2.bf16.msra.mxu0 %v4901_v28  ;;  %2128 = vmatpush2.bf16.msra.mxu1 %v4903_v29  ;;  %v520_v28 = vld [vmem:[#allocation4 + $0x250] sm:$0xff]  ;;  %v513_v29 = vld [vmem:[#allocation4 + $0x218] sm:$0xff] }
  0xd5   : > { %2088 = vmatprep.subr.bf16.mxu0 %v4886_v30  ;;  %2129 = vmatprep.subr.bf16.mxu1 %v4888_v31  ;;  %v521_v30 = vld [vmem:[#allocation4 + $0x258] sm:$0xff]  ;;  %v4777_v31 = vcombine.low %v528_v19, %v536_v20  ;;  %v4762_v33 = vcombine.high %v512_v27, %v520_v28  ;;  %v4922_v19 = vcombine.high %v672_v13, %v680_v14 }
  0xd6   : > { %v4764_v34 = vcombine.high %v513_v29, %v521_v30  ;;  %v4763_v40 = vcombine.low %v513_v29, %v521_v30  ;;  %v640_v29 = vld [vmem:[#allocation4 + $0x610] sm:$0xff] }
  0xd7   : > { %v648_v30 = vld [vmem:[#allocation4 + $0x650] sm:$0xff] }
  0xd8   : > { %2089 = vmatpush2.bf16.msra.mxu0 %v4885_v36  ;;  %2130 = vmatpush2.bf16.msra.mxu1 %v4887_v37  ;;  %v504_v36 = vld [vmem:[#allocation4 + $0x1d0] sm:$0xff]  ;;  %v497_v37 = vld [vmem:[#allocation4 + $0x198] sm:$0xff] }
  0xd9   : > { %2090 = vmatprep.subr.bf16.mxu0 %v4870_v38  ;;  %2131 = vmatprep.subr.bf16.mxu1 %v4872_v39  ;;  %v505_v38 = vld [vmem:[#allocation4 + $0x1d8] sm:$0xff]  ;;  %v4761_v39 = vcombine.low %v512_v27, %v520_v28  ;;  %v4746_v41 = vcombine.high %v496_v35, %v504_v36  ;;  %v4906_v27 = vcombine.high %v656_v21, %v664_v22 }
  0xda   : > { %v4748_v42 = vcombine.high %v497_v37, %v505_v38  ;;  %v4747_v48 = vcombine.low %v497_v37, %v505_v38  ;;  %v624_v37 = vld [vmem:[#allocation4 + $0x590] sm:$0xff] }
  0xdb   : > { %v632_v38 = vld [vmem:[#allocation4 + $0x5d0] sm:$0xff] }
  0xdc   : > { %2091 = vmatpush2.bf16.msra.mxu0 %v4869_v44  ;;  %2132 = vmatpush2.bf16.msra.mxu1 %v4871_v45  ;;  %v488_v44 = vld [vmem:[#allocation4 + $0x150] sm:$0xff]  ;;  %v481_v45 = vld [vmem:[#allocation4 + $0x118] sm:$0xff] }
  0xdd   : > { %2092 = vmatprep.subr.bf16.mxu0 %v4854_v46  ;;  %2133 = vmatprep.subr.bf16.mxu1 %v4856_v47  ;;  %v489_v46 = vld [vmem:[#allocation4 + $0x158] sm:$0xff]  ;;  %v4745_v47 = vcombine.low %v496_v35, %v504_v36  ;;  %v4730_v49 = vcombine.high %v480_v43, %v488_v44  ;;  %v4890_v35 = vcombine.high %v640_v29, %v648_v30 }
  0xde   : > { %v4732_v50 = vcombine.high %v481_v45, %v489_v46  ;;  %v4731_v56 = vcombine.low %v481_v45, %v489_v46  ;;  %v608_v45 = vld [vmem:[#allocation4 + $0x510] sm:$0xff] }
  0xdf   : > { %v616_v46 = vld [vmem:[#allocation4 + $0x550] sm:$0xff] }
  0xe0   : > { %2093 = vmatpush2.bf16.msra.mxu0 %v4853_v52  ;;  %2134 = vmatpush2.bf16.msra.mxu1 %v4855_v53  ;;  %v472_v52 = vld [vmem:[#allocation4 + $0xd0] sm:$0xff]  ;;  %v465_v53 = vld [vmem:[#allocation4 + $0x98] sm:$0xff] }
  0xe1   : > { %2094 = vmatprep.subr.bf16.mxu0 %v4838_v54  ;;  %2135 = vmatprep.subr.bf16.mxu1 %v4840_v55  ;;  %v473_v54 = vld [vmem:[#allocation4 + $0xd8] sm:$0xff]  ;;  %v4729_v55 = vcombine.low %v480_v43, %v488_v44  ;;  %v4714_v58 = vcombine.high %v464_v51, %v472_v52  ;;  %v4874_v43 = vcombine.high %v624_v37, %v632_v38 }
  0xe2   : > { %v4716_v59 = vcombine.high %v465_v53, %v473_v54  ;;  %v4715_v1 = vcombine.low %v465_v53, %v473_v54  ;;  %v592_v53 = vld [vmem:[#allocation4 + $0x490] sm:$0xff] }
  0xe3   : > { %v600_v54 = vld [vmem:[#allocation4 + $0x4d0] sm:$0xff] }
  0xe4   : > { %2095 = vmatpush2.bf16.msra.mxu0 %v4837_v61  ;;  %2136 = vmatpush2.bf16.msra.mxu1 %v4839_v62  ;;  %v456_v61 = vld [vmem:[#allocation4 + $0x50] sm:$0xff]  ;;  %v449_v62 = vld [vmem:[#allocation4 + $0x18] sm:$0xff] }
  0xe5   : > { %2096 = vmatprep.subr.bf16.mxu0 %v4822_v63  ;;  %2137 = vmatprep.subr.bf16.mxu1 %v4824_v0  ;;  %v457_v63 = vld [vmem:[#allocation4 + $0x58] sm:$0xff]  ;;  %v4713_v0 = vcombine.low %v464_v51, %v472_v52  ;;  %v4698_v2 = vcombine.high %v448_v60, %v456_v61  ;;  %v4858_v51 = vcombine.high %v608_v45, %v616_v46 }
  0xe6   : > { %v4700_v3 = vcombine.high %v449_v62, %v457_v63 }
  0xe8   : > { %2097 = vmatpush2.bf16.msra.mxu0 %v4821_v5  ;;  %2138 = vmatpush2.bf16.msra.mxu1 %v4823_v7  ;;  %v696_v5 = vld [vmem:[#allocation4 + $0x7d0] sm:$0xff]  ;;  %v697_v7 = vld [vmem:[#allocation4 + $0x7d8] sm:$0xff] }
  0xe9   : > { %2148 = vmatprep.subr.bf16.mxu0 %v4810_v8  ;;  %2189 = vmatprep.subr.bf16.mxu1 %v4812_v9  ;;  %v4697_v8 = vcombine.low %v448_v60, %v456_v61  ;;  %v4699_v9 = vcombine.low %v449_v62, %v457_v63  ;;  %v4938_v10 = vcombine.high %v688_v4, %v696_v5  ;;  %v576_v62 = vld [vmem:[#allocation4 + $0x410] sm:$0xff] }
  0xea   : > { %v4940_v11 = vcombine.high %v689_v6, %v697_v7  ;;  %v4842_v60 = vcombine.high %v592_v53, %v600_v54  ;;  %v584_v63 = vld [vmem:[#allocation4 + $0x450] sm:$0xff] }
  0xeb   : > { %2099 = vmatmul.mubr.bf16.vlgmr.msra.gmra.mxu0 %v6236_v12  ;;  %2140 = vmatmul.mubr.bf16.vlgmr.msra.gmra.mxu1 %v6236_v12 }
  0xec   : > { %2149 = vmatpush1.bf16.msra.mxu0 %v4809_v15  ;;  %2190 = vmatpush1.bf16.msra.mxu1 %v4811_v16  ;;  %v673_v15 = vld [vmem:[#allocation4 + $0x718] sm:$0xff] }
  0xed   : > { %2150 = vmatprep.subr.bf16.mxu0 %v4794_v17  ;;  %2191 = vmatprep.subr.bf16.mxu1 %v4796_v18  ;;  %v681_v16 = vld [vmem:[#allocation4 + $0x758] sm:$0xff]  ;;  %v4937_v17 = vcombine.low %v688_v4, %v696_v5  ;;  %v4939_v18 = vcombine.low %v689_v6, %v697_v7  ;;  %v4826_v4 = vcombine.high %v576_v62, %v584_v63  ;;  %v562_v6 = vld [vmem:[#allocation4 + $0x3a0] sm:$0xff] }
  0xee   : > { %2180 = vmatprep.mubr.bf16.mxu0 %v6229_v57  ;;  %2221 = vmatprep.mubr.bf16.mxu1 %v6229_v57  ;;  %v4924_v20 = vcombine.high %v673_v15, %v681_v16  ;;  %v570_v7 = vld [vmem:[#allocation4 + $0x3e0] sm:$0xff] }
  0xf0   : > { %2151 = vmatpush1.bf16.msra.mxu0 %v4793_v23  ;;  %2192 = vmatpush1.bf16.msra.mxu1 %v4795_v24  ;;  %v657_v23 = vld [vmem:[#allocation4 + $0x698] sm:$0xff] }
  0xf1   : > { %2152 = vmatprep.subr.bf16.mxu0 %v4778_v25  ;;  %2193 = vmatprep.subr.bf16.mxu1 %v4780_v26  ;;  %v665_v24 = vld [vmem:[#allocation4 + $0x6d8] sm:$0xff]  ;;  %v4921_v25 = vcombine.low %v672_v13, %v680_v14  ;;  %v4923_v26 = vcombine.low %v673_v15, %v681_v16  ;;  %v4814_v13 = vcombine.high %v562_v6, %v570_v7  ;;  %v546_v15 = vld [vmem:[#allocation4 + $0x320] sm:$0xff] }
  0xf2   : > { %v4908_v28 = vcombine.high %v657_v23, %v665_v24  ;;  %v554_v16 = vld [vmem:[#allocation4 + $0x360] sm:$0xff] }
  0xf4   : > { %2153 = vmatpush1.bf16.msra.mxu0 %v4777_v31  ;;  %2194 = vmatpush1.bf16.msra.mxu1 %v4779_v32  ;;  %v641_v31 = vld [vmem:[#allocation4 + $0x618] sm:$0xff] }
  0xf5   : > { %2154 = vmatprep.subr.bf16.mxu0 %v4762_v33  ;;  %2195 = vmatprep.subr.bf16.mxu1 %v4764_v34  ;;  %v649_v32 = vld [vmem:[#allocation4 + $0x658] sm:$0xff]  ;;  %v4905_v33 = vcombine.low %v656_v21, %v664_v22  ;;  %v4907_v34 = vcombine.low %v657_v23, %v665_v24  ;;  %v4798_v21 = vcombine.high %v546_v15, %v554_v16  ;;  %v530_v23 = vld [vmem:[#allocation4 + $0x2a0] sm:$0xff] }
  0xf6   : > { %v4892_v36 = vcombine.high %v641_v31, %v649_v32  ;;  %v538_v24 = vld [vmem:[#allocation4 + $0x2e0] sm:$0xff] }
  0xf8   : > { %2155 = vmatpush1.bf16.msra.mxu0 %v4761_v39  ;;  %2196 = vmatpush1.bf16.msra.mxu1 %v4763_v40  ;;  %v625_v39 = vld [vmem:[#allocation4 + $0x598] sm:$0xff] }
  0xf9   : > { %2156 = vmatprep.subr.bf16.mxu0 %v4746_v41  ;;  %2197 = vmatprep.subr.bf16.mxu1 %v4748_v42  ;;  %v633_v40 = vld [vmem:[#allocation4 + $0x5d8] sm:$0xff]  ;;  %v4889_v41 = vcombine.low %v640_v29, %v648_v30  ;;  %v4891_v42 = vcombine.low %v641_v31, %v649_v32  ;;  %v4782_v29 = vcombine.high %v530_v23, %v538_v24  ;;  %v514_v31 = vld [vmem:[#allocation4 + $0x220] sm:$0xff] }
  0xfa   : > { %v4876_v44 = vcombine.high %v625_v39, %v633_v40  ;;  %v522_v32 = vld [vmem:[#allocation4 + $0x260] sm:$0xff] }
  0xfc   : > { %2157 = vmatpush1.bf16.msra.mxu0 %v4745_v47  ;;  %2198 = vmatpush1.bf16.msra.mxu1 %v4747_v48  ;;  %v609_v47 = vld [vmem:[#allocation4 + $0x518] sm:$0xff] }
  0xfd   : > { %2158 = vmatprep.subr.bf16.mxu0 %v4730_v49  ;;  %2199 = vmatprep.subr.bf16.mxu1 %v4732_v50  ;;  %v617_v48 = vld [vmem:[#allocation4 + $0x558] sm:$0xff]  ;;  %v4873_v49 = vcombine.low %v624_v37, %v632_v38  ;;  %v4875_v50 = vcombine.low %v625_v39, %v633_v40  ;;  %v4766_v37 = vcombine.high %v514_v31, %v522_v32  ;;  %v498_v39 = vld [vmem:[#allocation4 + $0x1a0] sm:$0xff] }
  0xfe   : > { %v4860_v52 = vcombine.high %v609_v47, %v617_v48  ;;  %v506_v40 = vld [vmem:[#allocation4 + $0x1e0] sm:$0xff] }
 0x100   : > { %2159 = vmatpush1.bf16.msra.mxu0 %v4729_v55  ;;  %2200 = vmatpush1.bf16.msra.mxu1 %v4731_v56  ;;  %v593_v55 = vld [vmem:[#allocation4 + $0x498] sm:$0xff] }
 0x101   : > { %2160 = vmatprep.subr.bf16.mxu0 %v4714_v58  ;;  %2201 = vmatprep.subr.bf16.mxu1 %v4716_v59  ;;  %v601_v56 = vld [vmem:[#allocation4 + $0x4d8] sm:$0xff]  ;;  %v4857_v58 = vcombine.low %v608_v45, %v616_v46  ;;  %v4859_v59 = vcombine.low %v609_v47, %v617_v48  ;;  %v4750_v45 = vcombine.high %v498_v39, %v506_v40  ;;  %v482_v47 = vld [vmem:[#allocation4 + $0x120] sm:$0xff] }
 0x102   : > { %v4844_v61 = vcombine.high %v593_v55, %v601_v56  ;;  %v490_v48 = vld [vmem:[#allocation4 + $0x160] sm:$0xff] }
 0x104   : > { %2161 = vmatpush1.bf16.msra.mxu0 %v4713_v0  ;;  %2202 = vmatpush1.bf16.msra.mxu1 %v4715_v1  ;;  %v577_v0 = vld [vmem:[#allocation4 + $0x418] sm:$0xff] }
 0x105   : > { %2162 = vmatprep.subr.bf16.mxu0 %v4698_v2  ;;  %2203 = vmatprep.subr.bf16.mxu1 %v4700_v3  ;;  %v585_v1 = vld [vmem:[#allocation4 + $0x458] sm:$0xff]  ;;  %v4841_v2 = vcombine.low %v592_v53, %v600_v54  ;;  %v4843_v3 = vcombine.low %v593_v55, %v601_v56  ;;  %v4734_v53 = vcombine.high %v482_v47, %v490_v48  ;;  %v466_v55 = vld [vmem:[#allocation4 + $0xa0] sm:$0xff] }
 0x106   : > { %v4828_v5 = vcombine.high %v577_v0, %v585_v1  ;;  %v474_v56 = vld [vmem:[#allocation4 + $0xe0] sm:$0xff] }
 0x108   : > { %2163 = vmatpush1.bf16.msra.mxu0 %v4697_v8  ;;  %2204 = vmatpush1.bf16.msra.mxu1 %v4699_v9  ;;  %v563_v8 = vld [vmem:[#allocation4 + $0x3a8] sm:$0xff] }
 0x109   : > { %2164 = vmatprep.subr.bf16.mxu0 %v4938_v10  ;;  %2205 = vmatprep.subr.bf16.mxu1 %v4940_v11  ;;  %v571_v9 = vld [vmem:[#allocation4 + $0x3e8] sm:$0xff]  ;;  %v4825_v10 = vcombine.low %v576_v62, %v584_v63  ;;  %v4827_v11 = vcombine.low %v577_v0, %v585_v1  ;;  %v4718_v62 = vcombine.high %v466_v55, %v474_v56  ;;  %v450_v0 = vld [vmem:[#allocation4 + $0x20] sm:$0xff] }
 0x10a   : > { %v4816_v14 = vcombine.high %v563_v8, %v571_v9  ;;  %v458_v1 = vld [vmem:[#allocation4 + $0x60] sm:$0xff] }
 0x10c   : > { %2165 = vmatpush2.bf16.msra.mxu0 %v4937_v17  ;;  %2206 = vmatpush2.bf16.msra.mxu1 %v4939_v18  ;;  %v547_v17 = vld [vmem:[#allocation4 + $0x328] sm:$0xff] }
 0x10d   : > { %2166 = vmatprep.subr.bf16.mxu0 %v4922_v19  ;;  %2207 = vmatprep.subr.bf16.mxu1 %v4924_v20  ;;  %v555_v18 = vld [vmem:[#allocation4 + $0x368] sm:$0xff]  ;;  %v4813_v19 = vcombine.low %v562_v6, %v570_v7  ;;  %v4815_v20 = vcombine.low %v563_v8, %v571_v9  ;;  %v4702_v6 = vcombine.high %v450_v0, %v458_v1  ;;  %v690_v8 = vld [vmem:[#allocation4 + $0x7a0] sm:$0xff] }
 0x10e   : > { %v4800_v22 = vcombine.high %v547_v17, %v555_v18  ;;  %v698_v9 = vld [vmem:[#allocation4 + $0x7e0] sm:$0xff] }
 0x110   : > { %2167 = vmatpush2.bf16.msra.mxu0 %v4921_v25  ;;  %2208 = vmatpush2.bf16.msra.mxu1 %v4923_v26  ;;  %v531_v25 = vld [vmem:[#allocation4 + $0x2a8] sm:$0xff] }
 0x111   : > { %2168 = vmatprep.subr.bf16.mxu0 %v4906_v27  ;;  %2209 = vmatprep.subr.bf16.mxu1 %v4908_v28  ;;  %v539_v26 = vld [vmem:[#allocation4 + $0x2e8] sm:$0xff]  ;;  %v4797_v27 = vcombine.low %v546_v15, %v554_v16  ;;  %v4799_v28 = vcombine.low %v547_v17, %v555_v18  ;;  %v4942_v15 = vcombine.high %v690_v8, %v698_v9  ;;  %v674_v17 = vld [vmem:[#allocation4 + $0x720] sm:$0xff] }
 0x112   : > { %v4784_v30 = vcombine.high %v531_v25, %v539_v26  ;;  %v682_v18 = vld [vmem:[#allocation4 + $0x760] sm:$0xff] }
 0x114   : > { %2169 = vmatpush2.bf16.msra.mxu0 %v4905_v33  ;;  %2210 = vmatpush2.bf16.msra.mxu1 %v4907_v34  ;;  %v515_v33 = vld [vmem:[#allocation4 + $0x228] sm:$0xff] }
 0x115   : > { %2170 = vmatprep.subr.bf16.mxu0 %v4890_v35  ;;  %2211 = vmatprep.subr.bf16.mxu1 %v4892_v36  ;;  %v523_v34 = vld [vmem:[#allocation4 + $0x268] sm:$0xff]  ;;  %v4781_v35 = vcombine.low %v530_v23, %v538_v24  ;;  %v4783_v36 = vcombine.low %v531_v25, %v539_v26  ;;  %v4926_v23 = vcombine.high %v674_v17, %v682_v18  ;;  %v658_v25 = vld [vmem:[#allocation4 + $0x6a0] sm:$0xff] }
 0x116   : > { %v4768_v38 = vcombine.high %v515_v33, %v523_v34  ;;  %v666_v26 = vld [vmem:[#allocation4 + $0x6e0] sm:$0xff] }
 0x118   : > { %2171 = vmatpush2.bf16.msra.mxu0 %v4889_v41  ;;  %2212 = vmatpush2.bf16.msra.mxu1 %v4891_v42  ;;  %v499_v41 = vld [vmem:[#allocation4 + $0x1a8] sm:$0xff] }
 0x119   : > { %2172 = vmatprep.subr.bf16.mxu0 %v4874_v43  ;;  %2213 = vmatprep.subr.bf16.mxu1 %v4876_v44  ;;  %v507_v42 = vld [vmem:[#allocation4 + $0x1e8] sm:$0xff]  ;;  %v4765_v43 = vcombine.low %v514_v31, %v522_v32  ;;  %v4767_v44 = vcombine.low %v515_v33, %v523_v34  ;;  %v4910_v31 = vcombine.high %v658_v25, %v666_v26  ;;  %v642_v33 = vld [vmem:[#allocation4 + $0x620] sm:$0xff] }
 0x11a   : > { %v4752_v46 = vcombine.high %v499_v41, %v507_v42  ;;  %v650_v34 = vld [vmem:[#allocation4 + $0x660] sm:$0xff] }
 0x11c   : > { %2173 = vmatpush2.bf16.msra.mxu0 %v4873_v49  ;;  %2214 = vmatpush2.bf16.msra.mxu1 %v4875_v50  ;;  %v483_v49 = vld [vmem:[#allocation4 + $0x128] sm:$0xff] }
 0x11d   : > { %2174 = vmatprep.subr.bf16.mxu0 %v4858_v51  ;;  %2215 = vmatprep.subr.bf16.mxu1 %v4860_v52  ;;  %v491_v50 = vld [vmem:[#allocation4 + $0x168] sm:$0xff]  ;;  %v4749_v51 = vcombine.low %v498_v39, %v506_v40  ;;  %v4751_v52 = vcombine.low %v499_v41, %v507_v42  ;;  %v4894_v39 = vcombine.high %v642_v33, %v650_v34  ;;  %v626_v41 = vld [vmem:[#allocation4 + $0x5a0] sm:$0xff] }
 0x11e   : > { %v4736_v54 = vcombine.high %v483_v49, %v491_v50  ;;  %v634_v42 = vld [vmem:[#allocation4 + $0x5e0] sm:$0xff] }
 0x120   : > { %2175 = vmatpush2.bf16.msra.mxu0 %v4857_v58  ;;  %2216 = vmatpush2.bf16.msra.mxu1 %v4859_v59  ;;  %v467_v58 = vld [vmem:[#allocation4 + $0xa8] sm:$0xff] }
 0x121   : > { %2176 = vmatprep.subr.bf16.mxu0 %v4842_v60  ;;  %2217 = vmatprep.subr.bf16.mxu1 %v4844_v61  ;;  %v475_v59 = vld [vmem:[#allocation4 + $0xe8] sm:$0xff]  ;;  %v4733_v60 = vcombine.low %v482_v47, %v490_v48  ;;  %v4735_v61 = vcombine.low %v483_v49, %v491_v50  ;;  %v4878_v47 = vcombine.high %v626_v41, %v634_v42  ;;  %v610_v49 = vld [vmem:[#allocation4 + $0x520] sm:$0xff] }
 0x122   : > { %v4720_v63 = vcombine.high %v467_v58, %v475_v59  ;;  %v618_v50 = vld [vmem:[#allocation4 + $0x560] sm:$0xff] }
 0x124   : > { %2177 = vmatpush2.bf16.msra.mxu0 %v4841_v2  ;;  %2218 = vmatpush2.bf16.msra.mxu1 %v4843_v3  ;;  %v451_v2 = vld [vmem:[#allocation4 + $0x28] sm:$0xff] }
 0x125   : > { %2178 = vmatprep.subr.bf16.mxu0 %v4826_v4  ;;  %2219 = vmatprep.subr.bf16.mxu1 %v4828_v5  ;;  %v459_v3 = vld [vmem:[#allocation4 + $0x68] sm:$0xff]  ;;  %v4717_v4 = vcombine.low %v466_v55, %v474_v56  ;;  %v4719_v5 = vcombine.low %v467_v58, %v475_v59  ;;  %v4862_v55 = vcombine.high %v610_v49, %v618_v50  ;;  %v594_v58 = vld [vmem:[#allocation4 + $0x4a0] sm:$0xff] }
 0x126   : > { %v4704_v7 = vcombine.high %v451_v2, %v459_v3  ;;  %v602_v59 = vld [vmem:[#allocation4 + $0x4e0] sm:$0xff] }
 0x128   : > { %2179 = vmatpush2.bf16.msra.mxu0 %v4825_v10  ;;  %2220 = vmatpush2.bf16.msra.mxu1 %v4827_v11  ;;  %v691_v10 = vld [vmem:[#allocation4 + $0x7a8] sm:$0xff] }
 0x129   : > { %2230 = vmatprep.subr.bf16.mxu0 %v4814_v13  ;;  %2271 = vmatprep.subr.bf16.mxu1 %v4816_v14  ;;  %v699_v11 = vld [vmem:[#allocation4 + $0x7e8] sm:$0xff]  ;;  %v4701_v13 = vcombine.low %v450_v0, %v458_v1  ;;  %v4703_v14 = vcombine.low %v451_v2, %v459_v3  ;;  %v4846_v0 = vcombine.high %v594_v58, %v602_v59  ;;  %v578_v2 = vld [vmem:[#allocation4 + $0x420] sm:$0xff] }
 0x12a   : > { %v4944_v16 = vcombine.high %v691_v10, %v699_v11  ;;  %v586_v3 = vld [vmem:[#allocation4 + $0x460] sm:$0xff] }
 0x12b   : > { %2181 = vmatmul.mubr.bf16.vlgmr.msra.gmra.mxu0 %v6236_v12  ;;  %2222 = vmatmul.mubr.bf16.vlgmr.msra.gmra.mxu1 %v6236_v12 }
 0x12c   : > { %2231 = vmatpush1.bf16.msra.mxu0 %v4813_v19  ;;  %2272 = vmatpush1.bf16.msra.mxu1 %v4815_v20  ;;  %v675_v19 = vld [vmem:[#allocation4 + $0x728] sm:$0xff] }
 0x12d   : > { %2232 = vmatprep.subr.bf16.mxu0 %v4798_v21  ;;  %2273 = vmatprep.subr.bf16.mxu1 %v4800_v22  ;;  %v683_v20 = vld [vmem:[#allocation4 + $0x768] sm:$0xff]  ;;  %v4941_v21 = vcombine.low %v690_v8, %v698_v9  ;;  %v4943_v22 = vcombine.low %v691_v10, %v699_v11  ;;  %v4830_v8 = vcombine.high %v578_v2, %v586_v3  ;;  %v564_v10 = vld [vmem:[#allocation4 + $0x3b0] sm:$0xff] }
 0x12e   : > { %2262 = vmatprep.mubr.bf16.mxu0 %v6229_v57  ;;  %2303 = vmatprep.mubr.bf16.mxu1 %v6229_v57  ;;  %v4928_v24 = vcombine.high %v675_v19, %v683_v20  ;;  %v572_v11 = vld [vmem:[#allocation4 + $0x3f0] sm:$0xff] }
 0x130   : > { %2233 = vmatpush1.bf16.msra.mxu0 %v4797_v27  ;;  %2274 = vmatpush1.bf16.msra.mxu1 %v4799_v28  ;;  %v659_v27 = vld [vmem:[#allocation4 + $0x6a8] sm:$0xff] }
 0x131   : > { %2234 = vmatprep.subr.bf16.mxu0 %v4782_v29  ;;  %2275 = vmatprep.subr.bf16.mxu1 %v4784_v30  ;;  %v667_v28 = vld [vmem:[#allocation4 + $0x6e8] sm:$0xff]  ;;  %v4925_v29 = vcombine.low %v674_v17, %v682_v18  ;;  %v4927_v30 = vcombine.low %v675_v19, %v683_v20  ;;  %v4818_v17 = vcombine.high %v564_v10, %v572_v11  ;;  %v548_v19 = vld [vmem:[#allocation4 + $0x330] sm:$0xff] }
 0x132   : > { %v4912_v32 = vcombine.high %v659_v27, %v667_v28  ;;  %v556_v20 = vld [vmem:[#allocation4 + $0x370] sm:$0xff] }
 0x134   : > { %2235 = vmatpush1.bf16.msra.mxu0 %v4781_v35  ;;  %2276 = vmatpush1.bf16.msra.mxu1 %v4783_v36  ;;  %v643_v35 = vld [vmem:[#allocation4 + $0x628] sm:$0xff] }
 0x135   : > { %2236 = vmatprep.subr.bf16.mxu0 %v4766_v37  ;;  %2277 = vmatprep.subr.bf16.mxu1 %v4768_v38  ;;  %v651_v36 = vld [vmem:[#allocation4 + $0x668] sm:$0xff]  ;;  %v4909_v37 = vcombine.low %v658_v25, %v666_v26  ;;  %v4911_v38 = vcombine.low %v659_v27, %v667_v28  ;;  %v4802_v25 = vcombine.high %v548_v19, %v556_v20  ;;  %v532_v27 = vld [vmem:[#allocation4 + $0x2b0] sm:$0xff] }
 0x136   : > { %v4896_v40 = vcombine.high %v643_v35, %v651_v36  ;;  %v540_v28 = vld [vmem:[#allocation4 + $0x2f0] sm:$0xff] }
 0x138   : > { %2237 = vmatpush1.bf16.msra.mxu0 %v4765_v43  ;;  %2278 = vmatpush1.bf16.msra.mxu1 %v4767_v44  ;;  %v627_v43 = vld [vmem:[#allocation4 + $0x5a8] sm:$0xff] }
 0x139   : > { %2238 = vmatprep.subr.bf16.mxu0 %v4750_v45  ;;  %2279 = vmatprep.subr.bf16.mxu1 %v4752_v46  ;;  %v635_v44 = vld [vmem:[#allocation4 + $0x5e8] sm:$0xff]  ;;  %v4893_v45 = vcombine.low %v642_v33, %v650_v34  ;;  %v4895_v46 = vcombine.low %v643_v35, %v651_v36  ;;  %v4786_v33 = vcombine.high %v532_v27, %v540_v28  ;;  %v516_v35 = vld [vmem:[#allocation4 + $0x230] sm:$0xff] }
 0x13a   : > { %v4880_v48 = vcombine.high %v627_v43, %v635_v44  ;;  %v524_v36 = vld [vmem:[#allocation4 + $0x270] sm:$0xff] }
 0x13c   : > { %2239 = vmatpush1.bf16.msra.mxu0 %v4749_v51  ;;  %2280 = vmatpush1.bf16.msra.mxu1 %v4751_v52  ;;  %v611_v51 = vld [vmem:[#allocation4 + $0x528] sm:$0xff] }
 0x13d   : > { %2240 = vmatprep.subr.bf16.mxu0 %v4734_v53  ;;  %2281 = vmatprep.subr.bf16.mxu1 %v4736_v54  ;;  %v619_v52 = vld [vmem:[#allocation4 + $0x568] sm:$0xff]  ;;  %v4877_v53 = vcombine.low %v626_v41, %v634_v42  ;;  %v4879_v54 = vcombine.low %v627_v43, %v635_v44  ;;  %v4770_v41 = vcombine.high %v516_v35, %v524_v36  ;;  %v500_v43 = vld [vmem:[#allocation4 + $0x1b0] sm:$0xff] }
 0x13e   : > { %v4864_v56 = vcombine.high %v611_v51, %v619_v52  ;;  %v508_v44 = vld [vmem:[#allocation4 + $0x1f0] sm:$0xff] }
 0x140   : > { %2241 = vmatpush1.bf16.msra.mxu0 %v4733_v60  ;;  %2282 = vmatpush1.bf16.msra.mxu1 %v4735_v61  ;;  %v595_v60 = vld [vmem:[#allocation4 + $0x4a8] sm:$0xff] }
 0x141   : > { %2242 = vmatprep.subr.bf16.mxu0 %v4718_v62  ;;  %2283 = vmatprep.subr.bf16.mxu1 %v4720_v63  ;;  %v603_v61 = vld [vmem:[#allocation4 + $0x4e8] sm:$0xff]  ;;  %v4861_v62 = vcombine.low %v610_v49, %v618_v50  ;;  %v4863_v63 = vcombine.low %v611_v51, %v619_v52  ;;  %v4754_v49 = vcombine.high %v500_v43, %v508_v44  ;;  %v484_v50 = vld [vmem:[#allocation4 + $0x130] sm:$0xff]  ;;  %v485_v52 = vld [vmem:[#allocation4 + $0x138] sm:$0xff] }
 0x142   : > { %v4848_v1 = vcombine.high %v595_v60, %v603_v61  ;;  %v492_v51 = vld [vmem:[#allocation4 + $0x170] sm:$0xff] }
 0x144   : > { %2243 = vmatpush1.bf16.msra.mxu0 %v4717_v4  ;;  %2284 = vmatpush1.bf16.msra.mxu1 %v4719_v5  ;;  %v579_v4 = vld [vmem:[#allocation4 + $0x428] sm:$0xff] }
 0x145   : > { %2244 = vmatprep.subr.bf16.mxu0 %v4702_v6  ;;  %2285 = vmatprep.subr.bf16.mxu1 %v4704_v7  ;;  %v587_v5 = vld [vmem:[#allocation4 + $0x468] sm:$0xff]  ;;  %v4845_v6 = vcombine.low %v594_v58, %v602_v59  ;;  %v4847_v7 = vcombine.low %v595_v60, %v603_v61  ;;  %v468_v59 = vld [vmem:[#allocation4 + $0xb0] sm:$0xff]  ;;  %v469_v61 = vld [vmem:[#allocation4 + $0xb8] sm:$0xff] }
 0x146   : > { %v4832_v9 = vcombine.high %v579_v4, %v587_v5  ;;  %v476_v60 = vld [vmem:[#allocation4 + $0xf0] sm:$0xff] }
 0x148   : > { %2245 = vmatpush1.bf16.msra.mxu0 %v4701_v13  ;;  %2286 = vmatpush1.bf16.msra.mxu1 %v4703_v14  ;;  %v565_v13 = vld [vmem:[#allocation4 + $0x3b8] sm:$0xff] }
 0x149   : > { %2246 = vmatprep.subr.bf16.mxu0 %v4942_v15  ;;  %2287 = vmatprep.subr.bf16.mxu1 %v4944_v16  ;;  %v573_v14 = vld [vmem:[#allocation4 + $0x3f8] sm:$0xff]  ;;  %v4829_v15 = vcombine.low %v578_v2, %v586_v3  ;;  %v4831_v16 = vcombine.low %v579_v4, %v587_v5  ;;  %v452_v3 = vld [vmem:[#allocation4 + $0x30] sm:$0xff] }
 0x14a   : > { %v4820_v18 = vcombine.high %v565_v13, %v573_v14  ;;  %v460_v4 = vld [vmem:[#allocation4 + $0x70] sm:$0xff]  ;;  %v453_v5 = vld [vmem:[#allocation4 + $0x38] sm:$0xff] }
 0x14c   : > { %2247 = vmatpush2.bf16.msra.mxu0 %v4941_v21  ;;  %2288 = vmatpush2.bf16.msra.mxu1 %v4943_v22  ;;  %v549_v21 = vld [vmem:[#allocation4 + $0x338] sm:$0xff] }
 0x14d   : > { %2248 = vmatprep.subr.bf16.mxu0 %v4926_v23  ;;  %2289 = vmatprep.subr.bf16.mxu1 %v4928_v24  ;;  %v557_v22 = vld [vmem:[#allocation4 + $0x378] sm:$0xff]  ;;  %v4817_v23 = vcombine.low %v564_v10, %v572_v11  ;;  %v4819_v24 = vcombine.low %v565_v13, %v573_v14  ;;  %v692_v11 = vld [vmem:[#allocation4 + $0x7b0] sm:$0xff] }
 0x14e   : > { %v4804_v26 = vcombine.high %v549_v21, %v557_v22  ;;  %v700_v13 = vld [vmem:[#allocation4 + $0x7f0] sm:$0xff]  ;;  %v693_v14 = vld [vmem:[#allocation4 + $0x7b8] sm:$0xff] }
 0x150   : > { %2249 = vmatpush2.bf16.msra.mxu0 %v4925_v29  ;;  %2290 = vmatpush2.bf16.msra.mxu1 %v4927_v30  ;;  %v533_v29 = vld [vmem:[#allocation4 + $0x2b8] sm:$0xff] }
 0x151   : > { %2250 = vmatprep.subr.bf16.mxu0 %v4910_v31  ;;  %2291 = vmatprep.subr.bf16.mxu1 %v4912_v32  ;;  %v541_v30 = vld [vmem:[#allocation4 + $0x2f8] sm:$0xff]  ;;  %v4801_v31 = vcombine.low %v548_v19, %v556_v20  ;;  %v4803_v32 = vcombine.low %v549_v21, %v557_v22  ;;  %v676_v20 = vld [vmem:[#allocation4 + $0x730] sm:$0xff] }
 0x152   : > { %v4788_v34 = vcombine.high %v533_v29, %v541_v30  ;;  %v684_v21 = vld [vmem:[#allocation4 + $0x770] sm:$0xff]  ;;  %v677_v22 = vld [vmem:[#allocation4 + $0x738] sm:$0xff] }
 0x154   : > { %2251 = vmatpush2.bf16.msra.mxu0 %v4909_v37  ;;  %2292 = vmatpush2.bf16.msra.mxu1 %v4911_v38  ;;  %v517_v37 = vld [vmem:[#allocation4 + $0x238] sm:$0xff] }
 0x155   : > { %2252 = vmatprep.subr.bf16.mxu0 %v4894_v39  ;;  %2293 = vmatprep.subr.bf16.mxu1 %v4896_v40  ;;  %v525_v38 = vld [vmem:[#allocation4 + $0x278] sm:$0xff]  ;;  %v4785_v39 = vcombine.low %v532_v27, %v540_v28  ;;  %v4787_v40 = vcombine.low %v533_v29, %v541_v30  ;;  %v660_v28 = vld [vmem:[#allocation4 + $0x6b0] sm:$0xff] }
 0x156   : > { %v4772_v42 = vcombine.high %v517_v37, %v525_v38  ;;  %v668_v29 = vld [vmem:[#allocation4 + $0x6f0] sm:$0xff]  ;;  %v661_v30 = vld [vmem:[#allocation4 + $0x6b8] sm:$0xff] }
 0x158   : > { %2253 = vmatpush2.bf16.msra.mxu0 %v4893_v45  ;;  %2294 = vmatpush2.bf16.msra.mxu1 %v4895_v46  ;;  %v501_v45 = vld [vmem:[#allocation4 + $0x1b8] sm:$0xff] }
 0x159   : > { %2254 = vmatprep.subr.bf16.mxu0 %v4878_v47  ;;  %2295 = vmatprep.subr.bf16.mxu1 %v4880_v48  ;;  %v509_v46 = vld [vmem:[#allocation4 + $0x1f8] sm:$0xff]  ;;  %v4769_v47 = vcombine.low %v516_v35, %v524_v36  ;;  %v4771_v48 = vcombine.low %v517_v37, %v525_v38  ;;  %v644_v36 = vld [vmem:[#allocation4 + $0x630] sm:$0xff] }
 0x15a   : > { %v652_v37 = vld [vmem:[#allocation4 + $0x670] sm:$0xff]  ;;  %v645_v38 = vld [vmem:[#allocation4 + $0x638] sm:$0xff] }
 0x15c   : > { %2255 = vmatpush2.bf16.msra.mxu0 %v4877_v53  ;;  %2296 = vmatpush2.bf16.msra.mxu1 %v4879_v54  ;;  %v493_v53 = vld [vmem:[#allocation4 + $0x178] sm:$0xff]  ;;  %v4753_v54 = vcombine.low %v500_v43, %v508_v44  ;;  %v628_v44 = vld [vmem:[#allocation4 + $0x5b0] sm:$0xff] }
 0x15d   : > { %2256 = vmatprep.subr.bf16.mxu0 %v4862_v55  ;;  %2297 = vmatprep.subr.bf16.mxu1 %v4864_v56  ;;  %v4755_v55 = vcombine.low %v501_v45, %v509_v46  ;;  %v4738_v56 = vcombine.high %v484_v50, %v492_v51  ;;  %v4740_v58 = vcombine.high %v485_v52, %v493_v53 }
 0x160   : > { %2257 = vmatpush2.bf16.msra.mxu0 %v4861_v62  ;;  %2298 = vmatpush2.bf16.msra.mxu1 %v4863_v63  ;;  %v477_v62 = vld [vmem:[#allocation4 + $0xf8] sm:$0xff]  ;;  %v4737_v63 = vcombine.low %v484_v50, %v492_v51  ;;  %v612_v51 = vld [vmem:[#allocation4 + $0x530] sm:$0xff] }
 0x161   : > { %2258 = vmatprep.subr.bf16.mxu0 %v4846_v0  ;;  %2299 = vmatprep.subr.bf16.mxu1 %v4848_v1  ;;  %v4739_v0 = vcombine.low %v485_v52, %v493_v53  ;;  %v4722_v1 = vcombine.high %v468_v59, %v476_v60  ;;  %v4724_v2 = vcombine.high %v469_v61, %v477_v62  ;;  %v620_v52 = vld [vmem:[#allocation4 + $0x570] sm:$0xff]  ;;  %v613_v53 = vld [vmem:[#allocation4 + $0x538] sm:$0xff] }
 0x164   : > { %2259 = vmatpush2.bf16.msra.mxu0 %v4845_v6  ;;  %2300 = vmatpush2.bf16.msra.mxu1 %v4847_v7  ;;  %v461_v6 = vld [vmem:[#allocation4 + $0x78] sm:$0xff]  ;;  %v4721_v7 = vcombine.low %v468_v59, %v476_v60  ;;  %v596_v60 = vld [vmem:[#allocation4 + $0x4b0] sm:$0xff] }
 0x165   : > { %2260 = vmatprep.subr.bf16.mxu0 %v4830_v8  ;;  %2301 = vmatprep.subr.bf16.mxu1 %v4832_v9  ;;  %v4723_v8 = vcombine.low %v469_v61, %v477_v62  ;;  %v4706_v9 = vcombine.high %v452_v3, %v460_v4  ;;  %v4708_v10 = vcombine.high %v453_v5, %v461_v6  ;;  %v604_v61 = vld [vmem:[#allocation4 + $0x4f0] sm:$0xff]  ;;  %v597_v62 = vld [vmem:[#allocation4 + $0x4b8] sm:$0xff] }
 0x168   : > { %2261 = vmatpush2.bf16.msra.mxu0 %v4829_v15  ;;  %2302 = vmatpush2.bf16.msra.mxu1 %v4831_v16  ;;  %v701_v15 = vld [vmem:[#allocation4 + $0x7f8] sm:$0xff]  ;;  %v4705_v16 = vcombine.low %v452_v3, %v460_v4  ;;  %v4850_v3 = vcombine.high %v596_v60, %v604_v61 }
 0x169   : > { %2312 = vmatprep.subr.bf16.mxu0 %v4818_v17  ;;  %2353 = vmatprep.subr.bf16.mxu1 %v4820_v18  ;;  %v4707_v17 = vcombine.low %v453_v5, %v461_v6  ;;  %v4946_v18 = vcombine.high %v692_v11, %v700_v13  ;;  %v4948_v19 = vcombine.high %v693_v14, %v701_v15  ;;  %v580_v5 = vld [vmem:[#allocation4 + $0x430] sm:$0xff] }
 0x16a   : > { %v588_v6 = vld [vmem:[#allocation4 + $0x470] sm:$0xff] }
 0x16b   : > { %2263 = vmatmul.mubr.bf16.vlgmr.msra.gmra.mxu0 %v6236_v12  ;;  %2304 = vmatmul.mubr.bf16.vlgmr.msra.gmra.mxu1 %v6236_v12 }
 0x16c   : > { %2313 = vmatpush1.bf16.msra.mxu0 %v4817_v23  ;;  %2354 = vmatpush1.bf16.msra.mxu1 %v4819_v24  ;;  %v685_v23 = vld [vmem:[#allocation4 + $0x778] sm:$0xff]  ;;  %v4945_v24 = vcombine.low %v692_v11, %v700_v13  ;;  %v4834_v13 = vcombine.high %v580_v5, %v588_v6 }
 0x16d   : > { %2314 = vmatprep.subr.bf16.mxu0 %v4802_v25  ;;  %2355 = vmatprep.subr.bf16.mxu1 %v4804_v26  ;;  %v4947_v25 = vcombine.low %v693_v14, %v701_v15  ;;  %v4930_v26 = vcombine.high %v676_v20, %v684_v21  ;;  %v4932_v27 = vcombine.high %v677_v22, %v685_v23 }
 0x16e   : > { %2344 = vmatprep.mubr.bf16.mxu0 %v6229_v57  ;;  %2385 = vmatprep.mubr.bf16.mxu1 %v6229_v57  ;;  %v4756_v57 = vcombine.high %v501_v45, %v509_v46  ;;  %v636_v45 = vld [vmem:[#allocation4 + $0x5f0] sm:$0xff]  ;;  %v629_v46 = vld [vmem:[#allocation4 + $0x5b8] sm:$0xff]  ;;  %v4833_v15 = vcombine.low %v580_v5, %v588_v6 }
 0x170   : > { %2315 = vmatpush1.bf16.msra.mxu0 %v4801_v31  ;;  %2356 = vmatpush1.bf16.msra.mxu1 %v4803_v32  ;;  %v669_v31 = vld [vmem:[#allocation4 + $0x6f8] sm:$0xff]  ;;  %v4929_v32 = vcombine.low %v676_v20, %v684_v21 }
 0x171   : > { %2316 = vmatprep.subr.bf16.mxu0 %v4786_v33  ;;  %2357 = vmatprep.subr.bf16.mxu1 %v4788_v34  ;;  %v4931_v33 = vcombine.low %v677_v22, %v685_v23  ;;  %v4914_v34 = vcombine.high %v660_v28, %v668_v29  ;;  %v4916_v35 = vcombine.high %v661_v30, %v669_v31 }
 0x174   : > { %2317 = vmatpush1.bf16.msra.mxu0 %v4785_v39  ;;  %2358 = vmatpush1.bf16.msra.mxu1 %v4787_v40  ;;  %v653_v39 = vld [vmem:[#allocation4 + $0x678] sm:$0xff]  ;;  %v4913_v40 = vcombine.low %v660_v28, %v668_v29 }
 0x175   : > { %2318 = vmatprep.subr.bf16.mxu0 %v4770_v41  ;;  %2359 = vmatprep.subr.bf16.mxu1 %v4772_v42  ;;  %v4915_v41 = vcombine.low %v661_v30, %v669_v31  ;;  %v4898_v42 = vcombine.high %v644_v36, %v652_v37  ;;  %v4900_v43 = vcombine.high %v645_v38, %v653_v39 }
 0x178   : > { %2319 = vmatpush1.bf16.msra.mxu0 %v4769_v47  ;;  %2360 = vmatpush1.bf16.msra.mxu1 %v4771_v48  ;;  %v637_v47 = vld [vmem:[#allocation4 + $0x5f8] sm:$0xff]  ;;  %v4897_v48 = vcombine.low %v644_v36, %v652_v37 }
 0x179   : > { %2320 = vmatprep.subr.bf16.mxu0 %v4754_v49  ;;  %2361 = vmatprep.subr.bf16.mxu1 %v4756_v57  ;;  %v4899_v49 = vcombine.low %v645_v38, %v653_v39  ;;  %v4882_v57 = vcombine.high %v628_v44, %v636_v45  ;;  %v4884_v50 = vcombine.high %v629_v46, %v637_v47 }
 0x17c   : > { %2321 = vmatpush1.bf16.msra.mxu0 %v4753_v54  ;;  %2362 = vmatpush1.bf16.msra.mxu1 %v4755_v55  ;;  %v621_v54 = vld [vmem:[#allocation4 + $0x578] sm:$0xff]  ;;  %v4881_v55 = vcombine.low %v628_v44, %v636_v45 }
 0x17d   : > { %2322 = vmatprep.subr.bf16.mxu0 %v4738_v56  ;;  %2363 = vmatprep.subr.bf16.mxu1 %v4740_v58  ;;  %v4883_v56 = vcombine.low %v629_v46, %v637_v47  ;;  %v4866_v58 = vcombine.high %v612_v51, %v620_v52  ;;  %v4868_v59 = vcombine.high %v613_v53, %v621_v54 }
 0x180   : > { %2323 = vmatpush1.bf16.msra.mxu0 %v4737_v63  ;;  %2364 = vmatpush1.bf16.msra.mxu1 %v4739_v0  ;;  %v605_v63 = vld [vmem:[#allocation4 + $0x4f8] sm:$0xff]  ;;  %v4865_v0 = vcombine.low %v612_v51, %v620_v52 }
 0x181   : > { %2324 = vmatprep.subr.bf16.mxu0 %v4722_v1  ;;  %2365 = vmatprep.subr.bf16.mxu1 %v4724_v2  ;;  %v706_v1 = vlaneseq  ;;  %v4867_v2 = vcombine.low %v613_v53, %v621_v54  ;;  %v4852_v4 = vcombine.high %v597_v62, %v605_v63  ;;  %v4851_v11 = vcombine.low %v597_v62, %v605_v63 }
 0x184   : > { %2325 = vmatpush1.bf16.msra.mxu0 %v4721_v7  ;;  %2366 = vmatpush1.bf16.msra.mxu1 %v4723_v8  ;;  %v581_v7 = vld [vmem:[#allocation4 + $0x438] sm:$0xff] }
 0x185   : > { %2326 = vmatprep.subr.bf16.mxu0 %v4706_v9  ;;  %2367 = vmatprep.subr.bf16.mxu1 %v4708_v10  ;;  %v589_v8 = vld [vmem:[#allocation4 + $0x478] sm:$0xff]  ;;  %v4849_v9 = vcombine.low %v596_v60, %v604_v61  ;;  %v6250_v10 = vshrl.u32 %v706_v1, 7  ;;  %v5957_v1 = vmov 0.0  }
 0x186   : > { %v4836_v14 = vcombine.high %v581_v7, %v589_v8  ;;  %2426 = vst [vmem:[#allocation3] sm:$0xff] %v5957_v1 }
 0x187   : > { %v712_v20 = vsub.s32 1, %v6250_v10  ;;  %v720_v21 = vsub.s32 3, %v6250_v10  ;;  %v736_v44 = vsub.s32 7, %v6250_v10 }
 0x188   : > { %2327 = vmatpush1.bf16.msra.mxu0 %v4705_v16  ;;  %2368 = vmatpush1.bf16.msra.mxu1 %v4707_v17  ;;  %v708_v16 = vsub.s32 0, %v6250_v10  ;;  %v4835_v17 = vcombine.low %v581_v7, %v589_v8 }
 0x189   : > { %2328 = vmatprep.subr.bf16.mxu0 %v4946_v18  ;;  %2369 = vmatprep.subr.bf16.mxu1 %v4948_v19  ;;  %v702_v18 = vld [vmem:[#allocation6] sm:$0xff]  ;;  %v716_v19 = vsub.s32 2, %v6250_v10 }
 0x18a   : > { %v709_v22 = vrot.slane %v702_v18, %v708_v16 }
 0x18b   : > { %v717_v23 = vrot.slane %v702_v18, %v716_v19 }
 0x18c   : > { %2329 = vmatpush2.bf16.msra.mxu0 %v4945_v24  ;;  %2370 = vmatpush2.bf16.msra.mxu1 %v4947_v25  ;;  %v713_v24 = vrot.slane %v702_v18, %v712_v20 }
 0x18d   : > { %2330 = vmatprep.subr.bf16.mxu0 %v4930_v26  ;;  %2371 = vmatprep.subr.bf16.mxu1 %v4932_v27  ;;  %v721_v26 = vrot.slane %v702_v18, %v720_v21 }
 0x190   : > { %2331 = vmatpush2.bf16.msra.mxu0 %v4929_v32  ;;  %2372 = vmatpush2.bf16.msra.mxu1 %v4931_v33 }
 0x191   : > { %2332 = vmatprep.subr.bf16.mxu0 %v4914_v34  ;;  %2373 = vmatprep.subr.bf16.mxu1 %v4916_v35 }
 0x194   : > { %2333 = vmatpush2.bf16.msra.mxu0 %v4913_v40  ;;  %2374 = vmatpush2.bf16.msra.mxu1 %v4915_v41 }
 0x195   : > { %2334 = vmatprep.subr.bf16.mxu0 %v4898_v42  ;;  %2375 = vmatprep.subr.bf16.mxu1 %v4900_v43  ;;  %v724_v42 = vsub.s32 4, %v6250_v10  ;;  %v728_v43 = vsub.s32 5, %v6250_v10 }
 0x197   : > { %v725_v45 = vrot.slane %v702_v18, %v724_v42  ;;  %v729_v47 = vrot.slane %v702_v18, %v728_v43 }
 0x198   : > { %2335 = vmatpush2.bf16.msra.mxu0 %v4897_v48  ;;  %2376 = vmatpush2.bf16.msra.mxu1 %v4899_v49  ;;  %v737_v49 = vrot.slane %v702_v18, %v736_v44 }
 0x199   : > { %2336 = vmatprep.subr.bf16.mxu0 %v4882_v57  ;;  %2377 = vmatprep.subr.bf16.mxu1 %v4884_v50 }
 0x19c   : > { %2337 = vmatpush2.bf16.msra.mxu0 %v4881_v55  ;;  %2378 = vmatpush2.bf16.msra.mxu1 %v4883_v56 }
 0x19d   : > { %2338 = vmatprep.subr.bf16.mxu0 %v4866_v58  ;;  %2379 = vmatprep.subr.bf16.mxu1 %v4868_v59 }
 0x1a0   : > { %2339 = vmatpush2.bf16.msra.mxu0 %v4865_v0  ;;  %2380 = vmatpush2.bf16.msra.mxu1 %v4867_v2  ;;  %v703_v2 = vld [vmem:[#allocation6 + $0x8] sm:$0xff] }
 0x1a1   : > { %2340 = vmatprep.subr.bf16.mxu0 %v4850_v3  ;;  %2381 = vmatprep.subr.bf16.mxu1 %v4852_v4  ;;  %v741_v3 = vrot.slane %v703_v2, %v708_v16  ;;  %v749_v4 = vrot.slane %v703_v2, %v716_v19  ;;  %v745_v5 = vrot.slane %v703_v2, %v712_v20 }
 0x1a2   : > { %v753_v7 = vrot.slane %v703_v2, %v720_v21 }
 0x1a4   : > { %2341 = vmatpush2.bf16.msra.mxu0 %v4849_v9  ;;  %2382 = vmatpush2.bf16.msra.mxu1 %v4851_v11 }
 0x1a5   : > { %2342 = vmatprep.subr.bf16.mxu0 %v4834_v13  ;;  %2383 = vmatprep.subr.bf16.mxu1 %v4836_v14 }
 0x1a8   : > { %2343 = vmatpush2.bf16.msra.mxu0 %v4833_v15  ;;  %2384 = vmatpush2.bf16.msra.mxu1 %v4835_v17 }
 0x1ab   : > { %v2100_v25 = vpop.f32.mrf.mxu0  ;;  %2345 = vmatmul.mubr.bf16.vlgmr.msra.gmra.mxu0 %v6236_v12  ;;  %v2141_v28 = vpop.f32.mrf.mxu1  ;;  %2386 = vmatmul.mubr.bf16.vlgmr.msra.gmra.mxu1 %v6236_v12  ;;  %v732_v12 = vsub.s32 6, %v6250_v10  ;;  %v757_v10 = vrot.slane %v703_v2, %v724_v42 }
 0x1ac   : > { %v2101_v27 = vadd.f32 %v2100_v25, %v709_v22  ;;  %v2142_v29 = vadd.f32 %v2141_v28, %v717_v23  ;;  %v769_v28 = vrot.slane %v703_v2, %v736_v44 }
 0x1ad   : > { %v2102_v30 = vpop.f32.mrf.mxu0  ;;  %v2143_v33 = vpop.f32.mrf.mxu1  ;;  %v733_v46 = vrot.slane %v702_v18, %v732_v12  ;;  %v765_v21 = vrot.slane %v703_v2, %v732_v12 }
 0x1ae   : > { %v2394_v31 = vmax.f32 %v2101_v27, 0.0  ;;  %v2103_v32 = vadd.f32 %v2102_v30, %v713_v24  ;;  %v2396_v34 = vmax.f32 %v2142_v29, 0.0  ;;  %v2144_v35 = vadd.f32 %v2143_v33, %v721_v26 }
 0x1af   : > { %v2104_v36 = vpop.f32.mrf.mxu0  ;;  %v2145_v38 = vpop.f32.mrf.mxu1  ;;  %v761_v26 = vrot.slane %v703_v2, %v728_v43 }
 0x1b0   : > { %2410 = vst [vmem:[#allocation2 + $0x30] sm:$0xff] %v2394_v31  ;;  %v2395_v37 = vmax.f32 %v2103_v32, 0.0  ;;  %2412 = vst [vmem:[#allocation2 + $0x58] sm:$0xff] %v2396_v34  ;;  %v2397_v39 = vmax.f32 %v2144_v35, 0.0 }
 0x1b1   : > { %v2105_v40 = vpop.f32.mrf.mxu0  ;;  %v2146_v41 = vpop.f32.mrf.mxu1 }
 0x1b2   : > { %2411 = vst [vmem:[#allocation2] sm:$0xff] %v2395_v37  ;;  %2413 = vst [vmem:[#allocation2 + $0x18] sm:$0xff] %v2397_v39 }
 0x1eb   : > { %v2182_v48 = vpop.f32.mrf.mxu0  ;;  %v2223_v50 = vpop.f32.mrf.mxu1 }
 0x1ec   : > { %v2183_v57 = vadd.f32 %v2182_v48, %v725_v45  ;;  %v2224_v51 = vadd.f32 %v2223_v50, %v733_v46 }
 0x1ed   : > { %v2184_v52 = vpop.f32.mrf.mxu0  ;;  %v2225_v55 = vpop.f32.mrf.mxu1 }
 0x1ee   : > { %v2398_v53 = vmax.f32 %v2183_v57, 0.0  ;;  %v2185_v54 = vadd.f32 %v2184_v52, %v729_v47  ;;  %v2400_v56 = vmax.f32 %v2224_v51, 0.0  ;;  %v2226_v58 = vadd.f32 %v2225_v55, %v737_v49 }
 0x1ef   : > { %v2186_v59 = vpop.f32.mrf.mxu0  ;;  %v2227_v61 = vpop.f32.mrf.mxu1 }
 0x1f0   : > { %2414 = vst [vmem:[#allocation2 + $0x50] sm:$0xff] %v2398_v53  ;;  %v2399_v60 = vmax.f32 %v2185_v54, 0.0  ;;  %2416 = vst [vmem:[#allocation2 + $0x8] sm:$0xff] %v2400_v56  ;;  %v2401_v62 = vmax.f32 %v2226_v58, 0.0 }
 0x1f1   : > { %v2187_v63 = vpop.f32.mrf.mxu0  ;;  %v2228_v0 = vpop.f32.mrf.mxu1 }
 0x1f2   : > { %2415 = vst [vmem:[#allocation2 + $0x68] sm:$0xff] %v2399_v60  ;;  %2417 = vst [vmem:[#allocation2 + $0x48] sm:$0xff] %v2401_v62 }
 0x22b   : > { %v2264_v6 = vpop.f32.mrf.mxu0  ;;  %v2305_v9 = vpop.f32.mrf.mxu1 }
 0x22c   : > { %v2265_v8 = vadd.f32 %v2264_v6, %v741_v3  ;;  %v2306_v11 = vadd.f32 %v2305_v9, %v749_v4 }
 0x22d   : > { %v2266_v13 = vpop.f32.mrf.mxu0  ;;  %v2307_v17 = vpop.f32.mrf.mxu1 }
 0x22e   : > { %v2402_v14 = vmax.f32 %v2265_v8, 0.0  ;;  %v2267_v15 = vadd.f32 %v2266_v13, %v745_v5  ;;  %v2404_v18 = vmax.f32 %v2306_v11, 0.0  ;;  %v2308_v22 = vadd.f32 %v2307_v17, %v753_v7 }
 0x22f   : > { %v2268_v16 = vpop.f32.mrf.mxu0  ;;  %v2309_v19 = vpop.f32.mrf.mxu1 }
 0x230   : > { %2418 = vst [vmem:[#allocation2 + $0x40] sm:$0xff] %v2402_v14  ;;  %v2403_v23 = vmax.f32 %v2267_v15, 0.0  ;;  %2420 = vst [vmem:[#allocation2 + $0x10] sm:$0xff] %v2404_v18  ;;  %v2405_v24 = vmax.f32 %v2308_v22, 0.0 }
 0x231   : > { %v2269_v20 = vpop.f32.mrf.mxu0  ;;  %v2310_v25 = vpop.f32.mrf.mxu1 }
 0x232   : > { %2419 = vst [vmem:[#allocation2 + $0x20] sm:$0xff] %v2403_v23  ;;  %2421 = vst [vmem:[#allocation2 + $0x38] sm:$0xff] %v2405_v24 }
 0x26b   : > { %v2346_v27 = vpop.f32.mrf.mxu0  ;;  %v2387_v30 = vpop.f32.mrf.mxu1 }
 0x26c   : > { %v2347_v29 = vadd.f32 %v2346_v27, %v757_v10  ;;  %v2388_v31 = vadd.f32 %v2387_v30, %v765_v21 }
 0x26d   : > { %v2348_v32 = vpop.f32.mrf.mxu0  ;;  %v2389_v35 = vpop.f32.mrf.mxu1 }
 0x26e   : > { %v2406_v33 = vmax.f32 %v2347_v29, 0.0  ;;  %v2349_v34 = vadd.f32 %v2348_v32, %v761_v26  ;;  %v2408_v36 = vmax.f32 %v2388_v31, 0.0  ;;  %v2390_v37 = vadd.f32 %v2389_v35, %v769_v28 }
 0x26f   : > { %v2350_v38 = vpop.f32.mrf.mxu0  ;;  %v2391_v40 = vpop.f32.mrf.mxu1 }
 0x270   : > { %2422 = vst [vmem:[#allocation2 + $0x60] sm:$0xff] %v2406_v33  ;;  %v2407_v39 = vmax.f32 %v2349_v34, 0.0  ;;  %2424 = vst [vmem:[#allocation2 + $0x78] sm:$0xff] %v2408_v36  ;;  %v2409_v41 = vmax.f32 %v2390_v37, 0.0 }
 0x271   : > { %v2351_v42 = vpop.f32.mrf.mxu0  ;;  %v2392_v12 = vpop.f32.mrf.mxu1 }
 0x272   : > { %2423 = vst [vmem:[#allocation2 + $0x70] sm:$0xff] %v2407_v39  ;;  %2425 = vst [vmem:[#allocation2 + $0x28] sm:$0xff] %v2409_v41 }
 0x273 PF: > { %v5336_v43 = vld [vmem:[%s6204_s21 + $0x74] ss:$8 sps:$4 sm:$0xff]   ;;  %v5340_v45 = vld [vmem:[%s6204_s21 + $0x70] ss:$8 sps:$4 sm:$0xff]   ;;  %v5342_v47 = vld [vmem:[%s6204_s21 + $0x64] ss:$8 sps:$4 sm:$0xff]  }
 0x274   : > { %v5338_v44 = vld [vmem:[%s6204_s21 + $0x174] ss:$8 sps:$4 sm:$0xff]   ;;  %4007 = vmatprep.subr.bf16.mxu0 %v5336_v43  ;;  %v5341_v46 = vld [vmem:[%s6204_s21 + $0x170] ss:$8 sps:$4 sm:$0xff]   ;;  %v5344_v48 = vld [vmem:[%s6204_s21 + $0x164] ss:$8 sps:$4 sm:$0xff]  }
 0x275   : > { %4048 = vmatprep.subr.bf16.mxu1 %v5338_v44  ;;  %4008 = vmatpush1.bf16.msra.mxu0 %v5340_v45  ;;  %v5346_v49 = vld [vmem:[%s6204_s21 + $0x60] ss:$8 sps:$4 sm:$0xff]   ;;  %v5348_v50 = vld [vmem:[%s6204_s21 + $0x54] ss:$8 sps:$4 sm:$0xff]   ;;  %v5352_v52 = vld [vmem:[%s6204_s21 + $0x50] ss:$8 sps:$4 sm:$0xff]  }
 0x276   : > { %4049 = vmatpush1.bf16.msra.mxu1 %v5341_v46  ;;  %4009 = vmatprep.subr.bf16.mxu0 %v5342_v47  ;;  %v5347_v57 = vld [vmem:[%s6204_s21 + $0x160] ss:$8 sps:$4 sm:$0xff]   ;;  %v5350_v51 = vld [vmem:[%s6204_s21 + $0x154] ss:$8 sps:$4 sm:$0xff]   ;;  %v5353_v53 = vld [vmem:[%s6204_s21 + $0x150] ss:$8 sps:$4 sm:$0xff]  }
 0x277   : > { %4050 = vmatprep.subr.bf16.mxu1 %v5344_v48  ;;  %v5354_v54 = vld [vmem:[%s6204_s21 + $0x44] ss:$8 sps:$4 sm:$0xff]   ;;  %v5358_v56 = vld [vmem:[%s6204_s21 + $0x40] ss:$8 sps:$4 sm:$0xff]   ;;  %v5360_v59 = vld [vmem:[%s6204_s21 + $0x34] ss:$8 sps:$4 sm:$0xff]  }
 0x278   : > { %v5356_v55 = vld [vmem:[%s6204_s21 + $0x144] ss:$8 sps:$4 sm:$0xff]   ;;  %v5359_v58 = vld [vmem:[%s6204_s21 + $0x140] ss:$8 sps:$4 sm:$0xff]   ;;  %v5362_v60 = vld [vmem:[%s6204_s21 + $0x134] ss:$8 sps:$4 sm:$0xff]  }
 0x279   : > { %4010 = vmatpush1.bf16.msra.mxu0 %v5346_v49  ;;  %v5364_v61 = vld [vmem:[%s6204_s21 + $0x30] ss:$8 sps:$4 sm:$0xff]   ;;  %v5366_v63 = vld [vmem:[%s6204_s21 + $0x24] ss:$8 sps:$4 sm:$0xff]   ;;  %v5370_v1 = vld [vmem:[%s6204_s21 + $0x20] ss:$8 sps:$4 sm:$0xff]  }
 0x27a   : > { %4051 = vmatpush1.bf16.msra.mxu1 %v5347_v57  ;;  %4011 = vmatprep.subr.bf16.mxu0 %v5348_v50  ;;  %v5365_v62 = vld [vmem:[%s6204_s21 + $0x130] ss:$8 sps:$4 sm:$0xff]   ;;  %v5368_v0 = vld [vmem:[%s6204_s21 + $0x124] ss:$8 sps:$4 sm:$0xff]   ;;  %v5371_v2 = vld [vmem:[%s6204_s21 + $0x120] ss:$8 sps:$4 sm:$0xff]  }
 0x27b   : > { %4052 = vmatprep.subr.bf16.mxu1 %v5350_v51  ;;  %v5372_v3 = vld [vmem:[%s6204_s21 + $0x14] ss:$8 sps:$4 sm:$0xff]   ;;  %v5376_v5 = vld [vmem:[%s6204_s21 + $0x10] ss:$8 sps:$4 sm:$0xff]   ;;  %v5378_v7 = vld [vmem:[%s6204_s21 + $0x4] ss:$8 sps:$4 sm:$0xff]  }
 0x27c   : > { %v5374_v4 = vld [vmem:[%s6204_s21 + $0x114] ss:$8 sps:$4 sm:$0xff]   ;;  %v5377_v6 = vld [vmem:[%s6204_s21 + $0x110] ss:$8 sps:$4 sm:$0xff]   ;;  %v5380_v8 = vld [vmem:[%s6204_s21 + $0x104] ss:$8 sps:$4 sm:$0xff]  }
 0x27d   : > { %4012 = vmatpush1.bf16.msra.mxu0 %v5352_v52  ;;  %v5382_v9 = vld [vmem:[%s6204_s21] ss:$8 sps:$4 sm:$0xff]   ;;  %v5384_v13 = vld [vmem:[%s6204_s21 + $0xf4] ss:$8 sps:$4 sm:$0xff]   ;;  %v5388_v15 = vld [vmem:[%s6204_s21 + $0xf0] ss:$8 sps:$4 sm:$0xff]  }
 0x27e   : > { %4053 = vmatpush1.bf16.msra.mxu1 %v5353_v53  ;;  %4013 = vmatprep.subr.bf16.mxu0 %v5354_v54  ;;  %v5383_v11 = vld [vmem:[%s6204_s21 + $0x100] ss:$8 sps:$4 sm:$0xff]   ;;  %v5386_v14 = vld [vmem:[%s6204_s21 + $0x1f4] ss:$8 sps:$4 sm:$0xff]   ;;  %v5389_v17 = vld [vmem:[%s6204_s21 + $0x1f0] ss:$8 sps:$4 sm:$0xff]  }
 0x27f   : > { %4054 = vmatprep.subr.bf16.mxu1 %v5356_v55  ;;  %v5390_v18 = vld [vmem:[%s6204_s21 + $0xe4] ss:$8 sps:$4 sm:$0xff]   ;;  %v5394_v16 = vld [vmem:[%s6204_s21 + $0xe0] ss:$8 sps:$4 sm:$0xff]   ;;  %v5396_v19 = vld [vmem:[%s6204_s21 + $0xd4] ss:$8 sps:$4 sm:$0xff]  }
 0x280   : > { %v5392_v22 = vld [vmem:[%s6204_s21 + $0x1e4] ss:$8 sps:$4 sm:$0xff]   ;;  %v5395_v23 = vld [vmem:[%s6204_s21 + $0x1e0] ss:$8 sps:$4 sm:$0xff]   ;;  %v5398_v24 = vld [vmem:[%s6204_s21 + $0x1d4] ss:$8 sps:$4 sm:$0xff]  }
 0x281   : > { %4014 = vmatpush1.bf16.msra.mxu0 %v5358_v56  ;;  %v5400_v20 = vld [vmem:[%s6204_s21 + $0xd0] ss:$8 sps:$4 sm:$0xff]   ;;  %v5402_v10 = vld [vmem:[%s6204_s21 + $0xc4] ss:$8 sps:$4 sm:$0xff]   ;;  %v5406_v27 = vld [vmem:[%s6204_s21 + $0xc0] ss:$8 sps:$4 sm:$0xff]  }
 0x282   : > { %4055 = vmatpush1.bf16.msra.mxu1 %v5359_v58  ;;  %4015 = vmatprep.subr.bf16.mxu0 %v5360_v59  ;;  %v5401_v25 = vld [vmem:[%s6204_s21 + $0x1d0] ss:$8 sps:$4 sm:$0xff]   ;;  %v5404_v21 = vld [vmem:[%s6204_s21 + $0x1c4] ss:$8 sps:$4 sm:$0xff]   ;;  %v5407_v28 = vld [vmem:[%s6204_s21 + $0x1c0] ss:$8 sps:$4 sm:$0xff]  }
 0x283   : > { %4056 = vmatprep.subr.bf16.mxu1 %v5362_v60  ;;  %v2428_v26 = vld [vmem:[#allocation2] sm:$0xff]  ;;  %v2430_v30 = vld [vmem:[#allocation2 + $0x18] sm:$0xff]  ;;  %v5408_v31 = vld [vmem:[%s6204_s21 + $0xb4] ss:$8 sps:$4 sm:$0xff]   ;;  %p5221_p10 = scmp.ne.s32.totalorder %s6022_s9, 7 }
 0x284   : > { %v2444_v29 = vpack.c.bf16 %v2428_v26, %v2428_v26  ;;  %v2446_v32 = vpack.c.bf16 %v2430_v30, %v2430_v30  ;;  %v5410_v33 = vld [vmem:[%s6204_s21 + $0x1b4] ss:$8 sps:$4 sm:$0xff]   ;;  %v5412_v34 = vld [vmem:[%s6204_s21 + $0xb0] ss:$8 sps:$4 sm:$0xff]   ;;  %v5414_v36 = vld [vmem:[%s6204_s21 + $0xa4] ss:$8 sps:$4 sm:$0xff]  }
 0x285   : > { %4016 = vmatpush1.bf16.msra.mxu0 %v5364_v61  ;;  %v5413_v35 = vld [vmem:[%s6204_s21 + $0x1b0] ss:$8 sps:$4 sm:$0xff]   ;;  %v5416_v37 = vld [vmem:[%s6204_s21 + $0x1a4] ss:$8 sps:$4 sm:$0xff]   ;;  %v5418_v38 = vld [vmem:[%s6204_s21 + $0xa0] ss:$8 sps:$4 sm:$0xff]  }
 0x286   : > { %4057 = vmatpush1.bf16.msra.mxu1 %v5365_v62  ;;  %4017 = vmatprep.subr.bf16.mxu0 %v5366_v63  ;;  %v5419_v39 = vld [vmem:[%s6204_s21 + $0x1a0] ss:$8 sps:$4 sm:$0xff]   ;;  %v5420_v40 = vld [vmem:[%s6204_s21 + $0x94] ss:$8 sps:$4 sm:$0xff]   ;;  %v5424_v42 = vld [vmem:[%s6204_s21 + $0x90] ss:$8 sps:$4 sm:$0xff]  }
 0x287   : > { %4058 = vmatprep.subr.bf16.mxu1 %v5368_v0  ;;  %4039 = vmatprep.mubr.bf16.mxu0 %v2444_v29  ;;  %v5422_v41 = vld [vmem:[%s6204_s21 + $0x194] ss:$8 sps:$4 sm:$0xff]   ;;  %v5425_v12 = vld [vmem:[%s6204_s21 + $0x190] ss:$8 sps:$4 sm:$0xff]   ;;  %v5426_v43 = vld [vmem:[%s6204_s21 + $0x84] ss:$8 sps:$4 sm:$0xff]  }
 0x288   : > { %4080 = vmatprep.mubr.bf16.mxu1 %v2446_v32  ;;  %v5428_v44 = vld [vmem:[%s6204_s21 + $0x184] ss:$8 sps:$4 sm:$0xff]   ;;  %v5430_v45 = vld [vmem:[%s6204_s21 + $0x80] ss:$8 sps:$4 sm:$0xff]   ;;  %v2427_v47 = vld [vmem:[#allocation2 + $0x30] sm:$0xff]  ;;  %s6618_s23 = sld [smem:[#allocation21_spill]] (!%p5221_p10) }
 0x289   : > { %4018 = vmatpush1.bf16.msra.mxu0 %v5370_v1  ;;  %v5431_v46 = vld [vmem:[%s6204_s21 + $0x180] ss:$8 sps:$4 sm:$0xff]   ;;  %v5434_v49 = vld [vmem:[%s6204_s21 + $0x274] ss:$8 sps:$4 sm:$0xff]   ;;  %v2443_v50 = vpack.c.bf16 %v2427_v47, %v2427_v47  ;;  %v5432_v52 = vld [vmem:[%s6204_s21 + $0x270] ss:$8 sps:$4 sm:$0xff]  }
 0x28a   : > { %4059 = vmatpush1.bf16.msra.mxu1 %v5371_v2  ;;  %4019 = vmatprep.subr.bf16.mxu0 %v5372_v3  ;;  %v2429_v48 = vld [vmem:[#allocation2 + $0x58] sm:$0xff]  ;;  %v5437_v57 = vld [vmem:[%s6204_s21 + $0x374] ss:$8 sps:$4 sm:$0xff]   ;;  %v5435_v53 = vld [vmem:[%s6204_s21 + $0x370] ss:$8 sps:$4 sm:$0xff]  }
 0x28b   : > { %4060 = vmatprep.subr.bf16.mxu1 %v5374_v4  ;;  %v2445_v51 = vpack.c.bf16 %v2429_v48, %v2429_v48  ;;  %v5440_v54 = vld [vmem:[%s6204_s21 + $0x264] ss:$8 sps:$4 sm:$0xff]   ;;  %v5438_v56 = vld [vmem:[%s6204_s21 + $0x260] ss:$8 sps:$4 sm:$0xff]   ;;  %v5446_v59 = vld [vmem:[%s6204_s21 + $0x254] ss:$8 sps:$4 sm:$0xff]  }
 0x28c   : > { %v5443_v55 = vld [vmem:[%s6204_s21 + $0x364] ss:$8 sps:$4 sm:$0xff]   ;;  %v5441_v58 = vld [vmem:[%s6204_s21 + $0x360] ss:$8 sps:$4 sm:$0xff]   ;;  %v5449_v60 = vld [vmem:[%s6204_s21 + $0x354] ss:$8 sps:$4 sm:$0xff]  }
 0x28d   : > { %4020 = vmatpush1.bf16.msra.mxu0 %v5376_v5  ;;  %v5444_v61 = vld [vmem:[%s6204_s21 + $0x250] ss:$8 sps:$4 sm:$0xff]   ;;  %v5452_v63 = vld [vmem:[%s6204_s21 + $0x244] ss:$8 sps:$4 sm:$0xff]   ;;  %v5450_v1 = vld [vmem:[%s6204_s21 + $0x240] ss:$8 sps:$4 sm:$0xff]  }
 0x28e   : > { %4061 = vmatpush1.bf16.msra.mxu1 %v5377_v6  ;;  %4021 = vmatprep.subr.bf16.mxu0 %v5378_v7  ;;  %v5447_v62 = vld [vmem:[%s6204_s21 + $0x350] ss:$8 sps:$4 sm:$0xff]   ;;  %v5455_v0 = vld [vmem:[%s6204_s21 + $0x344] ss:$8 sps:$4 sm:$0xff]   ;;  %v5453_v2 = vld [vmem:[%s6204_s21 + $0x340] ss:$8 sps:$4 sm:$0xff]  }
 0x28f   : > { %4062 = vmatprep.subr.bf16.mxu1 %v5380_v8  ;;  %v5458_v3 = vld [vmem:[%s6204_s21 + $0x234] ss:$8 sps:$4 sm:$0xff]   ;;  %v5456_v5 = vld [vmem:[%s6204_s21 + $0x230] ss:$8 sps:$4 sm:$0xff]   ;;  %v5464_v7 = vld [vmem:[%s6204_s21 + $0x224] ss:$8 sps:$4 sm:$0xff]  }
 0x290   : > { %v5461_v4 = vld [vmem:[%s6204_s21 + $0x334] ss:$8 sps:$4 sm:$0xff]   ;;  %v5459_v6 = vld [vmem:[%s6204_s21 + $0x330] ss:$8 sps:$4 sm:$0xff]   ;;  %v5467_v8 = vld [vmem:[%s6204_s21 + $0x324] ss:$8 sps:$4 sm:$0xff]  }
 0x291   : > { %4022 = vmatpush1.bf16.msra.mxu0 %v5382_v9  ;;  %v5462_v9 = vld [vmem:[%s6204_s21 + $0x220] ss:$8 sps:$4 sm:$0xff]   ;;  %v5480_v26 = vld [vmem:[%s6204_s21 + $0x2f0] ss:$8 sps:$4 sm:$0xff]   ;;  %v5491_v29 = vld [vmem:[%s6204_s21 + $0x3e4] ss:$8 sps:$4 sm:$0xff]  }
 0x292   : > { %4063 = vmatpush1.bf16.msra.mxu1 %v5383_v11  ;;  %4023 = vmatprep.subr.bf16.mxu0 %v5384_v13  ;;  %v5465_v11 = vld [vmem:[%s6204_s21 + $0x320] ss:$8 sps:$4 sm:$0xff]   ;;  %v5470_v13 = vld [vmem:[%s6204_s21 + $0x214] ss:$8 sps:$4 sm:$0xff]  }
 0x293   : > { %4064 = vmatprep.subr.bf16.mxu1 %v5386_v14  ;;  %v5473_v14 = vld [vmem:[%s6204_s21 + $0x314] ss:$8 sps:$4 sm:$0xff]   ;;  %v5486_v30 = vld [vmem:[%s6204_s21 + $0x2e0] ss:$8 sps:$4 sm:$0xff]  }
 0x294   : > { %v5494_v32 = vld [vmem:[%s6204_s21 + $0x2d4] ss:$8 sps:$4 sm:$0xff]  }
 0x295   : > { %4024 = vmatpush2.bf16.msra.mxu0 %v5388_v15  ;;  %v2432_v15 = vld [vmem:[#allocation2 + $0x68] sm:$0xff] }
 0x296   : > { %4065 = vmatpush2.bf16.msra.mxu1 %v5389_v17  ;;  %4025 = vmatprep.subr.bf16.mxu0 %v5390_v18  ;;  %v5468_v17 = vld [vmem:[%s6204_s21 + $0x210] ss:$8 sps:$4 sm:$0xff]   ;;  %v5518_v47 = vld [vmem:[%s6204_s21 + $0x294] ss:$8 sps:$4 sm:$0xff]  }
 0x297   : > { %4066 = vmatprep.subr.bf16.mxu1 %v5392_v22  ;;  %v5471_v18 = vld [vmem:[%s6204_s21 + $0x310] ss:$8 sps:$4 sm:$0xff]   ;;  %v2448_v22 = vpack.c.bf16 %v2432_v15, %v2432_v15  ;;  %v5521_v48 = vld [vmem:[%s6204_s21 + $0x394] ss:$8 sps:$4 sm:$0xff]   ;;  %v5546_v15 = vld [vmem:[%s6204_s21 + $0x440] ss:$8 sps:$4 sm:$0xff]  }
 0x299   : > { %4026 = vmatpush2.bf16.msra.mxu0 %v5394_v16  ;;  %v2434_v16 = vld [vmem:[#allocation2 + $0x48] sm:$0xff] }
 0x29a   : > { %4067 = vmatpush2.bf16.msra.mxu1 %v5395_v23  ;;  %4027 = vmatprep.subr.bf16.mxu0 %v5396_v19  ;;  %v5476_v23 = vld [vmem:[%s6204_s21 + $0x204] ss:$8 sps:$4 sm:$0xff]   ;;  %v2450_v19 = vpack.c.bf16 %v2434_v16, %v2434_v16  ;;  %v5552_v16 = vld [vmem:[%s6204_s21 + $0x430] ss:$8 sps:$4 sm:$0xff]  }
 0x29b   : > { %4068 = vmatprep.subr.bf16.mxu1 %v5398_v24  ;;  %v5479_v24 = vld [vmem:[%s6204_s21 + $0x304] ss:$8 sps:$4 sm:$0xff]  }
 0x29d   : > { %4028 = vmatpush2.bf16.msra.mxu0 %v5400_v20  ;;  %v5474_v20 = vld [vmem:[%s6204_s21 + $0x200] ss:$8 sps:$4 sm:$0xff]  }
 0x29e   : > { %4069 = vmatpush2.bf16.msra.mxu1 %v5401_v25  ;;  %4029 = vmatprep.subr.bf16.mxu0 %v5402_v10  ;;  %v5477_v25 = vld [vmem:[%s6204_s21 + $0x300] ss:$8 sps:$4 sm:$0xff]   ;;  %v5482_v10 = vld [vmem:[%s6204_s21 + $0x2f4] ss:$8 sps:$4 sm:$0xff]  }
 0x29f   : > { %4070 = vmatprep.subr.bf16.mxu1 %v5404_v21  ;;  %v5485_v21 = vld [vmem:[%s6204_s21 + $0x3f4] ss:$8 sps:$4 sm:$0xff]  }
 0x2a1   : > { %4030 = vmatpush2.bf16.msra.mxu0 %v5406_v27  ;;  %v5483_v27 = vld [vmem:[%s6204_s21 + $0x3f0] ss:$8 sps:$4 sm:$0xff]  }
 0x2a2   : > { %4071 = vmatpush2.bf16.msra.mxu1 %v5407_v28  ;;  %4031 = vmatprep.subr.bf16.mxu0 %v5408_v31  ;;  %v5488_v28 = vld [vmem:[%s6204_s21 + $0x2e4] ss:$8 sps:$4 sm:$0xff]   ;;  %v5489_v31 = vld [vmem:[%s6204_s21 + $0x3e0] ss:$8 sps:$4 sm:$0xff]  }
 0x2a3   : > { %4072 = vmatprep.subr.bf16.mxu1 %v5410_v33  ;;  %v5497_v33 = vld [vmem:[%s6204_s21 + $0x3d4] ss:$8 sps:$4 sm:$0xff]  }
 0x2a5   : > { %4032 = vmatpush2.bf16.msra.mxu0 %v5412_v34  ;;  %v5492_v34 = vld [vmem:[%s6204_s21 + $0x2d0] ss:$8 sps:$4 sm:$0xff]  }
 0x2a6   : > { %4073 = vmatpush2.bf16.msra.mxu1 %v5413_v35  ;;  %4033 = vmatprep.subr.bf16.mxu0 %v5414_v36  ;;  %v5495_v35 = vld [vmem:[%s6204_s21 + $0x3d0] ss:$8 sps:$4 sm:$0xff]   ;;  %v5500_v36 = vld [vmem:[%s6204_s21 + $0x2c4] ss:$8 sps:$4 sm:$0xff]  }
 0x2a7   : > { %4074 = vmatprep.subr.bf16.mxu1 %v5416_v37  ;;  %v5503_v37 = vld [vmem:[%s6204_s21 + $0x3c4] ss:$8 sps:$4 sm:$0xff]  }
 0x2a9   : > { %4034 = vmatpush2.bf16.msra.mxu0 %v5418_v38  ;;  %v5498_v38 = vld [vmem:[%s6204_s21 + $0x2c0] ss:$8 sps:$4 sm:$0xff]  }
 0x2aa   : > { %4075 = vmatpush2.bf16.msra.mxu1 %v5419_v39  ;;  %4035 = vmatprep.subr.bf16.mxu0 %v5420_v40  ;;  %v5501_v39 = vld [vmem:[%s6204_s21 + $0x3c0] ss:$8 sps:$4 sm:$0xff]   ;;  %v5506_v40 = vld [vmem:[%s6204_s21 + $0x2b4] ss:$8 sps:$4 sm:$0xff]  }
 0x2ab   : > { %4076 = vmatprep.subr.bf16.mxu1 %v5422_v41  ;;  %v5509_v41 = vld [vmem:[%s6204_s21 + $0x3b4] ss:$8 sps:$4 sm:$0xff]  }
 0x2ad   : > { %4036 = vmatpush2.bf16.msra.mxu0 %v5424_v42  ;;  %v5504_v42 = vld [vmem:[%s6204_s21 + $0x2b0] ss:$8 sps:$4 sm:$0xff]  }
 0x2ae   : > { %4077 = vmatpush2.bf16.msra.mxu1 %v5425_v12  ;;  %4037 = vmatprep.subr.bf16.mxu0 %v5426_v43  ;;  %v5507_v12 = vld [vmem:[%s6204_s21 + $0x3b0] ss:$8 sps:$4 sm:$0xff]   ;;  %v5512_v43 = vld [vmem:[%s6204_s21 + $0x2a4] ss:$8 sps:$4 sm:$0xff]  }
 0x2af   : > { %4078 = vmatprep.subr.bf16.mxu1 %v5428_v44  ;;  %v5515_v44 = vld [vmem:[%s6204_s21 + $0x3a4] ss:$8 sps:$4 sm:$0xff]  }
 0x2b1   : > { %4038 = vmatpush2.bf16.msra.mxu0 %v5430_v45  ;;  %v5510_v45 = vld [vmem:[%s6204_s21 + $0x2a0] ss:$8 sps:$4 sm:$0xff]  }
 0x2b2   : > { %4079 = vmatpush2.bf16.msra.mxu1 %v5431_v46  ;;  %4089 = vmatprep.subr.bf16.mxu0 %v5434_v49  ;;  %v5513_v46 = vld [vmem:[%s6204_s21 + $0x3a0] ss:$8 sps:$4 sm:$0xff]   ;;  %v5516_v49 = vld [vmem:[%s6204_s21 + $0x290] ss:$8 sps:$4 sm:$0xff]  }
 0x2b3   : > { %4130 = vmatprep.subr.bf16.mxu1 %v5437_v57  ;;  %v5519_v57 = vld [vmem:[%s6204_s21 + $0x390] ss:$8 sps:$4 sm:$0xff]  }
 0x2b4   : > { %4040 = vmatmul.mubr.bf16.vlgmr.msra.gmra.mxu0 %v2443_v50  ;;  %v5524_v50 = vld [vmem:[%s6204_s21 + $0x284] ss:$8 sps:$4 sm:$0xff]  }
 0x2b5   : > { %4081 = vmatmul.mubr.bf16.vlgmr.msra.gmra.mxu1 %v2445_v51  ;;  %4090 = vmatpush1.bf16.msra.mxu0 %v5432_v52  ;;  %v5527_v51 = vld [vmem:[%s6204_s21 + $0x384] ss:$8 sps:$4 sm:$0xff]   ;;  %v5522_v52 = vld [vmem:[%s6204_s21 + $0x280] ss:$8 sps:$4 sm:$0xff]  }
 0x2b6   : > { %4131 = vmatpush1.bf16.msra.mxu1 %v5435_v53  ;;  %4091 = vmatprep.subr.bf16.mxu0 %v5440_v54  ;;  %v5525_v53 = vld [vmem:[%s6204_s21 + $0x380] ss:$8 sps:$4 sm:$0xff]   ;;  %v2431_v54 = vld [vmem:[#allocation2 + $0x50] sm:$0xff] }
 0x2b7   : > { %4132 = vmatprep.subr.bf16.mxu1 %v5443_v55  ;;  %4121 = vmatprep.mubr.bf16.mxu0 %v2448_v22  ;;  %v2433_v55 = vld [vmem:[#allocation2 + $0x8] sm:$0xff] }
 0x2b8   : > { %4162 = vmatprep.mubr.bf16.mxu1 %v2450_v19  ;;  %v5557_v22 = vld [vmem:[%s6204_s21 + $0x534] ss:$8 sps:$4 sm:$0xff]   ;;  %v5560_v19 = vld [vmem:[%s6204_s21 + $0x424] ss:$8 sps:$4 sm:$0xff]  }
 0x2b9   : > { %4092 = vmatpush1.bf16.msra.mxu0 %v5438_v56  ;;  %v5530_v56 = vld [vmem:[%s6204_s21 + $0x474] ss:$8 sps:$4 sm:$0xff]  }
 0x2ba   : > { %4133 = vmatpush1.bf16.msra.mxu1 %v5441_v58  ;;  %4093 = vmatprep.subr.bf16.mxu0 %v5446_v59  ;;  %v5533_v58 = vld [vmem:[%s6204_s21 + $0x574] ss:$8 sps:$4 sm:$0xff]   ;;  %v2447_v59 = vpack.c.bf16 %v2431_v54, %v2431_v54 }
 0x2bb   : > { %4134 = vmatprep.subr.bf16.mxu1 %v5449_v60  ;;  %v2449_v60 = vpack.c.bf16 %v2433_v55, %v2433_v55  ;;  %v5614_v54 = vld [vmem:[%s6204_s21 + $0x494] ss:$8 sps:$4 sm:$0xff]  }
 0x2bc   : > { %v5617_v55 = vld [vmem:[%s6204_s21 + $0x594] ss:$8 sps:$4 sm:$0xff]  }
 0x2bd   : > { %4094 = vmatpush1.bf16.msra.mxu0 %v5444_v61  ;;  %v5528_v61 = vld [vmem:[%s6204_s21 + $0x470] ss:$8 sps:$4 sm:$0xff]  }
 0x2be   : > { %4135 = vmatpush1.bf16.msra.mxu1 %v5447_v62  ;;  %4095 = vmatprep.subr.bf16.mxu0 %v5452_v63  ;;  %v5531_v62 = vld [vmem:[%s6204_s21 + $0x570] ss:$8 sps:$4 sm:$0xff]   ;;  %v5536_v63 = vld [vmem:[%s6204_s21 + $0x464] ss:$8 sps:$4 sm:$0xff]  }
 0x2bf   : > { %4136 = vmatprep.subr.bf16.mxu1 %v5455_v0  ;;  %v5539_v0 = vld [vmem:[%s6204_s21 + $0x564] ss:$8 sps:$4 sm:$0xff]  }
 0x2c1   : > { %4096 = vmatpush1.bf16.msra.mxu0 %v5450_v1  ;;  %v2436_v1 = vld [vmem:[#allocation2 + $0x20] sm:$0xff] }
 0x2c2   : > { %4137 = vmatpush1.bf16.msra.mxu1 %v5453_v2  ;;  %4097 = vmatprep.subr.bf16.mxu0 %v5458_v3  ;;  %v5534_v2 = vld [vmem:[%s6204_s21 + $0x460] ss:$8 sps:$4 sm:$0xff]  }
 0x2c3   : > { %4138 = vmatprep.subr.bf16.mxu1 %v5461_v4  ;;  %v5537_v3 = vld [vmem:[%s6204_s21 + $0x560] ss:$8 sps:$4 sm:$0xff]   ;;  %v2452_v4 = vpack.c.bf16 %v2436_v1, %v2436_v1  ;;  %v5626_v1 = vld [vmem:[%s6204_s21 + $0x674] ss:$8 sps:$4 sm:$0xff]  }
 0x2c5   : > { %4098 = vmatpush1.bf16.msra.mxu0 %v5456_v5  ;;  %v2438_v5 = vld [vmem:[#allocation2 + $0x38] sm:$0xff] }
 0x2c6   : > { %4139 = vmatpush1.bf16.msra.mxu1 %v5459_v6  ;;  %4099 = vmatprep.subr.bf16.mxu0 %v5464_v7  ;;  %v5542_v6 = vld [vmem:[%s6204_s21 + $0x454] ss:$8 sps:$4 sm:$0xff]   ;;  %v2454_v7 = vpack.c.bf16 %v2438_v5, %v2438_v5 }
 0x2c7   : > { %4140 = vmatprep.subr.bf16.mxu1 %v5467_v8  ;;  %v5545_v8 = vld [vmem:[%s6204_s21 + $0x554] ss:$8 sps:$4 sm:$0xff]  }
 0x2c8   : > { %v2440_v5 = vld [vmem:[#allocation2 + $0x70] sm:$0xff] }
 0x2c9   : > { %4100 = vmatpush1.bf16.msra.mxu0 %v5462_v9  ;;  %v5540_v9 = vld [vmem:[%s6204_s21 + $0x450] ss:$8 sps:$4 sm:$0xff]  }
 0x2ca   : > { %4141 = vmatpush1.bf16.msra.mxu1 %v5465_v11  ;;  %4101 = vmatprep.subr.bf16.mxu0 %v5470_v13  ;;  %v5543_v11 = vld [vmem:[%s6204_s21 + $0x550] ss:$8 sps:$4 sm:$0xff]   ;;  %v5548_v13 = vld [vmem:[%s6204_s21 + $0x444] ss:$8 sps:$4 sm:$0xff]  }
 0x2cb   : > { %4142 = vmatprep.subr.bf16.mxu1 %v5473_v14  ;;  %v5551_v14 = vld [vmem:[%s6204_s21 + $0x544] ss:$8 sps:$4 sm:$0xff]  }
 0x2cd   : > { %4102 = vmatpush1.bf16.msra.mxu0 %v5468_v17  ;;  %v5549_v17 = vld [vmem:[%s6204_s21 + $0x540] ss:$8 sps:$4 sm:$0xff]  }
 0x2ce   : > { %4143 = vmatpush1.bf16.msra.mxu1 %v5471_v18  ;;  %4103 = vmatprep.subr.bf16.mxu0 %v5476_v23  ;;  %v5554_v18 = vld [vmem:[%s6204_s21 + $0x434] ss:$8 sps:$4 sm:$0xff]   ;;  %v5555_v23 = vld [vmem:[%s6204_s21 + $0x530] ss:$8 sps:$4 sm:$0xff]  }
 0x2cf   : > { %4144 = vmatprep.subr.bf16.mxu1 %v5479_v24  ;;  %v5563_v24 = vld [vmem:[%s6204_s21 + $0x524] ss:$8 sps:$4 sm:$0xff]  }
 0x2d1   : > { %4104 = vmatpush1.bf16.msra.mxu0 %v5474_v20  ;;  %v5558_v20 = vld [vmem:[%s6204_s21 + $0x420] ss:$8 sps:$4 sm:$0xff]  }
 0x2d2   : > { %4145 = vmatpush1.bf16.msra.mxu1 %v5477_v25  ;;  %4105 = vmatprep.subr.bf16.mxu0 %v5482_v10  ;;  %v5561_v25 = vld [vmem:[%s6204_s21 + $0x520] ss:$8 sps:$4 sm:$0xff]   ;;  %v5566_v10 = vld [vmem:[%s6204_s21 + $0x414] ss:$8 sps:$4 sm:$0xff]  }
 0x2d3   : > { %4146 = vmatprep.subr.bf16.mxu1 %v5485_v21  ;;  %v5569_v21 = vld [vmem:[%s6204_s21 + $0x514] ss:$8 sps:$4 sm:$0xff]  }
 0x2d5   : > { %4106 = vmatpush2.bf16.msra.mxu0 %v5480_v26  ;;  %v5564_v26 = vld [vmem:[%s6204_s21 + $0x410] ss:$8 sps:$4 sm:$0xff]  }
 0x2d6   : > { %4147 = vmatpush2.bf16.msra.mxu1 %v5483_v27  ;;  %4107 = vmatprep.subr.bf16.mxu0 %v5488_v28  ;;  %v5567_v27 = vld [vmem:[%s6204_s21 + $0x510] ss:$8 sps:$4 sm:$0xff]   ;;  %v5572_v28 = vld [vmem:[%s6204_s21 + $0x404] ss:$8 sps:$4 sm:$0xff]  }
 0x2d7   : > { %4148 = vmatprep.subr.bf16.mxu1 %v5491_v29  ;;  %v5575_v29 = vld [vmem:[%s6204_s21 + $0x504] ss:$8 sps:$4 sm:$0xff]  }
 0x2d9   : > { %4108 = vmatpush2.bf16.msra.mxu0 %v5486_v30  ;;  %v5570_v30 = vld [vmem:[%s6204_s21 + $0x400] ss:$8 sps:$4 sm:$0xff]  }
 0x2da   : > { %4149 = vmatpush2.bf16.msra.mxu1 %v5489_v31  ;;  %4109 = vmatprep.subr.bf16.mxu0 %v5494_v32  ;;  %v5573_v31 = vld [vmem:[%s6204_s21 + $0x500] ss:$8 sps:$4 sm:$0xff]   ;;  %v5578_v32 = vld [vmem:[%s6204_s21 + $0x4f4] ss:$8 sps:$4 sm:$0xff]  }
 0x2db   : > { %4150 = vmatprep.subr.bf16.mxu1 %v5497_v33  ;;  %v5581_v33 = vld [vmem:[%s6204_s21 + $0x5f4] ss:$8 sps:$4 sm:$0xff]  }
 0x2dd   : > { %4110 = vmatpush2.bf16.msra.mxu0 %v5492_v34  ;;  %v5576_v34 = vld [vmem:[%s6204_s21 + $0x4f0] ss:$8 sps:$4 sm:$0xff]  }
 0x2de   : > { %4151 = vmatpush2.bf16.msra.mxu1 %v5495_v35  ;;  %4111 = vmatprep.subr.bf16.mxu0 %v5500_v36  ;;  %v5579_v35 = vld [vmem:[%s6204_s21 + $0x5f0] ss:$8 sps:$4 sm:$0xff]   ;;  %v5584_v36 = vld [vmem:[%s6204_s21 + $0x4e4] ss:$8 sps:$4 sm:$0xff]  }
 0x2df   : > { %4152 = vmatprep.subr.bf16.mxu1 %v5503_v37  ;;  %v5587_v37 = vld [vmem:[%s6204_s21 + $0x5e4] ss:$8 sps:$4 sm:$0xff]  }
 0x2e1   : > { %4112 = vmatpush2.bf16.msra.mxu0 %v5498_v38  ;;  %v5582_v38 = vld [vmem:[%s6204_s21 + $0x4e0] ss:$8 sps:$4 sm:$0xff]  }
 0x2e2   : > { %4153 = vmatpush2.bf16.msra.mxu1 %v5501_v39  ;;  %4113 = vmatprep.subr.bf16.mxu0 %v5506_v40  ;;  %v5585_v39 = vld [vmem:[%s6204_s21 + $0x5e0] ss:$8 sps:$4 sm:$0xff]   ;;  %v5590_v40 = vld [vmem:[%s6204_s21 + $0x4d4] ss:$8 sps:$4 sm:$0xff]  }
 0x2e3   : > { %4154 = vmatprep.subr.bf16.mxu1 %v5509_v41  ;;  %v5593_v41 = vld [vmem:[%s6204_s21 + $0x5d4] ss:$8 sps:$4 sm:$0xff]  }
 0x2e5   : > { %4114 = vmatpush2.bf16.msra.mxu0 %v5504_v42  ;;  %v5588_v42 = vld [vmem:[%s6204_s21 + $0x4d0] ss:$8 sps:$4 sm:$0xff]  }
 0x2e6   : > { %4155 = vmatpush2.bf16.msra.mxu1 %v5507_v12  ;;  %4115 = vmatprep.subr.bf16.mxu0 %v5512_v43  ;;  %v5591_v12 = vld [vmem:[%s6204_s21 + $0x5d0] ss:$8 sps:$4 sm:$0xff]   ;;  %v5596_v43 = vld [vmem:[%s6204_s21 + $0x4c4] ss:$8 sps:$4 sm:$0xff]  }
 0x2e7   : > { %4156 = vmatprep.subr.bf16.mxu1 %v5515_v44  ;;  %v5599_v44 = vld [vmem:[%s6204_s21 + $0x5c4] ss:$8 sps:$4 sm:$0xff]  }
 0x2e9   : > { %4116 = vmatpush2.bf16.msra.mxu0 %v5510_v45  ;;  %v5594_v45 = vld [vmem:[%s6204_s21 + $0x4c0] ss:$8 sps:$4 sm:$0xff]  }
 0x2ea   : > { %4157 = vmatpush2.bf16.msra.mxu1 %v5513_v46  ;;  %4117 = vmatprep.subr.bf16.mxu0 %v5518_v47  ;;  %v5597_v46 = vld [vmem:[%s6204_s21 + $0x5c0] ss:$8 sps:$4 sm:$0xff]   ;;  %v5602_v47 = vld [vmem:[%s6204_s21 + $0x4b4] ss:$8 sps:$4 sm:$0xff]  }
 0x2eb   : > { %4158 = vmatprep.subr.bf16.mxu1 %v5521_v48  ;;  %v5605_v48 = vld [vmem:[%s6204_s21 + $0x5b4] ss:$8 sps:$4 sm:$0xff]  }
 0x2ed   : > { %4118 = vmatpush2.bf16.msra.mxu0 %v5516_v49  ;;  %v5600_v49 = vld [vmem:[%s6204_s21 + $0x4b0] ss:$8 sps:$4 sm:$0xff]  }
 0x2ee   : > { %4159 = vmatpush2.bf16.msra.mxu1 %v5519_v57  ;;  %4119 = vmatprep.subr.bf16.mxu0 %v5524_v50  ;;  %v5603_v57 = vld [vmem:[%s6204_s21 + $0x5b0] ss:$8 sps:$4 sm:$0xff]   ;;  %v5608_v50 = vld [vmem:[%s6204_s21 + $0x4a4] ss:$8 sps:$4 sm:$0xff]  }
 0x2ef   : > { %4160 = vmatprep.subr.bf16.mxu1 %v5527_v51  ;;  %v5611_v51 = vld [vmem:[%s6204_s21 + $0x5a4] ss:$8 sps:$4 sm:$0xff]  }
 0x2f1   : > { %4120 = vmatpush2.bf16.msra.mxu0 %v5522_v52  ;;  %v5606_v52 = vld [vmem:[%s6204_s21 + $0x4a0] ss:$8 sps:$4 sm:$0xff]  }
 0x2f2   : > { %4161 = vmatpush2.bf16.msra.mxu1 %v5525_v53  ;;  %4171 = vmatprep.subr.bf16.mxu0 %v5530_v56  ;;  %v5609_v53 = vld [vmem:[%s6204_s21 + $0x5a0] ss:$8 sps:$4 sm:$0xff]   ;;  %v5612_v56 = vld [vmem:[%s6204_s21 + $0x490] ss:$8 sps:$4 sm:$0xff]  }
 0x2f3   : > { %4212 = vmatprep.subr.bf16.mxu1 %v5533_v58  ;;  %v5615_v58 = vld [vmem:[%s6204_s21 + $0x590] ss:$8 sps:$4 sm:$0xff]  }
 0x2f4   : > { %4122 = vmatmul.mubr.bf16.vlgmr.msra.gmra.mxu0 %v2447_v59  ;;  %v5620_v59 = vld [vmem:[%s6204_s21 + $0x484] ss:$8 sps:$4 sm:$0xff]  }
 0x2f5   : > { %4163 = vmatmul.mubr.bf16.vlgmr.msra.gmra.mxu1 %v2449_v60  ;;  %4172 = vmatpush1.bf16.msra.mxu0 %v5528_v61  ;;  %v5623_v60 = vld [vmem:[%s6204_s21 + $0x584] ss:$8 sps:$4 sm:$0xff]   ;;  %v5618_v61 = vld [vmem:[%s6204_s21 + $0x480] ss:$8 sps:$4 sm:$0xff]  }
 0x2f6   : > { %4213 = vmatpush1.bf16.msra.mxu1 %v5531_v62  ;;  %4173 = vmatprep.subr.bf16.mxu0 %v5536_v63  ;;  %v5621_v62 = vld [vmem:[%s6204_s21 + $0x580] ss:$8 sps:$4 sm:$0xff]  }
 0x2f7   : > { %4214 = vmatprep.subr.bf16.mxu1 %v5539_v0  ;;  %4203 = vmatprep.mubr.bf16.mxu0 %v2452_v4  ;;  %v2435_v63 = vld [vmem:[#allocation2 + $0x40] sm:$0xff]  ;;  %v2437_v0 = vld [vmem:[#allocation2 + $0x10] sm:$0xff] }
 0x2f8   : > { %4244 = vmatprep.mubr.bf16.mxu1 %v2454_v7  ;;  %v2453_v4 = vpack.c.bf16 %v2437_v0, %v2437_v0  ;;  %v5624_v7 = vld [vmem:[%s6204_s21 + $0x670] ss:$8 sps:$4 sm:$0xff]   ;;  %v5710_v0 = vld [vmem:[%s6204_s21 + $0x694] ss:$8 sps:$4 sm:$0xff]  }
 0x2f9   : > { %4174 = vmatpush1.bf16.msra.mxu0 %v5534_v2  ;;  %v5629_v2 = vld [vmem:[%s6204_s21 + $0x774] ss:$8 sps:$4 sm:$0xff]  }
 0x2fa   : > { %4215 = vmatpush1.bf16.msra.mxu1 %v5537_v3  ;;  %4175 = vmatprep.subr.bf16.mxu0 %v5542_v6  ;;  %v2451_v3 = vpack.c.bf16 %v2435_v63, %v2435_v63  ;;  %v2442_v6 = vld [vmem:[#allocation2 + $0x28] sm:$0xff]  ;;  %v2717_v63 = vlaneseq }
 0x2fb   : > { %4216 = vmatprep.subr.bf16.mxu1 %v5545_v8  ;;  %v5627_v8 = vld [vmem:[%s6204_s21 + $0x770] ss:$8 sps:$4 sm:$0xff]  }
 0x2fd   : > { %4176 = vmatpush1.bf16.msra.mxu0 %v5540_v9  ;;  %v5632_v9 = vld [vmem:[%s6204_s21 + $0x664] ss:$8 sps:$4 sm:$0xff]  }
 0x2fe   : > { %4217 = vmatpush1.bf16.msra.mxu1 %v5543_v11  ;;  %4177 = vmatprep.subr.bf16.mxu0 %v5548_v13  ;;  %v5635_v11 = vld [vmem:[%s6204_s21 + $0x764] ss:$8 sps:$4 sm:$0xff]   ;;  %v2456_v13 = vpack.c.bf16 %v2440_v5, %v2440_v5 }
 0x2ff   : > { %4218 = vmatprep.subr.bf16.mxu1 %v5551_v14  ;;  %v2458_v14 = vpack.c.bf16 %v2442_v6, %v2442_v6  ;;  %v5716_v5 = vld [vmem:[%s6204_s21 + $0x684] ss:$8 sps:$4 sm:$0xff]  }
 0x300   : > { %v5719_v6 = vld [vmem:[%s6204_s21 + $0x784] ss:$8 sps:$4 sm:$0xff]  }
 0x301   : > { %4178 = vmatpush1.bf16.msra.mxu0 %v5546_v15  ;;  %v5630_v15 = vld [vmem:[%s6204_s21 + $0x660] ss:$8 sps:$4 sm:$0xff]  }
 0x302   : > { %4219 = vmatpush1.bf16.msra.mxu1 %v5549_v17  ;;  %4179 = vmatprep.subr.bf16.mxu0 %v5554_v18  ;;  %v5633_v17 = vld [vmem:[%s6204_s21 + $0x760] ss:$8 sps:$4 sm:$0xff]   ;;  %v5638_v18 = vld [vmem:[%s6204_s21 + $0x654] ss:$8 sps:$4 sm:$0xff]  }
 0x303   : > { %4220 = vmatprep.subr.bf16.mxu1 %v5557_v22  ;;  %v5641_v22 = vld [vmem:[%s6204_s21 + $0x754] ss:$8 sps:$4 sm:$0xff]  }
 0x305   : > { %4180 = vmatpush1.bf16.msra.mxu0 %v5552_v16  ;;  %v5636_v16 = vld [vmem:[%s6204_s21 + $0x650] ss:$8 sps:$4 sm:$0xff]  }
 0x306   : > { %4221 = vmatpush1.bf16.msra.mxu1 %v5555_v23  ;;  %4181 = vmatprep.subr.bf16.mxu0 %v5560_v19  ;;  %v5639_v23 = vld [vmem:[%s6204_s21 + $0x750] ss:$8 sps:$4 sm:$0xff]   ;;  %v5644_v19 = vld [vmem:[%s6204_s21 + $0x644] ss:$8 sps:$4 sm:$0xff]  }
 0x307   : > { %4222 = vmatprep.subr.bf16.mxu1 %v5563_v24  ;;  %v5647_v24 = vld [vmem:[%s6204_s21 + $0x744] ss:$8 sps:$4 sm:$0xff]  }
 0x309   : > { %4182 = vmatpush1.bf16.msra.mxu0 %v5558_v20  ;;  %v5642_v20 = vld [vmem:[%s6204_s21 + $0x640] ss:$8 sps:$4 sm:$0xff]  }
 0x30a   : > { %4223 = vmatpush1.bf16.msra.mxu1 %v5561_v25  ;;  %4183 = vmatprep.subr.bf16.mxu0 %v5566_v10  ;;  %v5645_v25 = vld [vmem:[%s6204_s21 + $0x740] ss:$8 sps:$4 sm:$0xff]   ;;  %v5650_v10 = vld [vmem:[%s6204_s21 + $0x634] ss:$8 sps:$4 sm:$0xff]  }
 0x30b   : > { %4224 = vmatprep.subr.bf16.mxu1 %v5569_v21  ;;  %v5653_v21 = vld [vmem:[%s6204_s21 + $0x734] ss:$8 sps:$4 sm:$0xff]  }
 0x30d   : > { %4184 = vmatpush1.bf16.msra.mxu0 %v5564_v26  ;;  %v5648_v26 = vld [vmem:[%s6204_s21 + $0x630] ss:$8 sps:$4 sm:$0xff]  }
 0x30e   : > { %4225 = vmatpush1.bf16.msra.mxu1 %v5567_v27  ;;  %4185 = vmatprep.subr.bf16.mxu0 %v5572_v28  ;;  %v5651_v27 = vld [vmem:[%s6204_s21 + $0x730] ss:$8 sps:$4 sm:$0xff]   ;;  %v5656_v28 = vld [vmem:[%s6204_s21 + $0x624] ss:$8 sps:$4 sm:$0xff]  }
 0x30f   : > { %4226 = vmatprep.subr.bf16.mxu1 %v5575_v29  ;;  %v5659_v29 = vld [vmem:[%s6204_s21 + $0x724] ss:$8 sps:$4 sm:$0xff]  }
 0x311   : > { %4186 = vmatpush1.bf16.msra.mxu0 %v5570_v30  ;;  %v5654_v30 = vld [vmem:[%s6204_s21 + $0x620] ss:$8 sps:$4 sm:$0xff]  }
 0x312   : > { %4227 = vmatpush1.bf16.msra.mxu1 %v5573_v31  ;;  %4187 = vmatprep.subr.bf16.mxu0 %v5578_v32  ;;  %v5657_v31 = vld [vmem:[%s6204_s21 + $0x720] ss:$8 sps:$4 sm:$0xff]   ;;  %v5662_v32 = vld [vmem:[%s6204_s21 + $0x614] ss:$8 sps:$4 sm:$0xff]  }
 0x313   : > { %4228 = vmatprep.subr.bf16.mxu1 %v5581_v33  ;;  %v5665_v33 = vld [vmem:[%s6204_s21 + $0x714] ss:$8 sps:$4 sm:$0xff]  }
 0x315   : > { %4188 = vmatpush2.bf16.msra.mxu0 %v5576_v34  ;;  %v5660_v34 = vld [vmem:[%s6204_s21 + $0x610] ss:$8 sps:$4 sm:$0xff]  }
 0x316   : > { %4229 = vmatpush2.bf16.msra.mxu1 %v5579_v35  ;;  %4189 = vmatprep.subr.bf16.mxu0 %v5584_v36  ;;  %v5663_v35 = vld [vmem:[%s6204_s21 + $0x710] ss:$8 sps:$4 sm:$0xff]   ;;  %v5668_v36 = vld [vmem:[%s6204_s21 + $0x604] ss:$8 sps:$4 sm:$0xff]  }
 0x317   : > { %4230 = vmatprep.subr.bf16.mxu1 %v5587_v37  ;;  %v5671_v37 = vld [vmem:[%s6204_s21 + $0x704] ss:$8 sps:$4 sm:$0xff]  }
 0x319   : > { %4190 = vmatpush2.bf16.msra.mxu0 %v5582_v38  ;;  %v5666_v38 = vld [vmem:[%s6204_s21 + $0x600] ss:$8 sps:$4 sm:$0xff]  }
 0x31a   : > { %4231 = vmatpush2.bf16.msra.mxu1 %v5585_v39  ;;  %4191 = vmatprep.subr.bf16.mxu0 %v5590_v40  ;;  %v5669_v39 = vld [vmem:[%s6204_s21 + $0x700] ss:$8 sps:$4 sm:$0xff]   ;;  %v5674_v40 = vld [vmem:[%s6204_s21 + $0x6f4] ss:$8 sps:$4 sm:$0xff]  }
 0x31b   : > { %4232 = vmatprep.subr.bf16.mxu1 %v5593_v41  ;;  %v5677_v41 = vld [vmem:[%s6204_s21 + $0x7f4] ss:$8 sps:$4 sm:$0xff]  }
 0x31d   : > { %4192 = vmatpush2.bf16.msra.mxu0 %v5588_v42  ;;  %v5672_v42 = vld [vmem:[%s6204_s21 + $0x6f0] ss:$8 sps:$4 sm:$0xff]  }
 0x31e   : > { %4233 = vmatpush2.bf16.msra.mxu1 %v5591_v12  ;;  %4193 = vmatprep.subr.bf16.mxu0 %v5596_v43  ;;  %v5675_v12 = vld [vmem:[%s6204_s21 + $0x7f0] ss:$8 sps:$4 sm:$0xff]   ;;  %v5680_v43 = vld [vmem:[%s6204_s21 + $0x6e4] ss:$8 sps:$4 sm:$0xff]  }
 0x31f   : > { %4234 = vmatprep.subr.bf16.mxu1 %v5599_v44  ;;  %v5683_v44 = vld [vmem:[%s6204_s21 + $0x7e4] ss:$8 sps:$4 sm:$0xff]  }
 0x321   : > { %4194 = vmatpush2.bf16.msra.mxu0 %v5594_v45  ;;  %v5678_v45 = vld [vmem:[%s6204_s21 + $0x6e0] ss:$8 sps:$4 sm:$0xff]  }
 0x322   : > { %4235 = vmatpush2.bf16.msra.mxu1 %v5597_v46  ;;  %4195 = vmatprep.subr.bf16.mxu0 %v5602_v47  ;;  %v5681_v46 = vld [vmem:[%s6204_s21 + $0x7e0] ss:$8 sps:$4 sm:$0xff]   ;;  %v5686_v47 = vld [vmem:[%s6204_s21 + $0x6d4] ss:$8 sps:$4 sm:$0xff]  }
 0x323   : > { %4236 = vmatprep.subr.bf16.mxu1 %v5605_v48  ;;  %v5689_v48 = vld [vmem:[%s6204_s21 + $0x7d4] ss:$8 sps:$4 sm:$0xff]  }
 0x325   : > { %4196 = vmatpush2.bf16.msra.mxu0 %v5600_v49  ;;  %v5684_v49 = vld [vmem:[%s6204_s21 + $0x6d0] ss:$8 sps:$4 sm:$0xff]  }
 0x326   : > { %4237 = vmatpush2.bf16.msra.mxu1 %v5603_v57  ;;  %4197 = vmatprep.subr.bf16.mxu0 %v5608_v50  ;;  %v5687_v57 = vld [vmem:[%s6204_s21 + $0x7d0] ss:$8 sps:$4 sm:$0xff]   ;;  %v5692_v50 = vld [vmem:[%s6204_s21 + $0x6c4] ss:$8 sps:$4 sm:$0xff]  }
 0x327   : > { %4238 = vmatprep.subr.bf16.mxu1 %v5611_v51  ;;  %v5695_v51 = vld [vmem:[%s6204_s21 + $0x7c4] ss:$8 sps:$4 sm:$0xff]  }
 0x329   : > { %4198 = vmatpush2.bf16.msra.mxu0 %v5606_v52  ;;  %v5690_v52 = vld [vmem:[%s6204_s21 + $0x6c0] ss:$8 sps:$4 sm:$0xff]  }
 0x32a   : > { %4239 = vmatpush2.bf16.msra.mxu1 %v5609_v53  ;;  %4199 = vmatprep.subr.bf16.mxu0 %v5614_v54  ;;  %v5693_v53 = vld [vmem:[%s6204_s21 + $0x7c0] ss:$8 sps:$4 sm:$0xff]   ;;  %v5698_v54 = vld [vmem:[%s6204_s21 + $0x6b4] ss:$8 sps:$4 sm:$0xff]  }
 0x32b   : > { %4240 = vmatprep.subr.bf16.mxu1 %v5617_v55  ;;  %v5701_v55 = vld [vmem:[%s6204_s21 + $0x7b4] ss:$8 sps:$4 sm:$0xff]  }
 0x32d   : > { %4200 = vmatpush2.bf16.msra.mxu0 %v5612_v56  ;;  %v5696_v56 = vld [vmem:[%s6204_s21 + $0x6b0] ss:$8 sps:$4 sm:$0xff]  }
 0x32e   : > { %4241 = vmatpush2.bf16.msra.mxu1 %v5615_v58  ;;  %4201 = vmatprep.subr.bf16.mxu0 %v5620_v59  ;;  %v5699_v58 = vld [vmem:[%s6204_s21 + $0x7b0] ss:$8 sps:$4 sm:$0xff]   ;;  %v5704_v59 = vld [vmem:[%s6204_s21 + $0x6a4] ss:$8 sps:$4 sm:$0xff]  }
 0x32f   : > { %4242 = vmatprep.subr.bf16.mxu1 %v5623_v60  ;;  %v5707_v60 = vld [vmem:[%s6204_s21 + $0x7a4] ss:$8 sps:$4 sm:$0xff]  }
 0x331   : > { %4202 = vmatpush2.bf16.msra.mxu0 %v5618_v61  ;;  %v5702_v61 = vld [vmem:[%s6204_s21 + $0x6a0] ss:$8 sps:$4 sm:$0xff]  }
 0x332   : > { %4243 = vmatpush2.bf16.msra.mxu1 %v5621_v62  ;;  %4253 = vmatprep.subr.bf16.mxu0 %v5626_v1  ;;  %v5705_v62 = vld [vmem:[%s6204_s21 + $0x7a0] ss:$8 sps:$4 sm:$0xff]   ;;  %v5713_v1 = vld [vmem:[%s6204_s21 + $0x794] ss:$8 sps:$4 sm:$0xff]  }
 0x333   : > { %4294 = vmatprep.subr.bf16.mxu1 %v5629_v2  ;;  %v5708_v2 = vld [vmem:[%s6204_s21 + $0x690] ss:$8 sps:$4 sm:$0xff]  }
 0x334   : > { %4204 = vmatmul.mubr.bf16.vlgmr.msra.gmra.mxu0 %v2451_v3  ;;  %v5711_v3 = vld [vmem:[%s6204_s21 + $0x790] ss:$8 sps:$4 sm:$0xff]  }
 0x335   : > { %4245 = vmatmul.mubr.bf16.vlgmr.msra.gmra.mxu1 %v2453_v4  ;;  %4254 = vmatpush1.bf16.msra.mxu0 %v5624_v7  ;;  %v2718_v4 = vshrl.u32 %v2717_v63, 7  ;;  %v5714_v7 = vld [vmem:[%s6204_s21 + $0x680] ss:$8 sps:$4 sm:$0xff]  }
 0x336   : > { %4295 = vmatpush1.bf16.msra.mxu1 %v5627_v8  ;;  %4255 = vmatprep.subr.bf16.mxu0 %v5632_v9  ;;  %v5717_v8 = vld [vmem:[%s6204_s21 + $0x780] ss:$8 sps:$4 sm:$0xff]  }
 0x337   : > { %4296 = vmatprep.subr.bf16.mxu1 %v5635_v11  ;;  %4285 = vmatprep.mubr.bf16.mxu0 %v2456_v13  ;;  %v2719_v9 = vsub.s32 0, %v2718_v4  ;;  %v2439_v11 = vld [vmem:[#allocation2 + $0x60] sm:$0xff]  ;;  %v2441_v13 = vld [vmem:[#allocation2 + $0x78] sm:$0xff] }
 0x338   : > { %4326 = vmatprep.mubr.bf16.mxu1 %v2458_v14  ;;  %v2715_v14 = vld [vmem:[%s6210_s14] sm:$0x3] }
 0x339   : > { %4256 = vmatpush1.bf16.msra.mxu0 %v5630_v15  ;;  %v2723_v15 = vsub.s32 1, %v2718_v4 }
 0x33a   : > { %4297 = vmatpush1.bf16.msra.mxu1 %v5633_v17  ;;  %4257 = vmatprep.subr.bf16.mxu0 %v5638_v18  ;;  %v2455_v17 = vpack.c.bf16 %v2439_v11, %v2439_v11  ;;  %v2457_v18 = vpack.c.bf16 %v2441_v13, %v2441_v13 }
 0x33b   : > { %4298 = vmatprep.subr.bf16.mxu1 %v5641_v22  ;;  %v2720_v22 = vrot.slane %v2715_v14, %v2719_v9 }
 0x33d   : > { %4258 = vmatpush1.bf16.msra.mxu0 %v5636_v16  ;;  %v2724_v16 = vrot.slane %v2715_v14, %v2723_v15 }
 0x33e   : > { %4299 = vmatpush1.bf16.msra.mxu1 %v5639_v23  ;;  %4259 = vmatprep.subr.bf16.mxu0 %v5644_v19 }
 0x33f   : > { %4300 = vmatprep.subr.bf16.mxu1 %v5647_v24 }
 0x341   : > { %4260 = vmatpush1.bf16.msra.mxu0 %v5642_v20 }
 0x342   : > { %4301 = vmatpush1.bf16.msra.mxu1 %v5645_v25  ;;  %4261 = vmatprep.subr.bf16.mxu0 %v5650_v10 }
 0x343   : > { %4302 = vmatprep.subr.bf16.mxu1 %v5653_v21 }
 0x345   : > { %4262 = vmatpush1.bf16.msra.mxu0 %v5648_v26 }
 0x346   : > { %4303 = vmatpush1.bf16.msra.mxu1 %v5651_v27  ;;  %4263 = vmatprep.subr.bf16.mxu0 %v5656_v28 }
 0x347   : > { %4304 = vmatprep.subr.bf16.mxu1 %v5659_v29 }
 0x349   : > { %4264 = vmatpush1.bf16.msra.mxu0 %v5654_v30 }
 0x34a   : > { %4305 = vmatpush1.bf16.msra.mxu1 %v5657_v31  ;;  %4265 = vmatprep.subr.bf16.mxu0 %v5662_v32  ;;  %v5720_v31 = vld [vmem:[%s6212_s17 + $0x78] sm:$0xff]  }
 0x34b   : > { %4306 = vmatprep.subr.bf16.mxu1 %v5665_v33  ;;  %v5721_v32 = vld [vmem:[%s6212_s17 + $0x38] sm:$0xff]   ;;  %v5722_v33 = vld [vmem:[%s6212_s17 + $0x70] sm:$0xff]  }
 0x34d   : > { %4266 = vmatpush1.bf16.msra.mxu0 %v5660_v34  ;;  %v5723_v34 = vld [vmem:[%s6212_s17 + $0x30] sm:$0xff]  }
 0x34e   : > { %4307 = vmatpush1.bf16.msra.mxu1 %v5663_v35  ;;  %4267 = vmatprep.subr.bf16.mxu0 %v5668_v36  ;;  %v5724_v35 = vld [vmem:[%s6212_s17 + $0x68] sm:$0xff]  }
 0x34f   : > { %4308 = vmatprep.subr.bf16.mxu1 %v5671_v37  ;;  %v5725_v36 = vld [vmem:[%s6212_s17 + $0x28] sm:$0xff]   ;;  %v5726_v37 = vld [vmem:[%s6212_s17 + $0x60] sm:$0xff]  }
 0x351   : > { %4268 = vmatpush1.bf16.msra.mxu0 %v5666_v38  ;;  %v5727_v38 = vld [vmem:[%s6212_s17 + $0x20] sm:$0xff]  }
 0x352   : > { %4309 = vmatpush1.bf16.msra.mxu1 %v5669_v39  ;;  %4269 = vmatprep.subr.bf16.mxu0 %v5674_v40  ;;  %v5728_v39 = vld [vmem:[%s6212_s17 + $0x58] sm:$0xff]  }
 0x353   : > { %4310 = vmatprep.subr.bf16.mxu1 %v5677_v41  ;;  %v5729_v40 = vld [vmem:[%s6212_s17 + $0x18] sm:$0xff]   ;;  %v5730_v41 = vld [vmem:[%s6212_s17 + $0x50] sm:$0xff]  }
 0x355   : > { %4270 = vmatpush2.bf16.msra.mxu0 %v5672_v42  ;;  %v5731_v42 = vld [vmem:[%s6212_s17 + $0x10] sm:$0xff]  }
 0x356   : > { %4311 = vmatpush2.bf16.msra.mxu1 %v5675_v12  ;;  %4271 = vmatprep.subr.bf16.mxu0 %v5680_v43 }
 0x357   : > { %4312 = vmatprep.subr.bf16.mxu1 %v5683_v44 }
 0x359   : > { %4272 = vmatpush2.bf16.msra.mxu0 %v5678_v45 }
 0x35a   : > { %4313 = vmatpush2.bf16.msra.mxu1 %v5681_v46  ;;  %4273 = vmatprep.subr.bf16.mxu0 %v5686_v47  ;;  %v5732_v47 = vld [vmem:[%s6212_s17 + $0x48] sm:$0xff]  }
 0x35b   : > { %4314 = vmatprep.subr.bf16.mxu1 %v5689_v48 }
 0x35d   : > { %4274 = vmatpush2.bf16.msra.mxu0 %v5684_v49 }
 0x35e   : > { %4315 = vmatpush2.bf16.msra.mxu1 %v5687_v57  ;;  %4275 = vmatprep.subr.bf16.mxu0 %v5692_v50  ;;  %v5733_v57 = vld [vmem:[%s6212_s17 + $0x8] sm:$0xff]  }
 0x35f   : > { %4316 = vmatprep.subr.bf16.mxu1 %v5695_v51 }
 0x361   : > { %4276 = vmatpush2.bf16.msra.mxu0 %v5690_v52 }
 0x362   : > { %4317 = vmatpush2.bf16.msra.mxu1 %v5693_v53  ;;  %4277 = vmatprep.subr.bf16.mxu0 %v5698_v54 }
 0x363   : > { %4318 = vmatprep.subr.bf16.mxu1 %v5701_v55  ;;  %v5734_v55 = vld [vmem:[%s6212_s17 + $0x40] sm:$0xff]  }
 0x365   : > { %4278 = vmatpush2.bf16.msra.mxu0 %v5696_v56  ;;  %v5735_v56 = vld [vmem:[%s6212_s17] sm:$0xff]  }
 0x366   : > { %4319 = vmatpush2.bf16.msra.mxu1 %v5699_v58  ;;  %4279 = vmatprep.subr.bf16.mxu0 %v5704_v59 }
 0x367   : > { %4320 = vmatprep.subr.bf16.mxu1 %v5707_v60 }
 0x369   : > { %4280 = vmatpush2.bf16.msra.mxu0 %v5702_v61 }
 0x36a   : > { %4321 = vmatpush2.bf16.msra.mxu1 %v5705_v62  ;;  %4281 = vmatprep.subr.bf16.mxu0 %v5710_v0 }
 0x36b   : > { %4322 = vmatprep.subr.bf16.mxu1 %v5713_v1 }
 0x36d   : > { %4282 = vmatpush2.bf16.msra.mxu0 %v5708_v2 }
 0x36e   : > { %4323 = vmatpush2.bf16.msra.mxu1 %v5711_v3  ;;  %4283 = vmatprep.subr.bf16.mxu0 %v5716_v5 }
 0x36f   : > { %4324 = vmatprep.subr.bf16.mxu1 %v5719_v6 }
 0x371   : > { %4284 = vmatpush2.bf16.msra.mxu0 %v5714_v7 }
 0x372   : > { %4325 = vmatpush2.bf16.msra.mxu1 %v5717_v8  ;;  %5228 = vmatprep.subr.bf16.mxu0 %v5720_v31 }
 0x374   : > { %v4041_v23 = vpop.f32.mrf.mxu0  ;;  %4286 = vmatmul.mubr.bf16.vlgmr.msra.gmra.mxu0 %v2455_v17 }
 0x375   : > { %v4082_v19 = vpop.f32.mrf.mxu1  ;;  %4327 = vmatmul.mubr.bf16.vlgmr.msra.gmra.mxu1 %v2457_v18  ;;  %v4042_v24 = vadd.f32 %v4041_v23, %v2720_v22  ;;  %5229 = vmatpush3.bf16.msra.mxu0 %v5721_v32 }
 0x376   : > { %v4043_v20 = vpop.f32.mrf.mxu0  ;;  %5230 = vmatprep.subr.bf16.mxu0 %v5722_v33 }
 0x377   : > { %v4084_v25 = vpop.f32.mrf.mxu1  ;;  %v4083_v10 = vadd.f32 %v4082_v19, %v4042_v24  ;;  %v4044_v21 = vadd.f32 %v4043_v20, %v2724_v16 }
 0x378   : > { %v4045_v26 = vpop.f32.mrf.mxu0 }
 0x379   : > { %v4086_v27 = vpop.f32.mrf.mxu1  ;;  %v4085_v28 = vadd.f32 %v4084_v25, %v4044_v21  ;;  %5231 = vmatpush3.bf16.msra.mxu0 %v5723_v34 }
 0x37a   : > { %v4046_v29 = vpop.f32.mrf.mxu0  ;;  %5232 = vmatprep.subr.bf16.mxu0 %v5724_v35 }
 0x37b   : > { %v4087_v30 = vpop.f32.mrf.mxu1 }
 0x37d   : > { %5233 = vmatpush3.bf16.msra.mxu0 %v5725_v36 }
 0x37e   : > { %5234 = vmatprep.subr.bf16.mxu0 %v5726_v37 }
 0x381   : > { %5235 = vmatpush3.bf16.msra.mxu0 %v5727_v38 }
 0x382   : > { %5236 = vmatprep.subr.bf16.mxu0 %v5728_v39 }
 0x385   : > { %5237 = vmatpush3.bf16.msra.mxu0 %v5729_v40 }
 0x386   : > { %5238 = vmatprep.subr.bf16.mxu0 %v5730_v41 }
 0x389   : > { %5239 = vmatpush3.bf16.msra.mxu0 %v5731_v42 }
 0x38a   : > { %5240 = vmatprep.subr.bf16.mxu0 %v5732_v47 }
 0x38d   : > { %5241 = vmatpush3.bf16.msra.mxu0 %v5733_v57 }
 0x38e   : > { %5242 = vmatprep.subr.bf16.mxu0 %v5734_v55 }
 0x391   : > { %5243 = vmatpush3.bf16.msra.mxu0 %v5735_v56 }
 0x3b4   : > { %v4123_v12 = vpop.f32.mrf.mxu0 }
 0x3b5   : > { %v4164_v43 = vpop.f32.mrf.mxu1  ;;  %v4124_v44 = vadd.f32 %v4123_v12, %v4083_v10  ;;  %v4339_v10 = vld [vmem:[#allocation3] sm:$0xff] }
 0x3b6   : > { %v4125_v45 = vpop.f32.mrf.mxu0 }
 0x3b7   : > { %v4166_v46 = vpop.f32.mrf.mxu1  ;;  %v4165_v48 = vadd.f32 %v4164_v43, %v4124_v44  ;;  %v4126_v49 = vadd.f32 %v4125_v45, %v4085_v28 }
 0x3b8   : > { %v4127_v50 = vpop.f32.mrf.mxu0 }
 0x3b9   : > { %v4168_v51 = vpop.f32.mrf.mxu1  ;;  %v4167_v52 = vadd.f32 %v4166_v46, %v4126_v49 }
 0x3ba   : > { %v4128_v53 = vpop.f32.mrf.mxu0 }
 0x3bb   : > { %v4169_v54 = vpop.f32.mrf.mxu1 }
 0x3f4   : > { %v4205_v58 = vpop.f32.mrf.mxu0 }
 0x3f5   : > { %v4246_v59 = vpop.f32.mrf.mxu1  ;;  %v4206_v2 = vadd.f32 %v4205_v58, %v4165_v48 }
 0x3f6   : > { %v4207_v60 = vpop.f32.mrf.mxu0 }
 0x3f7   : > { %v4248_v61 = vpop.f32.mrf.mxu1  ;;  %v4208_v3 = vadd.f32 %v4207_v60, %v4167_v52  ;;  %v4247_v4 = vadd.f32 %v4246_v59, %v4206_v2 }
 0x3f8   : > { %v4209_v62 = vpop.f32.mrf.mxu0 }
 0x3f9   : > { %v4250_v63 = vpop.f32.mrf.mxu1  ;;  %v4249_v7 = vadd.f32 %v4248_v61, %v4208_v3 }
 0x3fa   : > { %v4210_v0 = vpop.f32.mrf.mxu0 }
 0x3fb   : > { %v4251_v1 = vpop.f32.mrf.mxu1 }
 0x434   : > { %v4287_v5 = vpop.f32.mrf.mxu0 }
 0x435   : > { %v4328_v6 = vpop.f32.mrf.mxu1  ;;  %v4288_v8 = vadd.f32 %v4287_v5, %v4247_v4 }
 0x436   : > { %v4289_v9 = vpop.f32.mrf.mxu0 }
 0x437   : > { %v4330_v11 = vpop.f32.mrf.mxu1  ;;  %v4329_v13 = vadd.f32 %v4328_v6, %v4288_v8  ;;  %v4290_v14 = vadd.f32 %v4289_v9, %v4249_v7 }
 0x438   : > { %v4291_v15 = vpop.f32.mrf.mxu0 }
 0x439   : > { %v4332_v17 = vpop.f32.mrf.mxu1  ;;  %v4335_v18 = vmax.f32 %v4329_v13, 0.0  ;;  %v4331_v22 = vadd.f32 %v4330_v11, %v4290_v14 }
 0x43a   : > { %v4292_v16 = vpop.f32.mrf.mxu0 }
 0x43b   : > { %v4333_v23 = vpop.f32.mrf.mxu1  ;;  %4337 = vst [vmem:[%s6222_s20] sm:$0xff] %v4335_v18  ;;  %v4336_v19 = vmax.f32 %v4331_v22, 0.0  ;;  %v4340_v20 = vpack.c.bf16 %v4335_v18, %v4335_v18 }
 0x43d   : > { %4338 = vst [vmem:[%s6222_s20 + $0x8] sm:$0xff] %v4336_v19  ;;  %v4341_v24 = vpack.c.bf16 %v4336_v19, %v4336_v19 }
 0x43f   : > { %4502 = vmatprep.mubr.bf16.mxu0 %v4341_v24 }
 0x440   : > { %4503 = vmatmul.mubr.bf16.vlgmr.msra.gmra.mxu0 %v4340_v20 }
 0x500   : > { %v5244_v25 = vpop.f32.mrf.mxu0 }
 0x502   : > { %v5245_v21 = vpop.f32.mrf.mxu0 }
 0x503   : > { %v5246_v26 = vadd.f32 %v5245_v21, %v5244_v25  ;;  %4515 = sbr.rel (%p5221_p10) target bundleno = 1298 (0x512), region = 80 }
 0x504   : > { %v5247_v27 = vpop.f32.mrf.mxu0 }
 0x505   : > { %v4510_v28 = vadd.f32 %v5246_v26, %v4339_v10 }
 0x506   : > { %v5248_v29 = vpop.f32.mrf.mxu0 }
 0x507   : > { %4511 = vst [vmem:[#allocation3] sm:$0xff] %v4510_v28 }
 0x508   : > { %v5222_v31 = vld [vmem:[#allocation11] ss:$0 sm:$0xff] }
 0x50e   : > { %v4516_v30 = vld [vmem:[#allocation3] sm:$0xff] }
 0x50f   : > { %v4524_v32 = vadd.f32 %v5222_v31, %v4516_v30 }
 0x511   : > { %4525 = vst [vmem:[%s6618_s23] sm:$0xff] %v4524_v32 }
 0x512 PF: > { %s6619_s30 = sld [smem:[#allocation17_spill]]  ;;  %s6622_s27 = smov %s5936_s28 }
 0x513   : > { %s6620_s8 = sld [smem:[#allocation16_spill]] }
 0x514   : > { %s6621_s29 = sld [smem:[#allocation18_spill]] }
 0x518   : > { %p18_p6 = scmp.ge.s32.totalorder %s6619_s30, 10  }
 0x519   : > { %s6623_s28 = smov %s6620_s8 }
 0x51a   :  { %20 = sbr.rel (!%p18_p6) target bundleno = 7 (0x7), region = 137 }
 0x51f   :  { %4554 = vsyncpa [#allocation5], 1 }
 0x520   :  { %4556 = vsyncpa [#allocation5 + $0x1], 1 }
 0x521   :  { %4557 = vsyncpa [#allocation7], 1 }

</bundles_post_ra>
